<compile_context>
chip_gen: v7x
topology: tpu7x:2x2x1
jax: 0.10.0
libtpu: 0.0.40
codegen_flags: <defaults>
</compile_context>

<pallas_src>
import jax
import jax.numpy as jnp
from jax import lax
from jax.experimental import pallas as pl
from jax.experimental.pallas import tpu as pltpu

BERT_MAX_LEN = 512
EMB_DIM = 300          # GraphClassification default emb_dim
EMB_PAD = 384          # lane-aligned (3 * 128) feature width used inside the kernels
BERT_HID = 3072        # 'bert-base-uncased' -> cat of last 4 hidden layers (4*768)
CLS_HIDDEN = 256       # graph_classification default hidden_dim
OUT_DIM = 1            # out_dim == 1 exercises the squeeze(2) branch
OUT_PAD = 128          # lane-aligned padded classifier output width


def _round_up(x, m):
    return ((x + m - 1) // m) * m


# ---------------------------------------------------------------------------
# Kernel 1: _bert_linear + PReLU + short-article stitching (row mask)
#   y[b, r, :] = prelu(x[b, r, :] @ W + bias)   for r < source_num[b]
#   y[b, r, :] = 0                              otherwise  (== torch.zeros source)
# x tiles are read in f32 and cast to bf16 in-kernel (free VPU work under the
# MXU); fully-masked tiles skip the matmul and just store zeros.
# ---------------------------------------------------------------------------
def _bert_proj_stitch_kernel(sn_ref, a_ref, x_ref, w_ref, b_ref, o_ref):
    b = pl.program_id(0)
    i = pl.program_id(1)
    tile_rows = o_ref.shape[1]
    sn = sn_ref[b]                                     # source_num for this article (SMEM)
    row_start = i * tile_rows

    @pl.when(row_start < sn)
    def _():
        x = x_ref[0].astype(jnp.bfloat16)              # in-kernel cast of the f32 tile
        y = jnp.dot(x, w_ref[...], preferred_element_type=jnp.float32)
        y = y + b_ref[...]
        a = a_ref[0]                                   # PReLU slope (nn.PReLU(), init 0.25)
        y = jnp.maximum(y, 0.0) + a * jnp.minimum(y, 0.0)
        e = y.shape[1]
        row_ids = row_start + lax.broadcasted_iota(jnp.int32, (tile_rows, e), 0)
        o_ref[0] = jnp.where(row_ids < sn, y, 0.0).astype(o_ref.dtype)

    @pl.when(row_start >= sn)
    def _():
        o_ref[...] = jnp.zeros_like(o_ref)             # dead tile: no matmul, just zeros


def bert_proj_stitch(x, w_bf16, bias, prelu_a, source_nums):
    """x: (num_chunks, Lb, 3072) f32 -> (num_chunks, Lb_pad, EMB_PAD) bf16 stitched articles."""
    Bc, Lb, K = x.shape
    E = w_bf16.shape[1]
    Lb_pad = _round_up(Lb, 16)                         # bf16-friendly sublane multiple
    # HBM-read-bound on x: big row tiles amortize per-step overhead and grow DMA
    # granularity; the batch axis already gives >=2 parallel grid steps for v7x.
    if Lb_pad % 512 == 0:
        tile_rows = 512
    elif Lb_pad % 256 == 0:
        tile_rows = 256
    elif Lb_pad % 128 == 0:
        tile_rows = 128
    else:
        tile_rows = Lb_pad
    if Lb_pad != Lb:
        x = jnp.pad(x, ((0, 0), (0, Lb_pad - Lb), (0, 0)))
    return pl.pallas_call(
        _bert_proj_stitch_kernel,
        out_shape=jax.ShapeDtypeStruct((Bc, Lb_pad, E), jnp.bfloat16),
        grid=(Bc, Lb_pad // tile_rows),
        in_specs=[
            pl.BlockSpec(memory_space=pltpu.MemorySpace.SMEM),     # source_nums (int32)
            pl.BlockSpec(memory_space=pltpu.MemorySpace.SMEM),     # prelu slope (scalar)
            pl.BlockSpec((1, tile_rows, K), lambda b, i: (b, i, 0)),
            pl.BlockSpec((K, E), lambda b, i: (0, 0)),
            pl.BlockSpec((1, E), lambda b, i: (0, 0)),
        ],
        out_specs=pl.BlockSpec((1, tile_rows, E), lambda b, i: (b, i, 0)),
        # 512-row f32 x tiles double-buffered + bf16 weight ~= 17 MiB: above v5e's
        # 16 MiB default scoped VMEM, well within 32 MiB (safe on v5e/v6e/v7x).
        compiler_params=pltpu.CompilerParams(
            dimension_semantics=("parallel", "parallel"),
            vmem_limit_bytes=32 * 1024 * 1024),
    )(source_nums.astype(jnp.int32), prelu_a, x, w_bf16, bias)


# ---------------------------------------------------------------------------
# Kernel 2 (fused): _encode_graph node encoding + _class_layer
#   gather(articles, idx) -> masked mean (MeanSentEncoder) -> relu(xW1+b1)W2+b2
# Gather is a mask-weighted one-hot matmul built incrementally over the small
# word axis (stays 2-D).  node_reps never leaves VMEM; W1/W2 stay resident.
# ---------------------------------------------------------------------------
def _encode_class_kernel(art_ref, idx_ref, mask_ref, w1_ref, b1_ref, w2_ref, b2_ref, o_ref):
    art = art_ref[0]          # (L, D) bf16 stitched article
    idx = idx_ref[0]          # (N, W) int32 token positions
    mask = mask_ref[0]        # (N, W) float mask
    N, W = idx.shape
    L = art.shape[0]
    iota_l = lax.broadcasted_iota(jnp.int32, (N, L), 1)
    weights = jnp.zeros((N, L), jnp.float32)
    for w in range(W):        # W is small & static -> unrolled, stays 2-D
        weights = weights + jnp.where(idx[:, w:w + 1] == iota_l, mask[:, w:w + 1], 0.0)
    # mask values are 0/1 so the bf16 one-hot weights are exact
    summed = jnp.dot(weights.astype(jnp.bfloat16), art,
                     preferred_element_type=jnp.float32)              # (N, D)
    # TODO(synk): MeanSentEncoder source not provided; assuming masked mean with +1e-8 denom.
    denom = jnp.sum(mask, axis=1, keepdims=True) + 1e-8
    node_reps = summed / denom                                        # (N, D) f32

    # graph_classification: Linear -> ReLU -> Linear (bf16 operands, f32 accumulate)
    h = jnp.dot(node_reps.astype(jnp.bfloat16), w1_ref[...],
                preferred_element_type=jnp.float32) + b1_ref[...]
    h = jnp.maximum(h, 0.0)
    o_ref[0] = jnp.dot(h.astype(jnp.bfloat16), w2_ref[...],
                       preferred_element_type=jnp.float32) + b2_ref[...]


def encode_and_classify(articles, idx, mask, w1, b1, w2, b2):
    """articles: (bs, L, D) bf16 -> (bs, n_node, OUT_PAD) f32 class-layer output."""
    bs, L, D = articles.shape
    _, N, W = idx.shape
    N_pad = _round_up(N, 8)
    if N_pad != N:            # padded nodes: mask=0 -> zero rep -> sliced off below
        idx = jnp.pad(idx, ((0, 0), (0, N_pad - N), (0, 0)))
        mask = jnp.pad(mask, ((0, 0), (0, N_pad - N), (0, 0)))
    Hd = w1.shape[1]
    Opad = w2.shape[1]
    # TODO(synk): for bs == 1 on v7x, add a node-tile grid axis so both TensorCores get work.
    out = pl.pallas_call(
        _encode_class_kernel,
        out_shape=jax.ShapeDtypeStruct((bs, N_pad, Opad), jnp.float32),
        grid=(bs,),
        in_specs=[
            pl.BlockSpec((1, L, D), lambda b: (b, 0, 0)),
            pl.BlockSpec((1, N_pad, W), lambda b: (b, 0, 0)),
            pl.BlockSpec((1, N_pad, W), lambda b: (b, 0, 0)),
            pl.BlockSpec((D, Hd), lambda b: (0, 0)),
            pl.BlockSpec((1, Hd), lambda b: (0, 0)),
            pl.BlockSpec((Hd, Opad), lambda b: (0, 0)),
            pl.BlockSpec((1, Opad), lambda b: (0, 0)),
        ],
        out_specs=pl.BlockSpec((1, N_pad, Opad), lambda b: (b, 0, 0)),
        compiler_params=pltpu.CompilerParams(dimension_semantics=("parallel",)),
    )(articles, idx.astype(jnp.int32), mask.astype(jnp.float32), w1, b1, w2, b2)
    return out[:, :N, :]


# ---------------------------------------------------------------------------
# Parameter preparation: zero-pad to lane-aligned widths (exactly preserves math),
# bf16 matmul operands (f32 biases / accumulation).
# ---------------------------------------------------------------------------
def prepare_params(params):
    bw = jnp.zeros((BERT_HID, EMB_PAD), jnp.float32).at[:, :EMB_DIM].set(params["bert_w"])
    bb = jnp.zeros((1, EMB_PAD), jnp.float32).at[:, :EMB_DIM].set(params["bert_b"])
    w1 = jnp.zeros((EMB_PAD, CLS_HIDDEN), jnp.float32).at[:EMB_DIM, :].set(params["cls_w1"])
    w2 = jnp.zeros((CLS_HIDDEN, OUT_PAD), jnp.float32).at[:, :OUT_DIM].set(params["cls_w2"])
    b2 = jnp.zeros((1, OUT_PAD), jnp.float32).at[:, :OUT_DIM].set(params["cls_b2"])
    return {
        "bert_w": bw.astype(jnp.bfloat16),
        "bert_b": bb,
        "prelu_a": params["prelu_a"],
        "cls_w1": w1.astype(jnp.bfloat16), "cls_b1": params["cls_b1"],
        "cls_w2": w2.astype(jnp.bfloat16), "cls_b2": b2,
    }


# ---------------------------------------------------------------------------
# Full forward (GraphClassification.forward, baseline=True path), fully jitted
# ---------------------------------------------------------------------------
@jax.jit
def graph_classification_forward(prepped, source_nums, bert_hidden_last4, ninfo, rinfo):
    # TODO(synk): Bert_model itself is external (HF BERT); its concatenated last-4-layer
    # hidden states are taken as input `bert_hidden_last4` here.
    # TODO(synk): overlapping-window stitching branch (source_num >= BERT_MAX_LEN) and
    # gat_encode graph layers are not implemented -> baseline=True path only.
    del rinfo  # baseline=True: edge_reps is computed then discarded in the reference; skipped here.
    nodes_idx, nmask = ninfo

    # _encode_bert: projection + PReLU + stitch, written straight to (bs, L, 384) bf16
    articles = bert_proj_stitch(bert_hidden_last4, prepped["bert_w"], prepped["bert_b"],
                                prepped["prelu_a"], source_nums)

    # _encode_graph node gather + masked mean fused with _class_layer (one kernel)
    out = encode_and_classify(articles, nodes_idx, nmask,
                              prepped["cls_w1"], prepped["cls_b1"],
                              prepped["cls_w2"], prepped["cls_b2"])   # (bs, n_node, OUT_PAD)

    out = out[:, :, :OUT_DIM]
    if OUT_DIM == 1:
        out = out[:, :, 0]                                            # matches .squeeze(2)
    return out


if __name__ == "__main__":
    key = jax.random.PRNGKey(0)
    ks = jax.random.split(key, 11)

    # Deterministic synthetic parameters (shapes from __init__).
    params = {
        "bert_w": jax.random.normal(ks[0], (BERT_HID, EMB_DIM), jnp.float32) * 0.02,
        "bert_b": jax.random.normal(ks[1], (1, EMB_DIM), jnp.float32) * 0.02,
        "prelu_a": jnp.full((1,), 0.25, jnp.float32),          # nn.PReLU() default init
        "cls_w1": jax.random.normal(ks[2], (EMB_DIM, CLS_HIDDEN), jnp.float32) * 0.05,
        "cls_b1": jax.random.normal(ks[3], (1, CLS_HIDDEN), jnp.float32) * 0.05,
        "cls_w2": jax.random.normal(ks[4], (CLS_HIDDEN, OUT_DIM), jnp.float32) * 0.05,
        "cls_b2": jax.random.normal(ks[5], (1, OUT_DIM), jnp.float32) * 0.05,
    }
    prepped = prepare_params(params)

    # Small example inputs.
    word_nums = [[30, 30], [40, 24]]          # source_nums = [60, 64]  (< BERT_MAX_LEN)
    Lb = 64                                   # bert chunk length (one chunk per article)
    bert_hidden_last4 = jax.random.normal(ks[6], (2, Lb, BERT_HID), jnp.float32)

    source_num_list = [int(sum(wn)) for wn in word_nums]
    assert all(sn < BERT_MAX_LEN and sn <= Lb for sn in source_num_list)   # short-article branch
    assert len(source_num_list) == bert_hidden_last4.shape[0]             # one chunk per article
    source_nums = jnp.array(source_num_list, jnp.int32)

    n_node, n_word = 8, 4
    nodes_idx = jax.random.randint(ks[7], (2, n_node, n_word), 0, 60)
    nmask = (jax.random.uniform(ks[8], (2, n_node, n_word)) > 0.3).astype(jnp.float32)
    nmask = nmask.at[:, :, 0].set(1.0)        # each node mentions at least one token

    nr, nw = 6, 3
    rel_idx = jax.random.randint(ks[9], (2, nr, nw), 0, 60)
    rmask = (jax.random.uniform(ks[10], (2, nr, nw)) > 0.3).astype(jnp.float32)
    rmask = rmask.at[:, :, 0].set(1.0)

    out = graph_classification_forward(prepped, source_nums, bert_hidden_last4,
                                       (nodes_idx, nmask), (rel_idx, rmask))
    jax.block_until_ready(out)
    assert out.shape == (2, n_node), out.shape
    assert bool(jnp.all(jnp.isfinite(out)))
    print("KERNEL_OK")
</pallas_src>

<mosaic_0001>
module attributes {stable_mosaic.version = 11 : i64} {
  func.func @_bert_proj_stitch_kernel(%arg0: i32, %arg1: i32, %arg2: memref<2xi32, #tpu.memory_space<smem>>, %arg3: memref<1xf32, #tpu.memory_space<smem>>, %arg4: memref<1x64x3072xf32, #tpu.memory_space<vmem>>, %arg5: memref<3072x384xbf16, #tpu.memory_space<vmem>>, %arg6: memref<1x384xf32, #tpu.memory_space<vmem>>, %arg7: memref<1x64x384xbf16, #tpu.memory_space<vmem>>) attributes {dimension_semantics = [#tpu.dimension_semantics<parallel>, #tpu.dimension_semantics<parallel>], iteration_bounds = array<i64: 2, 1>, scalar_prefetch = 0 : i64, scratch_operands = 0 : i64, tpu.core_type = #tpu.core_type<tc>, window_params = [{transform_indices = @transform_0, window_bounds = array<i64: 2>}, {transform_indices = @transform_1, window_bounds = array<i64: 1>}, {transform_indices = @transform_2, window_bounds = array<i64: 1, 64, 3072>}, {pipeline_mode = #tpu.pipeline_mode<synchronous>, transform_indices = @transform_3, window_bounds = array<i64: 3072, 384>}, {pipeline_mode = #tpu.pipeline_mode<synchronous>, transform_indices = @transform_4, window_bounds = array<i64: 1, 384>}, {transform_indices = @transform_5, window_bounds = array<i64: 1, 64, 384>}]} {
    %0 = arith.index_cast %arg0 : i32 to index
    %1 = memref.load %arg2[%0] : memref<2xi32, #tpu.memory_space<smem>>
    %c64_i32 = arith.constant 64 : i32
    %2 = arith.muli %arg1, %c64_i32 : i32
    %3 = arith.cmpi slt, %2, %1 : i32
    %4 = arith.extui %3 : i1 to i32
    %c0_i32 = arith.constant 0 : i32
    %5 = arith.cmpi ne, %4, %c0_i32 : i32
    scf.if %5 {
      %c0 = arith.constant 0 : index
      %c0_1 = arith.constant 0 : index
      %c0_2 = arith.constant 0 : index
      %9 = vector.load %arg4[%c0, %c0_1, %c0_2] : memref<1x64x3072xf32, #tpu.memory_space<vmem>>, vector<1x64x3072xf32>
      %10 = vector.shape_cast %9 : vector<1x64x3072xf32> to vector<64x3072xf32>
      %11 = arith.truncf %10 : vector<64x3072xf32> to vector<64x3072xbf16>
      %c0_3 = arith.constant 0 : index
      %c0_4 = arith.constant 0 : index
      %12 = vector.load %arg5[%c0_3, %c0_4] : memref<3072x384xbf16, #tpu.memory_space<vmem>>, vector<3072x384xbf16>
      %cst = arith.constant dense<0.000000e+00> : vector<64x384xf32>
      %13 = tpu.matmul %11, %12, %cst {dimension_numbers = #tpu.dot_dimension_numbers<[1], [0], [0], [1], [0, 0, 1, 1], [], []>} : vector<64x3072xbf16>, vector<3072x384xbf16>, vector<64x384xf32> -> vector<64x384xf32>
      %c0_5 = arith.constant 0 : index
      %c0_6 = arith.constant 0 : index
      %14 = vector.load %arg6[%c0_5, %c0_6] : memref<1x384xf32, #tpu.memory_space<vmem>>, vector<1x384xf32>
      %15 = vector.broadcast %14 : vector<1x384xf32> to vector<64x384xf32>
      %16 = arith.addf %13, %15 : vector<64x384xf32>
      %c0_7 = arith.constant 0 : index
      %17 = memref.load %arg3[%c0_7] : memref<1xf32, #tpu.memory_space<smem>>
      %cst_8 = arith.constant 0.000000e+00 : f32
      %18 = vector.broadcast %cst_8 : f32 to vector<64x384xf32>
      %19 = arith.maximumf %16, %18 : vector<64x384xf32>
      %cst_9 = arith.constant 0.000000e+00 : f32
      %20 = vector.broadcast %cst_9 : f32 to vector<64x384xf32>
      %21 = arith.minimumf %16, %20 : vector<64x384xf32>
      %22 = vector.broadcast %17 : f32 to vector<64x384xf32>
      %23 = arith.mulf %22, %21 : vector<64x384xf32>
      %24 = arith.addf %19, %23 : vector<64x384xf32>
      %25 = tpu.iota {dimensions = array<i32: 0>} : vector<64x384xi32>
      %26 = vector.broadcast %2 : i32 to vector<64x384xi32>
      %27 = arith.addi %26, %25 : vector<64x384xi32>
      %28 = vector.broadcast %1 : i32 to vector<64x384xi32>
      %29 = arith.cmpi slt, %27, %28 : vector<64x384xi32>
      %cst_10 = arith.constant 0.000000e+00 : f32
      %30 = vector.broadcast %cst_10 : f32 to vector<64x384xf32>
      %31 = arith.select %29, %24, %30 : vector<64x384xi1>, vector<64x384xf32>
      %32 = arith.truncf %31 : vector<64x384xf32> to vector<64x384xbf16>
      %c0_11 = arith.constant 0 : index
      %c0_12 = arith.constant 0 : index
      %c0_13 = arith.constant 0 : index
      %33 = vector.load %arg7[%c0_11, %c0_12, %c0_13] : memref<1x64x384xbf16, #tpu.memory_space<vmem>>, vector<1x64x384xbf16>
      %34 = vector.shape_cast %33 : vector<1x64x384xbf16> to vector<64x384xbf16>
      %35 = vector.shape_cast %32 : vector<64x384xbf16> to vector<1x64x384xbf16>
      tpu.vector_store %arg7[%c0_11, %c0_12, %c0_13], %35 {strides = array<i32>} : memref<1x64x384xbf16, #tpu.memory_space<vmem>>, vector<1x64x384xbf16>,
    } else {
    }
    %6 = arith.cmpi sge, %2, %1 : i32
    %7 = arith.extui %6 : i1 to i32
    %c0_i32_0 = arith.constant 0 : i32
    %8 = arith.cmpi ne, %7, %c0_i32_0 : i32
    scf.if %8 {
      %cst = arith.constant 0.000000e+00 : bf16
      %9 = vector.broadcast %cst : bf16 to vector<1x64x384xbf16>
      %c0 = arith.constant 0 : index
      %c0_1 = arith.constant 0 : index
      %c0_2 = arith.constant 0 : index
      %10 = vector.load %arg7[%c0, %c0_1, %c0_2] : memref<1x64x384xbf16, #tpu.memory_space<vmem>>, vector<1x64x384xbf16>
      tpu.vector_store %arg7[%c0, %c0_1, %c0_2], %9 {strides = array<i32>} : memref<1x64x384xbf16, #tpu.memory_space<vmem>>, vector<1x64x384xbf16>,
    } else {
    }
    return
  }
  func.func @transform_0(%arg0: i32, %arg1: i32) -> i32 {
    %c0_i32 = arith.constant 0 : i32
    %c0_i32_0 = arith.constant 0 : i32
    return %c0_i32 : i32
  }
  func.func @transform_1(%arg0: i32, %arg1: i32) -> i32 {
    %c0_i32 = arith.constant 0 : i32
    %c0_i32_0 = arith.constant 0 : i32
    return %c0_i32 : i32
  }
  func.func @transform_2(%arg0: i32, %arg1: i32) -> (i32, i32, i32) {
    %c0_i32 = arith.constant 0 : i32
    %c0_i32_0 = arith.constant 0 : i32
    return %arg0, %arg1, %c0_i32 : i32, i32, i32
  }
  func.func @transform_3(%arg0: i32, %arg1: i32) -> (i32, i32) {
    %c0_i32 = arith.constant 0 : i32
    %c0_i32_0 = arith.constant 0 : i32
    %c0_i32_1 = arith.constant 0 : i32
    return %c0_i32, %c0_i32_0 : i32, i32
  }
  func.func @transform_4(%arg0: i32, %arg1: i32) -> (i32, i32) {
    %c0_i32 = arith.constant 0 : i32
    %c0_i32_0 = arith.constant 0 : i32
    %c0_i32_1 = arith.constant 0 : i32
    return %c0_i32, %c0_i32_0 : i32, i32
  }
  func.func @transform_5(%arg0: i32, %arg1: i32) -> (i32, i32, i32) {
    %c0_i32 = arith.constant 0 : i32
    %c0_i32_0 = arith.constant 0 : i32
    return %arg0, %arg1, %c0_i32 : i32, i32, i32
  }
}

module attributes {stable_mosaic.version = 11 : i64} {
  func.func @_encode_class_kernel(%arg0: i32, %arg1: memref<1x64x384xbf16, #tpu.memory_space<vmem>>, %arg2: memref<1x8x4xi32, #tpu.memory_space<vmem>>, %arg3: memref<1x8x4xf32, #tpu.memory_space<vmem>>, %arg4: memref<384x256xbf16, #tpu.memory_space<vmem>>, %arg5: memref<1x256xf32, #tpu.memory_space<vmem>>, %arg6: memref<256x128xbf16, #tpu.memory_space<vmem>>, %arg7: memref<1x128xf32, #tpu.memory_space<vmem>>, %arg8: memref<1x8x128xf32, #tpu.memory_space<vmem>>) attributes {dimension_semantics = [#tpu.dimension_semantics<parallel>], iteration_bounds = array<i64: 2>, scalar_prefetch = 0 : i64, scratch_operands = 0 : i64, tpu.core_type = #tpu.core_type<tc>, window_params = [{transform_indices = @transform_0, window_bounds = array<i64: 1, 64, 384>}, {transform_indices = @transform_1, window_bounds = array<i64: 1, 8, 4>}, {transform_indices = @transform_2, window_bounds = array<i64: 1, 8, 4>}, {pipeline_mode = #tpu.pipeline_mode<synchronous>, transform_indices = @transform_3, window_bounds = array<i64: 384, 256>}, {pipeline_mode = #tpu.pipeline_mode<synchronous>, transform_indices = @transform_4, window_bounds = array<i64: 1, 256>}, {pipeline_mode = #tpu.pipeline_mode<synchronous>, transform_indices = @transform_5, window_bounds = array<i64: 256, 128>}, {pipeline_mode = #tpu.pipeline_mode<synchronous>, transform_indices = @transform_6, window_bounds = array<i64: 1, 128>}, {transform_indices = @transform_7, window_bounds = array<i64: 1, 8, 128>}]} {
    %c0 = arith.constant 0 : index
    %c0_0 = arith.constant 0 : index
    %c0_1 = arith.constant 0 : index
    %0 = vector.load %arg1[%c0, %c0_0, %c0_1] : memref<1x64x384xbf16, #tpu.memory_space<vmem>>, vector<1x64x384xbf16>
    %1 = vector.shape_cast %0 : vector<1x64x384xbf16> to vector<64x384xbf16>
    %c0_2 = arith.constant 0 : index
    %c0_3 = arith.constant 0 : index
    %c0_4 = arith.constant 0 : index
    %2 = vector.load %arg2[%c0_2, %c0_3, %c0_4] : memref<1x8x4xi32, #tpu.memory_space<vmem>>, vector<1x8x4xi32>
    %3 = vector.shape_cast %2 : vector<1x8x4xi32> to vector<8x4xi32>
    %c0_5 = arith.constant 0 : index
    %c0_6 = arith.constant 0 : index
    %c0_7 = arith.constant 0 : index
    %4 = vector.load %arg3[%c0_5, %c0_6, %c0_7] : memref<1x8x4xf32, #tpu.memory_space<vmem>>, vector<1x8x4xf32>
    %5 = vector.shape_cast %4 : vector<1x8x4xf32> to vector<8x4xf32>
    %6 = tpu.iota {dimensions = array<i32: 1>} : vector<8x64xi32>
    %cst = arith.constant 0.000000e+00 : f32
    %7 = vector.broadcast %cst : f32 to vector<8x64xf32>
    %8 = vector.extract_strided_slice %3 {offsets = [0, 0], sizes = [8, 1], strides = [1, 1]} : vector<8x4xi32> to vector<8x1xi32>
    %9 = vector.broadcast %8 : vector<8x1xi32> to vector<8x64xi32>
    %10 = arith.cmpi eq, %9, %6 : vector<8x64xi32>
    %11 = vector.extract_strided_slice %5 {offsets = [0, 0], sizes = [8, 1], strides = [1, 1]} : vector<8x4xf32> to vector<8x1xf32>
    %cst_8 = arith.constant 0.000000e+00 : f32
    %12 = vector.shape_cast %11 : vector<8x1xf32> to vector<8x1xf32>
    %13 = vector.broadcast %12 : vector<8x1xf32> to vector<8x64xf32>
    %14 = vector.broadcast %cst_8 : f32 to vector<8x64xf32>
    %15 = arith.select %10, %13, %14 : vector<8x64xi1>, vector<8x64xf32>
    %16 = arith.addf %7, %15 : vector<8x64xf32>
    %17 = vector.extract_strided_slice %3 {offsets = [0, 1], sizes = [8, 1], strides = [1, 1]} : vector<8x4xi32> to vector<8x1xi32>
    %18 = vector.broadcast %17 : vector<8x1xi32> to vector<8x64xi32>
    %19 = arith.cmpi eq, %18, %6 : vector<8x64xi32>
    %20 = vector.extract_strided_slice %5 {offsets = [0, 1], sizes = [8, 1], strides = [1, 1]} : vector<8x4xf32> to vector<8x1xf32>
    %cst_9 = arith.constant 0.000000e+00 : f32
    %21 = vector.shape_cast %20 : vector<8x1xf32> to vector<8x1xf32>
    %22 = vector.broadcast %21 : vector<8x1xf32> to vector<8x64xf32>
    %23 = vector.broadcast %cst_9 : f32 to vector<8x64xf32>
    %24 = arith.select %19, %22, %23 : vector<8x64xi1>, vector<8x64xf32>
    %25 = arith.addf %16, %24 : vector<8x64xf32>
    %26 = vector.extract_strided_slice %3 {offsets = [0, 2], sizes = [8, 1], strides = [1, 1]} : vector<8x4xi32> to vector<8x1xi32>
    %27 = vector.broadcast %26 : vector<8x1xi32> to vector<8x64xi32>
    %28 = arith.cmpi eq, %27, %6 : vector<8x64xi32>
    %29 = vector.extract_strided_slice %5 {offsets = [0, 2], sizes = [8, 1], strides = [1, 1]} : vector<8x4xf32> to vector<8x1xf32>
    %cst_10 = arith.constant 0.000000e+00 : f32
    %30 = vector.shape_cast %29 : vector<8x1xf32> to vector<8x1xf32>
    %31 = vector.broadcast %30 : vector<8x1xf32> to vector<8x64xf32>
    %32 = vector.broadcast %cst_10 : f32 to vector<8x64xf32>
    %33 = arith.select %28, %31, %32 : vector<8x64xi1>, vector<8x64xf32>
    %34 = arith.addf %25, %33 : vector<8x64xf32>
    %35 = vector.extract_strided_slice %3 {offsets = [0, 3], sizes = [8, 1], strides = [1, 1]} : vector<8x4xi32> to vector<8x1xi32>
    %36 = vector.broadcast %35 : vector<8x1xi32> to vector<8x64xi32>
    %37 = arith.cmpi eq, %36, %6 : vector<8x64xi32>
    %38 = vector.extract_strided_slice %5 {offsets = [0, 3], sizes = [8, 1], strides = [1, 1]} : vector<8x4xf32> to vector<8x1xf32>
    %cst_11 = arith.constant 0.000000e+00 : f32
    %39 = vector.shape_cast %38 : vector<8x1xf32> to vector<8x1xf32>
    %40 = vector.broadcast %39 : vector<8x1xf32> to vector<8x64xf32>
    %41 = vector.broadcast %cst_11 : f32 to vector<8x64xf32>
    %42 = arith.select %37, %40, %41 : vector<8x64xi1>, vector<8x64xf32>
    %43 = arith.addf %34, %42 : vector<8x64xf32>
    %44 = arith.truncf %43 : vector<8x64xf32> to vector<8x64xbf16>
    %cst_12 = arith.constant dense<0.000000e+00> : vector<8x384xf32>
    %45 = tpu.matmul %44, %1, %cst_12 {dimension_numbers = #tpu.dot_dimension_numbers<[1], [0], [0], [1], [0, 0, 1, 1], [], []>} : vector<8x64xbf16>, vector<64x384xbf16>, vector<8x384xf32> -> vector<8x384xf32>
    %cst_13 = arith.constant dense<0.000000e+00> : vector<8xf32>
    %46 = vector.multi_reduction <add>, %5, %cst_13 [1] : vector<8x4xf32> to vector<8xf32>
    %47 = vector.shape_cast %46 : vector<8xf32> to vector<8x1xf32>
    %cst_14 = arith.constant 9.99999993E-9 : f32
    %48 = vector.broadcast %cst_14 : f32 to vector<8x1xf32>
    %49 = arith.addf %47, %48 : vector<8x1xf32>
    %50 = vector.broadcast %49 : vector<8x1xf32> to vector<8x384xf32>
    %51 = arith.divf %45, %50 : vector<8x384xf32>
    %52 = arith.truncf %51 : vector<8x384xf32> to vector<8x384xbf16>
    %c0_15 = arith.constant 0 : index
    %c0_16 = arith.constant 0 : index
    %53 = vector.load %arg4[%c0_15, %c0_16] : memref<384x256xbf16, #tpu.memory_space<vmem>>, vector<384x256xbf16>
    %cst_17 = arith.constant dense<0.000000e+00> : vector<8x256xf32>
    %54 = tpu.matmul %52, %53, %cst_17 {dimension_numbers = #tpu.dot_dimension_numbers<[1], [0], [0], [1], [0, 0, 1, 1], [], []>} : vector<8x384xbf16>, vector<384x256xbf16>, vector<8x256xf32> -> vector<8x256xf32>
    %c0_18 = arith.constant 0 : index
    %c0_19 = arith.constant 0 : index
    %55 = vector.load %arg5[%c0_18, %c0_19] : memref<1x256xf32, #tpu.memory_space<vmem>>, vector<1x256xf32>
    %56 = vector.broadcast %55 : vector<1x256xf32> to vector<8x256xf32>
    %57 = arith.addf %54, %56 : vector<8x256xf32>
    %cst_20 = arith.constant 0.000000e+00 : f32
    %58 = vector.broadcast %cst_20 : f32 to vector<8x256xf32>
    %59 = arith.maximumf %57, %58 : vector<8x256xf32>
    %60 = arith.truncf %59 : vector<8x256xf32> to vector<8x256xbf16>
    %c0_21 = arith.constant 0 : index
    %c0_22 = arith.constant 0 : index
    %61 = vector.load %arg6[%c0_21, %c0_22] : memref<256x128xbf16, #tpu.memory_space<vmem>>, vector<256x128xbf16>
    %cst_23 = arith.constant dense<0.000000e+00> : vector<8x128xf32>
    %62 = tpu.matmul %60, %61, %cst_23 {dimension_numbers = #tpu.dot_dimension_numbers<[1], [0], [0], [1], [0, 0, 1, 1], [], []>} : vector<8x256xbf16>, vector<256x128xbf16>, vector<8x128xf32> -> vector<8x128xf32>
    %c0_24 = arith.constant 0 : index
    %c0_25 = arith.constant 0 : index
    %63 = vector.load %arg7[%c0_24, %c0_25] : memref<1x128xf32, #tpu.memory_space<vmem>>, vector<1x128xf32>
    %64 = vector.broadcast %63 : vector<1x128xf32> to vector<8x128xf32>
    %65 = arith.addf %62, %64 : vector<8x128xf32>
    %c0_26 = arith.constant 0 : index
    %c0_27 = arith.constant 0 : index
    %c0_28 = arith.constant 0 : index
    %66 = vector.load %arg8[%c0_26, %c0_27, %c0_28] : memref<1x8x128xf32, #tpu.memory_space<vmem>>, vector<1x8x128xf32>
    %67 = vector.shape_cast %66 : vector<1x8x128xf32> to vector<8x128xf32>
    %68 = vector.shape_cast %65 : vector<8x128xf32> to vector<1x8x128xf32>
    tpu.vector_store %arg8[%c0_26, %c0_27, %c0_28], %68 {strides = array<i32>} : memref<1x8x128xf32, #tpu.memory_space<vmem>>, vector<1x8x128xf32>,
    return
  }
  func.func @transform_0(%arg0: i32) -> (i32, i32, i32) {
    %c0_i32 = arith.constant 0 : i32
    %c0_i32_0 = arith.constant 0 : i32
    %c0_i32_1 = arith.constant 0 : i32
    return %arg0, %c0_i32, %c0_i32_0 : i32, i32, i32
  }
  func.func @transform_1(%arg0: i32) -> (i32, i32, i32) {
    %c0_i32 = arith.constant 0 : i32
    %c0_i32_0 = arith.constant 0 : i32
    %c0_i32_1 = arith.constant 0 : i32
    return %arg0, %c0_i32, %c0_i32_0 : i32, i32, i32
  }
  func.func @transform_2(%arg0: i32) -> (i32, i32, i32) {
    %c0_i32 = arith.constant 0 : i32
    %c0_i32_0 = arith.constant 0 : i32
    %c0_i32_1 = arith.constant 0 : i32
    return %arg0, %c0_i32, %c0_i32_0 : i32, i32, i32
  }
  func.func @transform_3(%arg0: i32) -> (i32, i32) {
    %c0_i32 = arith.constant 0 : i32
    %c0_i32_0 = arith.constant 0 : i32
    %c0_i32_1 = arith.constant 0 : i32
    return %c0_i32, %c0_i32_0 : i32, i32
  }
  func.func @transform_4(%arg0: i32) -> (i32, i32) {
    %c0_i32 = arith.constant 0 : i32
    %c0_i32_0 = arith.constant 0 : i32
    %c0_i32_1 = arith.constant 0 : i32
    return %c0_i32, %c0_i32_0 : i32, i32
  }
  func.func @transform_5(%arg0: i32) -> (i32, i32) {
    %c0_i32 = arith.constant 0 : i32
    %c0_i32_0 = arith.constant 0 : i32
    %c0_i32_1 = arith.constant 0 : i32
    return %c0_i32, %c0_i32_0 : i32, i32
  }
  func.func @transform_6(%arg0: i32) -> (i32, i32) {
    %c0_i32 = arith.constant 0 : i32
    %c0_i32_0 = arith.constant 0 : i32
    %c0_i32_1 = arith.constant 0 : i32
    return %c0_i32, %c0_i32_0 : i32, i32
  }
  func.func @transform_7(%arg0: i32) -> (i32, i32, i32) {
    %c0_i32 = arith.constant 0 : i32
    %c0_i32_0 = arith.constant 0 : i32
    %c0_i32_1 = arith.constant 0 : i32
    return %arg0, %c0_i32, %c0_i32_0 : i32, i32, i32
  }
}

</mosaic_0001>

<bundles_post_ra>
// kernel: graph_classification_forward.3
= control target key start
LH: loop header
LB: loop body
LE: loop exit
PB: predicated region body
PF: predicated region fallthrough
CT: control target
= control target key end

     0   :  { %s1490_s24 = smov 0   ;;  %s1736_s0 = inlined_call_operand.vmem [shape: bf16[2,64,384], index: 0, kind: input, shape index: {}]   ;;  %s1737_s1 = inlined_call_operand.vmem [shape: s32[2,8,4], index: 1, kind: input, shape index: {}]   ;;  %s1738_s2 = inlined_call_operand.vmem [shape: f32[2,8,4], index: 2, kind: input, shape index: {}]   ;;  %s1739_s3 = inlined_call_operand.vmem [shape: bf16[384,256], index: 3, kind: input, shape index: {}]   ;;  %s1740_s4 = inlined_call_operand.vmem [shape: f32[1,256], index: 4, kind: input, shape index: {}]   ;;  %s1741_s5 = inlined_call_operand.vmem [shape: bf16[256,128], index: 5, kind: input, shape index: {}]   ;;  %s1742_s6 = inlined_call_operand.vmem [shape: f32[1,128], index: 6, kind: input, shape index: {}]   ;;  %s1743_s7 = inlined_call_operand.vmem [shape: f32[2,8,128], index: 7, kind: output, shape index: {}]  }
   0x1 LB: > { %s1174_s25 = sadd.s32 4294967295, %s1442_s24   ;;  %p1178_p0 = scmp.ge.s32.totalorder %s1442_s24, 1  ;;  %s1442_s24 = sphi %s1490_s24, %s17_s24  }
   0x2   : > { %p255_p1 = scmp.lt.s32.totalorder %s1442_s24, 3 }
   0x4   : > { %p256_p2 = pnand %p1178_p0, %p255_p1 }
   0x5   : > { %p294_p3 = scmp.lt.s32.totalorder (!%p256_p2), %s1174_s25, 1  ;;  %v1444_v0 = vmov (!%p256_p2), 0   ;;  %v1445_v3 = vmov (!%p256_p2), 1   ;;  %v1446_v7 = vmov (!%p256_p2), 0.0   ;;  %v1447_v8 = vmov (!%p256_p2), 2  }
   0x6   : > { %259 = sbr.rel (%p256_p2) target bundleno = 827 (0x33b), region = 48  ;;  %1324 = vset.pattern.permute.xlu1 (!%p256_p2), %v1444_v0  ;;  %1322 = vset.pattern.permute.xlu0 (!%p256_p2), %v1444_v0  ;;  %v1448_v12 = vmov (!%p256_p2), 3   ;;  %vm1449_vm0 = vmmov (!%p256_p2), 0   ;;  %v1348_v19 = vld [vmem:[%s1739_s3 + $0x4] ss:$8 sps:$4 sm:$0xff] (!%p256_p2)   ;;  %vm523_vm1 = vcmask (!%p256_p2), 31744   ;;  %v330_v24 = vlaneseq (!%p256_p2) }
   0x7   : > { %474 = vmatprep.mubr.bf16.mxu0 (!%p256_p2), %v1444_v0  ;;  %1291 = vmatprep.subr.bf16.mxu1 (!%p256_p2), %v1446_v7  ;;  %v1372_v21 = vld [vmem:[%s1739_s3 + $0x104] ss:$8 sps:$4 sm:$0xff] (!%p256_p2)   ;;  %vm438_vm6 = vcmask (!%p256_p2), 523264   ;;  %v1346_v39 = vld [vmem:[%s1739_s3] ss:$8 sps:$4 sm:$0xff] (!%p256_p2)  }
   0x8   : > { %1299 = vmatprep.mubr.msk.bf16.mxu1 (!%p256_p2), %vm1449_vm0, %v1446_v7  ;;  %v331_v27 = vand.u32 (!%p256_p2), 127, %v330_v24  ;;  %v1370_v40 = vld [vmem:[%s1739_s3 + $0x100] ss:$8 sps:$4 sm:$0xff] (!%p256_p2)   ;;  %v1351_v42 = vld [vmem:[%s1739_s3 + $0x14] ss:$8 sps:$4 sm:$0xff] (!%p256_p2)  }
   0x9   : > { %v1378_v43 = vld [vmem:[%s1739_s3 + $0x114] ss:$8 sps:$4 sm:$0xff] (!%p256_p2)   ;;  %v1349_v44 = vld [vmem:[%s1739_s3 + $0x10] ss:$8 sps:$4 sm:$0xff] (!%p256_p2)   ;;  %v1354_v46 = vld [vmem:[%s1739_s3 + $0x24] ss:$8 sps:$4 sm:$0xff] (!%p256_p2)  }
   0xa   : > { %v1376_v45 = vld [vmem:[%s1739_s3 + $0x110] ss:$8 sps:$4 sm:$0xff] (!%p256_p2)   ;;  %v1384_v47 = vld [vmem:[%s1739_s3 + $0x124] ss:$8 sps:$4 sm:$0xff] (!%p256_p2)   ;;  %v1352_v48 = vld [vmem:[%s1739_s3 + $0x20] ss:$8 sps:$4 sm:$0xff] (!%p256_p2)  }
   0xb   : > { %v1382_v49 = vld [vmem:[%s1739_s3 + $0x120] ss:$8 sps:$4 sm:$0xff] (!%p256_p2)   ;;  %v1357_v50 = vld [vmem:[%s1739_s3 + $0x34] ss:$8 sps:$4 sm:$0xff] (!%p256_p2)   ;;  %v1355_v52 = vld [vmem:[%s1739_s3 + $0x30] ss:$8 sps:$4 sm:$0xff] (!%p256_p2)  }
   0xc   : > { %v1390_v51 = vld [vmem:[%s1739_s3 + $0x134] ss:$8 sps:$4 sm:$0xff] (!%p256_p2)   ;;  %v1388_v53 = vld [vmem:[%s1739_s3 + $0x130] ss:$8 sps:$4 sm:$0xff] (!%p256_p2)   ;;  %v1360_v54 = vld [vmem:[%s1739_s3 + $0x44] ss:$8 sps:$4 sm:$0xff] (!%p256_p2)  }
   0xd   : > { %s1745_s25 = smov (!%p294_p3, %s1174_s25), 1  ;;  %v1396_v55 = vld [vmem:[%s1739_s3 + $0x144] ss:$8 sps:$4 sm:$0xff]   ;;  %v1358_v56 = vld [vmem:[%s1739_s3 + $0x40] ss:$8 sps:$4 sm:$0xff]  }
   0xe   : > { %s1501_s26 = sshll.u32 %s1745_s25, 3  ;;  %s1307_s27 = smul.u32 96, %s1745_s25  ;;  %v1394_v57 = vld [vmem:[%s1739_s3 + $0x140] ss:$8 sps:$4 sm:$0xff]   ;;  %v1363_v58 = vld [vmem:[%s1739_s3 + $0x54] ss:$8 sps:$4 sm:$0xff]  }
   0xf   : > { %s306_s30 = scalar_lea.vmem %s1738_s2, %s1501_s26  ;;  %s302_s10 = scalar_lea.vmem %s1737_s1, %s1501_s26  ;;  %v1402_v59 = vld [vmem:[%s1739_s3 + $0x154] ss:$8 sps:$4 sm:$0xff]   ;;  %v1361_v60 = vld [vmem:[%s1739_s3 + $0x50] ss:$8 sps:$4 sm:$0xff]   ;;  %v1366_v62 = vld [vmem:[%s1739_s3 + $0x64] ss:$8 sps:$4 sm:$0xff]  }
  0x10   : > { %v329_v1 = vld [vmem:[%s306_s30] sm:$0xff]  ;;  %s1514_s13 = scalar_lea.vmem %s1736_s0, %s1307_s27  ;;  %v1400_v61 = vld [vmem:[%s1739_s3 + $0x150] ss:$8 sps:$4 sm:$0xff]   ;;  %s310_s22 = scalar_lea.vmem %s1743_s7, %s1501_s26 }
  0x11   : > { %v328_v2 = vld [vmem:[%s302_s10] sm:$0xff]  ;;  %338 = vperm.xlu1 %1324, %v329_v1   ;;  %v1333_v6 = vld [vmem:[%s1514_s13 + $0x8] ss:$12 sps:$4 sm:$0xff]   ;;  %v1340_v14 = vld [vmem:[%s1514_s13 + $0x30] ss:$12 sps:$4 sm:$0xff]   ;;  %v524_v20 = vsel %vm523_vm1, %v329_v1, 0.0 }
  0x12   : > { %333 = vperm.xlu0 %1322, %v328_v2   ;;  %v1330_v4 = vld [vmem:[%s1514_s13 + $0x4] ss:$12 sps:$4 sm:$0xff]   ;;  %v1332_v5 = vld [vmem:[%s1514_s13] ss:$12 sps:$4 sm:$0xff]   ;;  %v1334_v9 = vld [vmem:[%s1514_s13 + $0x1c] ss:$12 sps:$4 sm:$0xff]   ;;  %1292 = vmatpush3.bf16.msra.mxu1 %v1333_v6 }
  0x13   : > { %442 = vmatprep.subr.bf16.mxu0 %v1330_v4  ;;  %v1336_v10 = vld [vmem:[%s1514_s13 + $0x18] ss:$12 sps:$4 sm:$0xff]   ;;  %v1337_v11 = vld [vmem:[%s1514_s13 + $0x20] ss:$12 sps:$4 sm:$0xff]   ;;  %1293 = vmatprep.subr.bf16.mxu1 %v1446_v7  ;;  %v1344_v17 = vld [vmem:[%s1514_s13 + $0x48] ss:$12 sps:$4 sm:$0xff]  }
  0x14   : > { %443 = vmatpush1.bf16.msra.mxu0 %v1332_v5  ;;  %v1338_v13 = vld [vmem:[%s1514_s13 + $0x34] ss:$12 sps:$4 sm:$0xff]   ;;  %v1341_v15 = vld [vmem:[%s1514_s13 + $0x38] ss:$12 sps:$4 sm:$0xff]   ;;  %v1345_v18 = vld [vmem:[%s1514_s13 + $0x50] ss:$12 sps:$4 sm:$0xff]  }
  0x15   : > { %1325 = vset.pattern.permute.xlu1 %v1445_v3  ;;  %444 = vmatprep.subr.bf16.mxu0 %v1334_v9  ;;  %v1342_v16 = vld [vmem:[%s1514_s13 + $0x4c] ss:$12 sps:$4 sm:$0xff]   ;;  %v1373_v5 = vld [vmem:[%s1739_s3 + $0x80] ss:$8 sps:$4 sm:$0xff]   ;;  %v1381_v6 = vld [vmem:[%s1739_s3 + $0x94] ss:$8 sps:$4 sm:$0xff]  }
  0x16   : > { %1323 = vset.pattern.permute.xlu0 %v1445_v3  ;;  %348 = vperm.xlu1 %1325, %v329_v1   ;;  %v1408_v63 = vld [vmem:[%s1739_s3 + $0x164] ss:$8 sps:$4 sm:$0xff]   ;;  %v1367_v3 = vld [vmem:[%s1739_s3 + $0x70] ss:$8 sps:$4 sm:$0xff]   ;;  %v1385_v9 = vld [vmem:[%s1739_s3 + $0xa0] ss:$8 sps:$4 sm:$0xff]  }
  0x17   : > { %344 = vperm.xlu0 %1323, %v328_v2   ;;  %1294 = vmatpush3.bf16.msra.mxu1 %v1337_v11  ;;  %v1375_v4 = vld [vmem:[%s1739_s3 + $0x84] ss:$8 sps:$4 sm:$0xff]   ;;  %v1391_v11 = vld [vmem:[%s1739_s3 + $0xb0] ss:$8 sps:$4 sm:$0xff]  }
  0x18   : > { %445 = vmatpush1.bf16.msra.mxu0 %v1336_v10  ;;  %1295 = vmatprep.subr.bf16.mxu1 %v1446_v7  ;;  %v1393_v10 = vld [vmem:[%s1739_s3 + $0xb4] ss:$8 sps:$4 sm:$0xff]  }
  0x19   : > { %446 = vmatprep.subr.bf16.mxu0 %v1338_v13  ;;  %v1397_v13 = vld [vmem:[%s1739_s3 + $0xc0] ss:$8 sps:$4 sm:$0xff]  }
  0x1a   : > { %1326 = vset.pattern.permute.xlu1 %v1447_v8 }
  0x1b   : > { %1327 = vset.pattern.permute.xlu0 %v1447_v8  ;;  %354 = vperm.xlu1 %1326, %v328_v2   ;;  %v1387_v8 = vld [vmem:[%s1739_s3 + $0xa4] ss:$8 sps:$4 sm:$0xff]  }
  0x1c   : > { %358 = vperm.xlu0 %1327, %v329_v1   ;;  %447 = vmatpush1.bf16.msra.mxu0 %v1340_v14  ;;  %v1405_v14 = vld [vmem:[%s1739_s3 + $0xd4] ss:$8 sps:$4 sm:$0xff]  }
  0x1d   : > { %1296 = vmatpush3.bf16.msra.mxu1 %v1341_v15  ;;  %448 = vmatprep.subr.bf16.mxu0 %v1342_v16  ;;  %v1403_v15 = vld [vmem:[%s1739_s3 + $0xd0] ss:$8 sps:$4 sm:$0xff]   ;;  %v1411_v16 = vld [vmem:[%s1739_s3 + $0xe4] ss:$8 sps:$4 sm:$0xff]  }
  0x1e   : > { %1297 = vmatprep.subr.bf16.mxu1 %v1446_v7  ;;  %v1379_v7 = vld [vmem:[%s1739_s3 + $0x90] ss:$8 sps:$4 sm:$0xff]  }
  0x1f   : > { %1328 = vset.pattern.permute.xlu1 %v1448_v12 }
  0x20   : > { %1329 = vset.pattern.permute.xlu0 %v1448_v12  ;;  %364 = vperm.xlu1 %1328, %v328_v2   ;;  %v1369_v2 = vld [vmem:[%s1739_s3 + $0x74] ss:$8 sps:$4 sm:$0xff]   ;;  %v1399_v12 = vld [vmem:[%s1739_s3 + $0xc4] ss:$8 sps:$4 sm:$0xff]  }
  0x21   : > { %449 = vmatpush1.bf16.msra.mxu0 %v1344_v17  ;;  %1298 = vmatpush3.bf16.msra.mxu1 %v1345_v18  ;;  %v1409_v17 = vld [vmem:[%s1739_s3 + $0xe0] ss:$8 sps:$4 sm:$0xff]   ;;  %v1414_v18 = vld [vmem:[%s1739_s3 + $0x174] ss:$8 sps:$4 sm:$0xff]  }
  0x22   : > { %835 = vmatprep.subr.bf16.mxu0 %v1348_v19  ;;  %876 = vmatprep.subr.bf16.mxu1 %v1372_v21  ;;  %v1412_v19 = vld [vmem:[%s1739_s3 + $0x170] ss:$8 sps:$4 sm:$0xff]  }
  0x23   : > { %v1415_v21 = vld [vmem:[%s1739_s3 + $0xf0] ss:$8 sps:$4 sm:$0xff]  }
  0x24   : > { %368 = vperm.xlu1 %1328, %v329_v1   ;;  %v1406_v1 = vld [vmem:[%s1739_s3 + $0x160] ss:$8 sps:$4 sm:$0xff]  }
  0x3b   : > { %525 = vadd.xlane.f32.xlu0 %v524_v20  ;;  %v1417_v20 = vld [vmem:[%s1739_s3 + $0xf4] ss:$8 sps:$4 sm:$0xff]  }
  0x90   : > { %v339_v22 = vpop.permute.xlu1 %338 }
  0x91   : > { %v334_v23 = vpop.permute.xlu0 %333 }
  0x92   : > { %vm335_vm3 = vcmp.eq.s32.totalorder %v334_v23, %v331_v27 }
  0x93   : > { %v341_v32 = vsel %vm335_vm3, %v339_v22, 0.0  ;;  %v1418_v22 = vld [vmem:[%s1741_s5 + $0x40] sm:$0xff]  }
  0x95   : > { %v349_v25 = vpop.permute.xlu1 %348 }
  0x96   : > { %v345_v26 = vpop.permute.xlu0 %344 }
  0x97   : > { %vm346_vm2 = vcmp.eq.s32.totalorder %v345_v26, %v331_v27 }
  0x98   : > { %v351_v30 = vsel %vm346_vm2, %v349_v25, 0.0 }
  0x99   : > { %v352_v34 = vadd.f32 %v351_v30, %v341_v32 }
  0x9a   : > { %v355_v28 = vpop.permute.xlu1 %354 }
  0x9b   : > { %vm356_vm4 = vcmp.eq.s32.totalorder %v355_v28, %v331_v27  ;;  %v359_v29 = vpop.permute.xlu0 %358 }
  0x9c   : > { %v361_v33 = vsel %vm356_vm4, %v359_v29, 0.0 }
  0x9d   : > { %v362_v35 = vadd.f32 %v361_v33, %v352_v34 }
  0x9f   : > { %v365_v31 = vpop.permute.xlu1 %364 }
  0xa0   : > { %vm366_vm5 = vcmp.eq.s32.totalorder %v365_v31, %v331_v27 }
  0xa3   : > { %v369_v36 = vpop.permute.xlu1 %368 }
  0xa4   : > { %v371_v37 = vsel %vm366_vm5, %v369_v36, 0.0  ;;  %v1419_v36 = vld [vmem:[%s1741_s5] sm:$0xff]  }
  0xa5   : > { %v372_v38 = vadd.f32 %v371_v37, %v362_v35 }
  0xa7   : > { %v373_v41 = vpack.c.bf16 %v372_v38, %v372_v38 }
  0xa9   : > { %1195 = vmatmul.mubr.msk.bf16.vlgmr.msra.gmra.mrb[0].mxu0 %vm438_vm6, %v373_v41  ;;  %1300 = vmatmul.mubr.msk.bf16.vlgmr.msra.gmra.mrb[0].mxu1 %vm438_vm6, %v373_v41 }
  0xaa   : > { %836 = vmatpush1.bf16.msra.mxu0 %v1346_v39  ;;  %877 = vmatpush1.bf16.msra.mxu1 %v1370_v40  ;;  %v1420_v40 = vld [vmem:[%s1741_s5 + $0x48] sm:$0xff]  }
  0xab   : > { %837 = vmatprep.subr.bf16.mxu0 %v1351_v42  ;;  %878 = vmatprep.subr.bf16.mxu1 %v1378_v43  ;;  %v1421_v43 = vld [vmem:[%s1741_s5 + $0x8] sm:$0xff]  }
  0xac   : > { %908 = vmatprep.mubr.bf16.mxu1 %v1444_v0  ;;  %v1364_v0 = vld [vmem:[%s1739_s3 + $0x60] ss:$8 sps:$4 sm:$0xff]  }
  0xae   : > { %838 = vmatpush1.bf16.msra.mxu0 %v1349_v44  ;;  %879 = vmatpush1.bf16.msra.mxu1 %v1376_v45  ;;  %v1422_v44 = vld [vmem:[%s1741_s5 + $0x50] sm:$0xff]  }
  0xaf   : > { %839 = vmatprep.subr.bf16.mxu0 %v1354_v46  ;;  %880 = vmatprep.subr.bf16.mxu1 %v1384_v47  ;;  %v1423_v45 = vld [vmem:[%s1741_s5 + $0x10] sm:$0xff]   ;;  %v1424_v46 = vld [vmem:[%s1741_s5 + $0x58] sm:$0xff]  }
  0xb0   : > { %v1425_v47 = vld [vmem:[%s1741_s5 + $0x18] sm:$0xff]  }
  0xb2   : > { %840 = vmatpush1.bf16.msra.mxu0 %v1352_v48  ;;  %881 = vmatpush1.bf16.msra.mxu1 %v1382_v49  ;;  %v1426_v48 = vld [vmem:[%s1741_s5 + $0x60] sm:$0xff]  }
  0xb3   : > { %841 = vmatprep.subr.bf16.mxu0 %v1357_v50  ;;  %882 = vmatprep.subr.bf16.mxu1 %v1390_v51  ;;  %v1427_v49 = vld [vmem:[%s1741_s5 + $0x20] sm:$0xff]   ;;  %v1428_v50 = vld [vmem:[%s1741_s5 + $0x68] sm:$0xff]  }
  0xb4   : > { %v1429_v51 = vld [vmem:[%s1741_s5 + $0x28] sm:$0xff]  }
  0xb6   : > { %842 = vmatpush1.bf16.msra.mxu0 %v1355_v52  ;;  %883 = vmatpush1.bf16.msra.mxu1 %v1388_v53  ;;  %v1430_v52 = vld [vmem:[%s1741_s5 + $0x70] sm:$0xff]  }
  0xb7   : > { %843 = vmatprep.subr.bf16.mxu0 %v1360_v54  ;;  %884 = vmatprep.subr.bf16.mxu1 %v1396_v55  ;;  %v1431_v53 = vld [vmem:[%s1741_s5 + $0x30] sm:$0xff]   ;;  %v1432_v54 = vld [vmem:[%s1741_s5 + $0x78] sm:$0xff]  }
  0xb8   : > { %v1433_v55 = vld [vmem:[%s1741_s5 + $0x38] sm:$0xff]  }
  0xba   : > { %844 = vmatpush1.bf16.msra.mxu0 %v1358_v56  ;;  %885 = vmatpush1.bf16.msra.mxu1 %v1394_v57  ;;  %v586_v56 = vshrl.u32 %v330_v24, 7 }
  0xbb   : > { %845 = vmatprep.subr.bf16.mxu0 %v1363_v58  ;;  %886 = vmatprep.subr.bf16.mxu1 %v1402_v59  ;;  %v583_v58 = vld [vmem:[%s1740_s4] sm:$0x3] }
  0xbc   : > { %v587_v57 = vsub.s32 0, %v586_v56  ;;  %v591_v59 = vsub.s32 1, %v586_v56 }
  0xbe   : > { %846 = vmatpush1.bf16.msra.mxu0 %v1361_v60  ;;  %887 = vmatpush1.bf16.msra.mxu1 %v1400_v61  ;;  %v588_v60 = vrot.slane %v583_v58, %v587_v57 }
  0xbf   : > { %847 = vmatprep.subr.bf16.mxu0 %v1366_v62  ;;  %888 = vmatprep.subr.bf16.mxu1 %v1408_v63  ;;  %v592_v62 = vrot.slane %v583_v58, %v591_v59 }
  0xc2   : > { %848 = vmatpush1.bf16.msra.mxu0 %v1364_v0  ;;  %889 = vmatpush1.bf16.msra.mxu1 %v1406_v1 }
  0xc3   : > { %849 = vmatprep.subr.bf16.mxu0 %v1369_v2  ;;  %890 = vmatprep.subr.bf16.mxu1 %v1414_v18 }
  0xc6   : > { %850 = vmatpush1.bf16.msra.mxu0 %v1367_v3  ;;  %891 = vmatpush1.bf16.msra.mxu1 %v1412_v19 }
  0xc7   : > { %851 = vmatprep.subr.bf16.mxu0 %v1375_v4  ;;  %1269 = vmatprep.subr.bf16.mxu1 %v1418_v22 }
  0xc8   : > { %v526_v23 = vpop.xlane.xlu0 %525 }
  0xc9   : > { %v527_v25 = vadd.f32 1e-08, %v526_v23 }
  0xca   : > { %852 = vmatpush1.bf16.msra.mxu0 %v1373_v5 }
  0xcb   : > { %853 = vmatprep.subr.bf16.mxu0 %v1381_v6  ;;  %1434 = vrcp.f32 %v527_v25 }
  0xce   : > { %854 = vmatpush1.bf16.msra.mxu0 %v1379_v7 }
  0xcf   : > { %855 = vmatprep.subr.bf16.mxu0 %v1387_v8 }
  0xd2   : > { %856 = vmatpush1.bf16.msra.mxu0 %v1385_v9 }
  0xd3   : > { %857 = vmatprep.subr.bf16.mxu0 %v1393_v10 }
  0xd5   : > { %v1435_v26 = vpop.eup %1434 }
  0xd6   : > { %858 = vmatpush1.bf16.msra.mxu0 %v1391_v11 }
  0xd7   : > { %859 = vmatprep.subr.bf16.mxu0 %v1399_v12 }
  0xda   : > { %860 = vmatpush1.bf16.msra.mxu0 %v1397_v13 }
  0xdb   : > { %861 = vmatprep.subr.bf16.mxu0 %v1405_v14  ;;  %v1245_v14 = vld [vmem:[%s1742_s6] ss:$0 sm:$0xff] }
  0xde   : > { %862 = vmatpush1.bf16.msra.mxu0 %v1403_v15 }
  0xdf   : > { %863 = vmatprep.subr.bf16.mxu0 %v1411_v16 }
  0xe2   : > { %864 = vmatpush1.bf16.msra.mxu0 %v1409_v17 }
  0xe3   : > { %865 = vmatprep.subr.bf16.mxu0 %v1417_v20 }
  0xe6   : > { %866 = vmatpush1.bf16.msra.mxu0 %v1415_v21 }
 0x17c   : > { %v476_v27 = vpop.f32.mrb[0].mxu0  ;;  %v517_v28 = vpop.f32.mrb[0].mxu1 }
 0x17d   : > { %v529_v29 = vmul.f32 %v1435_v26, %v476_v27  ;;  %v531_v30 = vmul.f32 %v1435_v26, %v517_v28  ;;  %v478_v31 = vpop.f32.mrb[1].mxu0  ;;  %v1301_v32 = vpop.f32.mrb[1].mxu1 }
 0x17e   : > { %v530_v33 = vmul.f32 %v1435_v26, %v478_v31  ;;  %v480_v34 = vpop.f32.mrb[2].mxu0  ;;  %v520_v35 = vpop.f32.mrb[2].mxu1 }
 0x17f   : > { %v534_v37 = vpack.c.bf16 %v531_v30, %v531_v30  ;;  %v481_v38 = vpop.f32.mrb[3].mxu0  ;;  %v1302_v39 = vpop.f32.mrb[3].mxu1  ;;  %v532_v42 = vpack.c.bf16 %v529_v29, %v529_v29 }
 0x180   : > { %v533_v41 = vpack.c.bf16 %v530_v33, %v530_v33 }
 0x181   : > { %909 = vmatmul.mubr.bf16.vlgmr.msra.gmra.mrb[4].mxu1 %v534_v37 }
 0x182   : > { %867 = vmatprep.mubr.bf16.mxu0 %v533_v41  ;;  %1270 = vmatpush3.bf16.msra.mxu1 %v1419_v36 }
 0x183   : > { %868 = vmatmul.mubr.bf16.vlgmr.msra.gmra.mrb[4].mxu0 %v532_v42  ;;  %1271 = vmatprep.subr.bf16.mxu1 %v1420_v40 }
 0x186   : > { %1272 = vmatpush3.bf16.msra.mxu1 %v1421_v43 }
 0x187   : > { %1273 = vmatprep.subr.bf16.mxu1 %v1422_v44 }
 0x18a   : > { %1274 = vmatpush3.bf16.msra.mxu1 %v1423_v45 }
 0x18b   : > { %1275 = vmatprep.subr.bf16.mxu1 %v1424_v46 }
 0x18e   : > { %1276 = vmatpush3.bf16.msra.mxu1 %v1425_v47 }
 0x18f   : > { %1277 = vmatprep.subr.bf16.mxu1 %v1426_v48 }
 0x192   : > { %1278 = vmatpush3.bf16.msra.mxu1 %v1427_v49 }
 0x193   : > { %1279 = vmatprep.subr.bf16.mxu1 %v1428_v50 }
 0x196   : > { %1280 = vmatpush3.bf16.msra.mxu1 %v1429_v51 }
 0x197   : > { %1281 = vmatprep.subr.bf16.mxu1 %v1430_v52 }
 0x19a   : > { %1282 = vmatpush3.bf16.msra.mxu1 %v1431_v53 }
 0x19b   : > { %1283 = vmatprep.subr.bf16.mxu1 %v1432_v54 }
 0x19e   : > { %1284 = vmatpush3.bf16.msra.mxu1 %v1433_v55 }
 0x254   : > { %v910_v61 = vpop.f32.mrb[4].mxu1 }
 0x255   : > { %v912_v63 = vpop.f32.mrb[5].mxu1 }
 0x256   : > { %v869_v0 = vpop.f32.mrb[4].mxu0  ;;  %v914_v1 = vpop.f32.mrb[6].mxu1 }
 0x257   : > { %v870_v2 = vadd.f32 %v869_v0, %v588_v60  ;;  %v871_v3 = vpop.f32.mrb[5].mxu0  ;;  %v915_v4 = vpop.f32.mrb[7].mxu1 }
 0x258   : > { %v872_v5 = vadd.f32 %v871_v3, %v592_v62  ;;  %v873_v6 = vpop.f32.mrb[6].mxu0 }
 0x259   : > { %v911_v7 = vadd.f32 %v910_v61, %v870_v2  ;;  %v874_v24 = vpop.f32.mrb[7].mxu0 }
 0x25a   : > { %v913_v8 = vadd.f32 %v912_v63, %v872_v5 }
 0x25b   : > { %v917_v9 = vmax.f32 %v911_v7, 0.0 }
 0x25c   : > { %v918_v10 = vmax.f32 %v913_v8, 0.0 }
 0x25d   : > { %v919_v12 = vpack.c.bf16 %v917_v9, %v917_v9 }
 0x25e   : > { %v920_v11 = vpack.c.bf16 %v918_v10, %v918_v10 }
 0x260   : > { %1088 = vmatprep.mubr.bf16.mxu1 %v920_v11 }
 0x261   : > { %1089 = vmatmul.mubr.bf16.vlgmr.msra.gmra.mrb[8].mxu1 %v919_v12 }
 0x334   : > { %v1285_v13 = vpop.f32.mrb[8].mxu1 }
 0x335   : > { %v1286_v15 = vpop.f32.mrb[9].mxu1 }
 0x336   : > { %v1287_v16 = vadd.f32 %v1286_v15, %v1285_v13  ;;  %v1288_v17 = vpop.f32.mrb[10].mxu1 }
 0x337   : > { %v1289_v18 = vpop.f32.mrb[11].mxu1 }
 0x338   : > { %v1091_v19 = vadd.f32 %v1287_v16, %v1245_v14 }
 0x33a   : > { %1096 = vst [vmem:[%s310_s22] sm:$0xff] %v1091_v19 }
 0x33b PF: > { %s17_s24 = sadd.s32 1, %s1442_s24  }
 0x33c   : > { %p14_p4 = scmp.ge.s32.totalorder %s17_s24, 4  }
 0x33e   :  { %16 = sbr.rel (!%p14_p4) target bundleno = 1 (0x1), region = 84 }

// kernel: graph_classification_forward.2
= control target key start
LH: loop header
LB: loop body
LE: loop exit
PB: predicated region body
PF: predicated region fallthrough
CT: control target
= control target key end

     0   :  { %s10051_s0 = inlined_call_operand.hbm [shape: s32[2], index: 0, kind: input, shape index: {}]   ;;  %s10052_s1 = inlined_call_operand.<no memory space> [shape: f32[1], index: 1, kind: input, shape index: {}]   ;;  %s10053_s2 = inlined_call_operand.hbm [shape: f32[2,64,3072], index: 2, kind: input, shape index: {}]   ;;  %s10054_s3 = inlined_call_operand.hbm [shape: bf16[3072,384], index: 3, kind: input, shape index: {}]   ;;  %s10055_s4 = inlined_call_operand.hbm [shape: f32[1,384], index: 4, kind: input, shape index: {}]   ;;  %s10056_s5 = inlined_call_operand.vmem [shape: bf16[2,64,384], index: 5, kind: output, shape index: {}]  }
   0x1   :  { %10 = sst [smem:[#allocation2]] %s10052_s1 }
   0x2   :  { %11 = vsyncpa [#allocation5], 0 }
   0x3   :  { %12 = vsyncpa [#allocation4], 0 }
   0x4   :  { %14 = vsyncpa [#allocation4 + $0x1], 0 }
   0x5   :  { %15 = vsyncpa [#allocation8], 0  ;;  %s8883_s20 = smov 0   ;;  %s8885_s21 = smov 0  }
   0x6   :  { %s8887_s22 = smov 0   ;;  %s8889_s23 = smov 0  }
   0x7   :  { %s8891_s24 = smov 0   ;;  %s8893_s25 = smov 0  }
   0x8 LB: > { %s6521_s1 = sadd.s32 4294967295, %s8840_s25   ;;  %p97_p0 = scmp.ne.s32.totalorder %s8824_s21, %s8820_s20  ;;  %s8840_s25 = sphi %s8893_s25, %s21_s25   ;;  %s8836_s24 = sphi %s8891_s24, %s10077_s24   ;;  %s8832_s23 = sphi %s8889_s23, %s10076_s23   ;;  %s8828_s22 = sphi %s8887_s22, %s10075_s22   ;;  %s8824_s21 = sphi %s8885_s21, %s10074_s21   ;;  %s8820_s20 = sphi %s8883_s20, %s10073_s20  }
   0x9   : > { %p8913_p1 = scmp.eq.s32.totalorder %s6521_s1, 0  ;;  %p6523_p2 = scmp.ge.s32.totalorder %s8840_s25, 1 }
   0xa   : > { %p178_p3 = scmp.lt.s32.totalorder %s8840_s25, 3  ;;  %s8842_s29 = smov [#allocation7]  }
   0xb   : > { %s10062_s26 = scalar_select %p8913_p1, 1, 0 }
   0xc   : > { %p8921_p4 = por %p8913_p1, %p97_p0  ;;  %p8925_p5 = pnand %p6523_p2, %p178_p3 }
   0xd   : > { %s202_s30 = sshll.u32 %s8842_s29, 4  ;;  %s8843_s7 = smov [#allocation9]   ;;  %s203_s30 = int_to_ptr.vmem [resolvable:$true] %s202_s30 }
   0xe   : > { %s10063_s27 = scalar_select %p8921_p4, 1, 0 }
   0xf   : > { %s10064_s28 = scalar_select %p8925_p5, 1, 0 }
  0x10   : > { %p7838_p6 = pneg %p8925_p5  ;;  %s8937_s8 = sshll.u32 %s8843_s7, 4  ;;  %s217_s8 = int_to_ptr.vmem [resolvable:$true] %s8937_s8 }
  0x11   : > { %s8683_s11 = scalar_lea.hbm %s10054_s3, 73728 }
  0x12   : > { %p8933_p7 = pnand %p7838_p6, %p8913_p1  ;;  %p8684_p8 = scmp.ne.s32.totalorder %s10054_s3, %s8683_s11 }
  0x13   : > { %p8690_p12 = scmp.lt.u32.totalorder %s8683_s11, %s10054_s3 }
  0x14   : > { %p8947_p9 = pneg %p8933_p7 }
  0x16   : > { %p8686_p10 = pnand %p8947_p9, %p8684_p8 }
  0x18   : > { %p8687_p11 = pneg %p8686_p10 }
  0x1a   : > { %p8692_p13 = pnand %p8690_p12, %p8687_p11 }
  0x1c   : > { %8695 = shalt.err (!%p8692_p13)
}
  0x1d   : > { %s8696_s17 = scalar_lea.vmem %s203_s30, 73728  ;;  %p8704_p6 = scmp.lt.s32.totalorder %s203_s30, %s203_s30 }
  0x1e   : > { %p8697_p0 = scmp.ne.s32.totalorder %s203_s30, %s8696_s17  ;;  %p8705_p4 = scmp.lt.s32.totalorder %s8696_s17, %s8696_s17 }
  0x20   : > { %p8699_p2 = pnand %p8697_p0, %p8947_p9  ;;  %p8706_p1 = por %p8705_p4, %p8704_p6 }
  0x22   : > { %p8700_p3 = pneg %p8699_p2 }
  0x24   : > { %p8707_p5 = pnand %p8706_p1, %p8700_p3 }
  0x26   : > { %8710 = shalt.err (!%p8707_p5)
}
  0x27   : > { %s8844_s18 = smov 192   ;;  %s8845_s19 = smov 12  }
  0x28   : > { %7844 = dma.hbm_to_vmem [thread:$0]  (!%p8933_p7), %s10054_s3, 73728, %s203_s30, [#allocation8], %s8844_s18, %s8844_s18, %s8845_s19  }
  0x29   : > { %s8711_s9 = scalar_lea.hbm %s10051_s0, 16 }
  0x2a   : > { %p8712_p1 = scmp.ne.s32.totalorder %s10051_s0, %s8711_s9  ;;  %p8718_p8 = scmp.lt.u32.totalorder %s8711_s9, %s10051_s0 }
  0x2c   : > { %p8714_p4 = pnand %p8712_p1, %p8947_p9 }
  0x2e   : > { %p8715_p5 = pneg %p8714_p4 }
  0x30   : > { %p8720_p10 = pnand %p8718_p8, %p8715_p5 }
  0x32   : > { %8723 = shalt.err (!%p8720_p10)
}
  0x33   : > { %s8846_s15 = smov [#allocation3]   ;;  %s8724_s20 = scalar_lea.hbm %s10055_s4, 48 }
  0x34   : > { %7841 = dma.hbm_to_smem (!%p8933_p7), %s10051_s0, 16, %s8846_s15, [#allocation5]  }
  0x35   : > { %p8725_p11 = scmp.ne.s32.totalorder %s10055_s4, %s8724_s20  ;;  %p8731_p0 = scmp.lt.u32.totalorder %s8724_s20, %s10055_s4 }
  0x37   : > { %p8727_p12 = pnand %p8725_p11, %p8947_p9 }
  0x39   : > { %p8728_p13 = pneg %p8727_p12 }
  0x3b   : > { %p8733_p2 = pnand %p8731_p0, %p8728_p13 }
  0x3d   : > { %8736 = shalt.err (!%p8733_p2)
}
  0x3e   : > { %s8737_s10 = scalar_lea.vmem %s217_s8, 48  ;;  %s8744_s11 = scalar_lea.vmem %s217_s8, 64 }
  0x3f   : > { %p8738_p3 = scmp.ne.s32.totalorder %s217_s8, %s8737_s10  ;;  %p8745_p4 = scmp.lt.s32.totalorder %s217_s8, %s217_s8 }
  0x40   : > { %p8746_p5 = scmp.lt.s32.totalorder %s8744_s11, %s8737_s10 }
  0x41   : > { %p8740_p6 = pnand %p8738_p3, %p8947_p9 }
  0x42   : > { %p8747_p8 = por %p8746_p5, %p8745_p4 }
  0x43   : > { %p8741_p1 = pneg %p8740_p6 }
  0x45   : > { %p8748_p10 = pnand %p8747_p8, %p8741_p1 }
  0x47   : > { %8751 = shalt.err (!%p8748_p10)
}
  0x48   : > { %7847 = dma.hbm_to_vmem [thread:$0]  (!%p8933_p7), %s10055_s4, 48, %s217_s8, [#allocation8]  }
  0x49   : > { %s84_s14 = sadd.s32 1, %s8828_s22  ;;  %s33_s15 = sadd.s32 1, %s8836_s24 }
  0x4a   : > { %p91_p9 = scmp.ne.s32.totalorder %s8828_s22, %s8824_s21  ;;  %p35_p11 = scmp.ge.s32.totalorder %s33_s15, 2 }
  0x4b   : > { %p92_p12 = scmp.eq.s32.totalorder %s8840_s25, 0  ;;  %p7855_p13 = scmp.lt.s32.totalorder %s8840_s25, 2 }
  0x4c   : > { %s227_s6 = sand.u32 1, %s8828_s22   ;;  %s10079_s15 = smov (%p35_p11, %s33_s15), 0 }
  0x4d   : > { %p93_p0 = por %p92_p12, %p91_p9  ;;  %s79_s30 = ssub.s32 %s8836_s24, %s10079_s15 }
  0x4e   : > { %s7820_s16 = smul.u32 1536, %s227_s6  ;;  %p82_p2 = scmp.eq.s32.totalorder %s79_s30, 0 }
  0x4f   : > { %s7821_s17 = smul.u32 24576, %s8836_s24  ;;  %p9012_p3 = pnand %p7855_p13, %p93_p0 }
  0x50   : > { %s9017_s8 = scalar_select %p82_p2, %s8828_s22, %s84_s14  }
  0x51   : > { %s9022_s29 = scalar_lea.hbm %s10053_s2, %s7821_s17  ;;  %s231_s7 = scalar_lea.vmem [#allocation6], %s7820_s16 }
  0x52   : > { %s241_s9 = sshll.u32 %s231_s7, 4  ;;  %s9026_s10 = scalar_lea.sflag [#allocation4], %s227_s6  ;;  %s9024_s9 = int_to_ptr.vmem [resolvable:$true] %s241_s9 }
  0x53   : > { %s8752_s11 = scalar_lea.hbm %s9022_s29, 24576  ;;  %p8754_p6 = pneg %p9012_p3 }
  0x54   : > { %p8753_p7 = scmp.ne.s32.totalorder %s9022_s29, %s8752_s11  ;;  %s8757_s14 = scalar_lea.hbm %s10053_s2, 49152 }
  0x55   : > { %p8758_p5 = scmp.lt.u32.totalorder %s9022_s29, %s10053_s2  ;;  %p8759_p8 = scmp.lt.u32.totalorder %s8757_s14, %s8752_s11 }
  0x56   : > { %p8755_p1 = pnand %p8754_p6, %p8753_p7  ;;  %p8761_p9 = scmp.lt.u32.totalorder %s8752_s11, %s9022_s29 }
  0x57   : > { %p8760_p10 = por %p8759_p8, %p8758_p5 }
  0x58   : > { %p8756_p4 = pneg %p8755_p1 }
  0x59   : > { %p8762_p11 = por %p8761_p9, %p8760_p10 }
  0x5b   : > { %p8763_p12 = pnand %p8762_p11, %p8756_p4 }
  0x5d   : > { %8766 = shalt.err (!%p8763_p12)
}
  0x5e   : > { %s8767_s6 = scalar_lea.vmem %s9024_s9, 24576  ;;  %s8847_s16 = smov [#allocation6]  }
  0x5f   : > { %p8768_p13 = scmp.ne.s32.totalorder %s9024_s9, %s8767_s6  ;;  %s8772_s20 = sshll.u32 %s8847_s16, 4  ;;  %s8773_s20 = int_to_ptr.vmem [resolvable:$false] %s8772_s20 }
  0x60   : > { %s8774_s1 = scalar_lea.vmem %s8773_s20, 49152  ;;  %p8775_p7 = scmp.lt.s32.totalorder %s9024_s9, %s8773_s20 }
  0x61   : > { %p8770_p0 = pnand %p8768_p13, %p8754_p6  ;;  %p8776_p1 = scmp.lt.s32.totalorder %s8774_s1, %s8767_s6 }
  0x63   : > { %p8771_p2 = pneg %p8770_p0  ;;  %p8777_p5 = por %p8776_p1, %p8775_p7 }
  0x65   : > { %p8778_p8 = pnand %p8777_p5, %p8771_p2 }
  0x67   : > { %8781 = shalt.err (!%p8778_p8)
}
  0x68   : > { %s8848_s7 = smov 3072   ;;  %p10068_p6 = scmp.ne.s32.totalorder %s10064_s28, 0 }
  0x69   : > { %7851 = dma.hbm_to_vmem [thread:$0]  (!%p9012_p3), %s9022_s29, 24576, %s9024_s9, %s9026_s10, %s8848_s7, %s8848_s7, %s8844_s18  }
  0x6a   : > { %253 = sbr.rel (%p10068_p6) target bundleno = 990 (0x3de), region = 40  ;;  %p10069_p4 = scmp.ne.s32.totalorder (!%p10068_p6), %s10062_s26, 0 }
  0x71   : > { %8807 = dma.done.wait (%p10069_p4), [#allocation5], 16  }
  0x72   : > { %8809 = vsyncadd (%p10069_p4), [#allocation5], 4294967280  ;;  %s259_s11 = sand.u32 1, %s8824_s21   ;;  %p10070_p10 = scmp.ne.s32.totalorder %s10063_s27, 0 }
  0x73   : > { %s7822_s12 = smul.u32 1536, %s259_s11  ;;  %s260_s13 = scalar_lea.sflag [#allocation4], %s259_s11 }
  0x75   : > { %s9062_s19 = scalar_lea.vmem [#allocation6], %s7822_s12 }
  0x76   : > { %8811 = dma.done.wait (%p10070_p10), %s260_s13, 24576  }
  0x77   : > { %8813 = vsyncadd (%p10070_p10), %s260_s13, 4294942720 }
  0x78   : > { %8815 = dma.done.wait (%p10069_p4), [#allocation8], 73776  }
  0x79   : > { %8817 = vsyncadd (%p10069_p4), [#allocation8], 4294893520 }
  0x7a   : > { %276 = sfence }
  0x7b   : > { %p306_p3 = scmp.lt.s32.totalorder %s8832_s23, 1  ;;  %s9074_s28 = sld [smem:[#allocation3 + %s8832_s23]] }
  0x7d   : > { %s10081_s23 = smov (!%p306_p3, %s8832_s23), 1 }
  0x7e   : > { %s7823_s18 = smul.u32 96, %s10081_s23 }
  0x80   : > { %s9080_s27 = scalar_lea.vmem %s10056_s5, %s7823_s18 }
  0x81   : > { %p6535_p9 = scmp.le.s32.totalorder %s9074_s28, 0 }
  0x83   : > { %322 = sbr.rel (%p6535_p9) target bundleno = 980 (0x3d4), region = 60 }
  0x8a   : > { %v7914_v0 = vld [vmem:[#allocation7 + $0x4] ss:$12 sps:$4 sm:$0xff]   ;;  %v7918_v2 = vld [vmem:[#allocation7] ss:$12 sps:$4 sm:$0xff]   ;;  %v7920_v4 = vld [vmem:[#allocation7 + $0x1c] ss:$12 sps:$4 sm:$0xff]  }
  0x8b   : > { %v7916_v1 = vld [vmem:[#allocation7 + $0x484] ss:$12 sps:$4 sm:$0xff]   ;;  %4468 = vmatprep.subr.bf16.mxu1 %v7914_v0  ;;  %v7919_v3 = vld [vmem:[#allocation7 + $0x480] ss:$12 sps:$4 sm:$0xff]   ;;  %v7922_v5 = vld [vmem:[#allocation7 + $0x49c] ss:$12 sps:$4 sm:$0xff]  }
  0x8c   : > { %4687 = vmatprep.subr.bf16.mxu0 %v7916_v1  ;;  %4469 = vmatpush1.bf16.msra.mxu1 %v7918_v2  ;;  %v7924_v6 = vld [vmem:[#allocation7 + $0x18] ss:$12 sps:$4 sm:$0xff]   ;;  %v7926_v8 = vld [vmem:[#allocation7 + $0x34] ss:$12 sps:$4 sm:$0xff]   ;;  %v7930_v10 = vld [vmem:[#allocation7 + $0x30] ss:$12 sps:$4 sm:$0xff]  }
  0x8d   : > { %4688 = vmatpush1.bf16.msra.mxu0 %v7919_v3  ;;  %4470 = vmatprep.subr.bf16.mxu1 %v7920_v4  ;;  %v7925_v7 = vld [vmem:[#allocation7 + $0x498] ss:$12 sps:$4 sm:$0xff]   ;;  %v7928_v9 = vld [vmem:[#allocation7 + $0x4b4] ss:$12 sps:$4 sm:$0xff]   ;;  %v7931_v11 = vld [vmem:[#allocation7 + $0x4b0] ss:$12 sps:$4 sm:$0xff]  }
  0x8e   : > { %4689 = vmatprep.subr.bf16.mxu0 %v7922_v5  ;;  %v7932_v12 = vld [vmem:[#allocation7 + $0x4c] ss:$12 sps:$4 sm:$0xff]   ;;  %v7936_v14 = vld [vmem:[#allocation7 + $0x48] ss:$12 sps:$4 sm:$0xff]   ;;  %v7938_v16 = vld [vmem:[#allocation7 + $0x64] ss:$12 sps:$4 sm:$0xff]  }
  0x8f   : > { %v7934_v13 = vld [vmem:[#allocation7 + $0x4cc] ss:$12 sps:$4 sm:$0xff]   ;;  %v7937_v15 = vld [vmem:[#allocation7 + $0x4c8] ss:$12 sps:$4 sm:$0xff]   ;;  %v7940_v17 = vld [vmem:[#allocation7 + $0x4e4] ss:$12 sps:$4 sm:$0xff]  }
  0x90   : > { %4471 = vmatpush1.bf16.msra.mxu1 %v7924_v6  ;;  %v7942_v18 = vld [vmem:[#allocation7 + $0x60] ss:$12 sps:$4 sm:$0xff]   ;;  %v7944_v20 = vld [vmem:[#allocation7 + $0x7c] ss:$12 sps:$4 sm:$0xff]   ;;  %v7948_v22 = vld [vmem:[#allocation7 + $0x78] ss:$12 sps:$4 sm:$0xff]  }
  0x91   : > { %4690 = vmatpush1.bf16.msra.mxu0 %v7925_v7  ;;  %4472 = vmatprep.subr.bf16.mxu1 %v7926_v8  ;;  %v7943_v19 = vld [vmem:[#allocation7 + $0x4e0] ss:$12 sps:$4 sm:$0xff]   ;;  %v7946_v21 = vld [vmem:[#allocation7 + $0x4fc] ss:$12 sps:$4 sm:$0xff]   ;;  %v7949_v23 = vld [vmem:[#allocation7 + $0x4f8] ss:$12 sps:$4 sm:$0xff]  }
  0x92   : > { %4691 = vmatprep.subr.bf16.mxu0 %v7928_v9  ;;  %v7950_v24 = vld [vmem:[#allocation7 + $0x94] ss:$12 sps:$4 sm:$0xff]   ;;  %v7954_v26 = vld [vmem:[#allocation7 + $0x90] ss:$12 sps:$4 sm:$0xff]   ;;  %v7956_v28 = vld [vmem:[#allocation7 + $0xac] ss:$12 sps:$4 sm:$0xff]  }
  0x93   : > { %v7952_v25 = vld [vmem:[#allocation7 + $0x514] ss:$12 sps:$4 sm:$0xff]   ;;  %v7955_v27 = vld [vmem:[#allocation7 + $0x510] ss:$12 sps:$4 sm:$0xff]   ;;  %v7958_v29 = vld [vmem:[#allocation7 + $0x52c] ss:$12 sps:$4 sm:$0xff]  }
  0x94   : > { %4473 = vmatpush1.bf16.msra.mxu1 %v7930_v10  ;;  %v7960_v30 = vld [vmem:[#allocation7 + $0xa8] ss:$12 sps:$4 sm:$0xff]   ;;  %v7962_v32 = vld [vmem:[#allocation7 + $0xc4] ss:$12 sps:$4 sm:$0xff]   ;;  %v7966_v34 = vld [vmem:[#allocation7 + $0xc0] ss:$12 sps:$4 sm:$0xff]  }
  0x95   : > { %4692 = vmatpush1.bf16.msra.mxu0 %v7931_v11  ;;  %4474 = vmatprep.subr.bf16.mxu1 %v7932_v12  ;;  %v7961_v31 = vld [vmem:[#allocation7 + $0x528] ss:$12 sps:$4 sm:$0xff]   ;;  %v7964_v33 = vld [vmem:[#allocation7 + $0x544] ss:$12 sps:$4 sm:$0xff]   ;;  %v7967_v35 = vld [vmem:[#allocation7 + $0x540] ss:$12 sps:$4 sm:$0xff]  }
  0x96   : > { %4693 = vmatprep.subr.bf16.mxu0 %v7934_v13  ;;  %v7968_v36 = vld [vmem:[#allocation7 + $0xdc] ss:$12 sps:$4 sm:$0xff]   ;;  %v7972_v38 = vld [vmem:[#allocation7 + $0xd8] ss:$12 sps:$4 sm:$0xff]   ;;  %v7974_v40 = vld [vmem:[#allocation7 + $0xf4] ss:$12 sps:$4 sm:$0xff]  }
  0x97   : > { %v7970_v37 = vld [vmem:[#allocation7 + $0x55c] ss:$12 sps:$4 sm:$0xff]   ;;  %v7973_v39 = vld [vmem:[#allocation7 + $0x558] ss:$12 sps:$4 sm:$0xff]   ;;  %v7976_v41 = vld [vmem:[#allocation7 + $0x574] ss:$12 sps:$4 sm:$0xff]  }
  0x98   : > { %4475 = vmatpush1.bf16.msra.mxu1 %v7936_v14  ;;  %v7978_v42 = vld [vmem:[#allocation7 + $0xf0] ss:$12 sps:$4 sm:$0xff]   ;;  %v7980_v44 = vld [vmem:[#allocation7 + $0x10c] ss:$12 sps:$4 sm:$0xff]   ;;  %v7984_v46 = vld [vmem:[#allocation7 + $0x108] ss:$12 sps:$4 sm:$0xff]  }
  0x99   : > { %4694 = vmatpush1.bf16.msra.mxu0 %v7937_v15  ;;  %4476 = vmatprep.subr.bf16.mxu1 %v7938_v16  ;;  %v7979_v43 = vld [vmem:[#allocation7 + $0x570] ss:$12 sps:$4 sm:$0xff]   ;;  %v7982_v45 = vld [vmem:[#allocation7 + $0x58c] ss:$12 sps:$4 sm:$0xff]   ;;  %v7985_v47 = vld [vmem:[#allocation7 + $0x588] ss:$12 sps:$4 sm:$0xff]  }
  0x9a   : > { %4695 = vmatprep.subr.bf16.mxu0 %v7940_v17  ;;  %v324_v48 = vld [vmem:[%s9062_s19 + $0x8] sm:$0xff]  ;;  %v7986_v50 = vld [vmem:[#allocation7 + $0x124] ss:$12 sps:$4 sm:$0xff]   ;;  %v330_v53 = vld [vmem:[%s9062_s19 + $0x38] sm:$0xff]  ;;  %s6124_s23 = sld [smem:[#allocation2]] }
  0x9b   : > { %v348_v49 = vld [vmem:[%s9062_s19 + $0xc8] sm:$0xff]  ;;  %v7988_v51 = vld [vmem:[#allocation7 + $0x5a4] ss:$12 sps:$4 sm:$0xff]   ;;  %v354_v54 = vld [vmem:[%s9062_s19 + $0xf8] sm:$0xff] }
  0x9c   : > { %4477 = vmatpush1.bf16.msra.mxu1 %v7942_v18  ;;  %v9085_v52 = vpack.c.bf16 %v348_v49, %v324_v48  ;;  %v9090_v55 = vpack.c.bf16 %v354_v54, %v330_v53  ;;  %v7990_v56 = vld [vmem:[#allocation7 + $0x120] ss:$12 sps:$4 sm:$0xff]   ;;  %v7992_v58 = vld [vmem:[#allocation7 + $0x13c] ss:$12 sps:$4 sm:$0xff]   ;;  %v7996_v60 = vld [vmem:[#allocation7 + $0x138] ss:$12 sps:$4 sm:$0xff]  }
  0x9d   : > { %4696 = vmatpush1.bf16.msra.mxu0 %v7943_v19  ;;  %4478 = vmatprep.subr.bf16.mxu1 %v7944_v20  ;;  %v7991_v57 = vld [vmem:[#allocation7 + $0x5a0] ss:$12 sps:$4 sm:$0xff]   ;;  %v7994_v59 = vld [vmem:[#allocation7 + $0x5bc] ss:$12 sps:$4 sm:$0xff]   ;;  %v7997_v61 = vld [vmem:[#allocation7 + $0x5b8] ss:$12 sps:$4 sm:$0xff]  }
  0x9e   : > { %4697 = vmatprep.subr.bf16.mxu0 %v7946_v21  ;;  %4500 = vmatprep.mubr.bf16.mxu1 %v9085_v52  ;;  %v7998_v62 = vld [vmem:[#allocation7 + $0x154] ss:$12 sps:$4 sm:$0xff]   ;;  %v8002_v0 = vld [vmem:[#allocation7 + $0x150] ss:$12 sps:$4 sm:$0xff]   ;;  %v8004_v2 = vld [vmem:[#allocation7 + $0x16c] ss:$12 sps:$4 sm:$0xff]  }
  0x9f   : > { %4719 = vmatprep.mubr.bf16.mxu0 %v9090_v55  ;;  %v8000_v63 = vld [vmem:[#allocation7 + $0x5d4] ss:$12 sps:$4 sm:$0xff]   ;;  %v8003_v1 = vld [vmem:[#allocation7 + $0x5d0] ss:$12 sps:$4 sm:$0xff]   ;;  %v8006_v3 = vld [vmem:[#allocation7 + $0x5ec] ss:$12 sps:$4 sm:$0xff]  }
  0xa0   : > { %4479 = vmatpush1.bf16.msra.mxu1 %v7948_v22  ;;  %v8008_v4 = vld [vmem:[#allocation7 + $0x168] ss:$12 sps:$4 sm:$0xff]   ;;  %v323_v6 = vld [vmem:[%s9062_s19] sm:$0xff]  ;;  %v8022_v22 = vld [vmem:[#allocation7 + $0x1b0] ss:$12 sps:$4 sm:$0xff]  }
  0xa1   : > { %4698 = vmatpush1.bf16.msra.mxu0 %v7949_v23  ;;  %4480 = vmatprep.subr.bf16.mxu1 %v7950_v24  ;;  %v8009_v5 = vld [vmem:[#allocation7 + $0x5e8] ss:$12 sps:$4 sm:$0xff]   ;;  %v8012_v7 = vld [vmem:[#allocation7 + $0x184] ss:$12 sps:$4 sm:$0xff]   ;;  %v8010_v12 = vld [vmem:[#allocation7 + $0x180] ss:$12 sps:$4 sm:$0xff]  }
  0xa2   : > { %4699 = vmatprep.subr.bf16.mxu0 %v7952_v25  ;;  %v347_v8 = vld [vmem:[%s9062_s19 + $0xc0] sm:$0xff]  ;;  %v329_v9 = vld [vmem:[%s9062_s19 + $0x30] sm:$0xff]  ;;  %v8018_v16 = vld [vmem:[#allocation7 + $0x19c] ss:$12 sps:$4 sm:$0xff]  }
  0xa3   : > { %v353_v10 = vld [vmem:[%s9062_s19 + $0xf0] sm:$0xff]  ;;  %v8013_v13 = vld [vmem:[#allocation7 + $0x600] ss:$12 sps:$4 sm:$0xff]   ;;  %v9097_v14 = vpack.c.bf16 %v347_v8, %v323_v6  ;;  %v8021_v17 = vld [vmem:[#allocation7 + $0x61c] ss:$12 sps:$4 sm:$0xff]  }
  0xa4   : > { %4481 = vmatpush1.bf16.msra.mxu1 %v7954_v26  ;;  %v8015_v11 = vld [vmem:[#allocation7 + $0x604] ss:$12 sps:$4 sm:$0xff]   ;;  %v9099_v15 = vpack.c.bf16 %v353_v10, %v329_v9  ;;  %v8024_v20 = vld [vmem:[#allocation7 + $0x1b4] ss:$12 sps:$4 sm:$0xff]   ;;  %v372_v24 = vld [vmem:[%s9062_s19 + $0x188] sm:$0xff] }
  0xa5   : > { %4700 = vmatpush1.bf16.msra.mxu0 %v7955_v27  ;;  %4482 = vmatprep.subr.bf16.mxu1 %v7956_v28  ;;  %v8016_v18 = vld [vmem:[#allocation7 + $0x198] ss:$12 sps:$4 sm:$0xff]   ;;  %v8027_v21 = vld [vmem:[#allocation7 + $0x634] ss:$12 sps:$4 sm:$0xff]   ;;  %v8025_v23 = vld [vmem:[#allocation7 + $0x630] ss:$12 sps:$4 sm:$0xff]  }
  0xa6   : > { %4701 = vmatprep.subr.bf16.mxu0 %v7958_v29  ;;  %v8019_v19 = vld [vmem:[#allocation7 + $0x618] ss:$12 sps:$4 sm:$0xff]   ;;  %v396_v25 = vld [vmem:[%s9062_s19 + $0x248] sm:$0xff]  ;;  %v8048_v54 = vld [vmem:[#allocation7 + $0x214] ss:$12 sps:$4 sm:$0xff]  }
  0xa7   : > { %v8030_v26 = vld [vmem:[#allocation7 + $0x1cc] ss:$12 sps:$4 sm:$0xff]   ;;  %v9105_v28 = vpack.c.bf16 %v396_v25, %v372_v24  ;;  %v8028_v29 = vld [vmem:[#allocation7 + $0x1c8] ss:$12 sps:$4 sm:$0xff]  }
  0xa8   : > { %4483 = vmatpush1.bf16.msra.mxu1 %v7960_v30  ;;  %v8033_v27 = vld [vmem:[#allocation7 + $0x64c] ss:$12 sps:$4 sm:$0xff]   ;;  %v8031_v30 = vld [vmem:[#allocation7 + $0x648] ss:$12 sps:$4 sm:$0xff]  }
  0xa9   : > { %4702 = vmatpush1.bf16.msra.mxu0 %v7961_v31  ;;  %4484 = vmatprep.subr.bf16.mxu1 %v7962_v32  ;;  %v378_v31 = vld [vmem:[%s9062_s19 + $0x1b8] sm:$0xff]  ;;  %v8055_v8 = vld [vmem:[#allocation7 + $0x6a8] ss:$12 sps:$4 sm:$0xff]  }
  0xaa   : > { %4703 = vmatprep.subr.bf16.mxu0 %v7964_v33  ;;  %v402_v32 = vld [vmem:[%s9062_s19 + $0x278] sm:$0xff]  ;;  %v8036_v33 = vld [vmem:[#allocation7 + $0x1e4] ss:$12 sps:$4 sm:$0xff]  }
  0xab   : > { %v8040_v49 = vld [vmem:[#allocation7 + $0x1f8] ss:$12 sps:$4 sm:$0xff]  }
  0xac   : > { %4485 = vmatpush1.bf16.msra.mxu1 %v7966_v34  ;;  %v8039_v34 = vld [vmem:[#allocation7 + $0x664] ss:$12 sps:$4 sm:$0xff]   ;;  %v450_v53 = vld [vmem:[%s9062_s19 + $0x3f8] sm:$0xff] }
  0xad   : > { %4704 = vmatpush1.bf16.msra.mxu0 %v7967_v35  ;;  %4486 = vmatprep.subr.bf16.mxu1 %v7968_v36  ;;  %v9110_v35 = vpack.c.bf16 %v402_v32, %v378_v31  ;;  %v371_v36 = vld [vmem:[%s9062_s19 + $0x180] sm:$0xff]  ;;  %v474_v9 = vld [vmem:[%s9062_s19 + $0x4b8] sm:$0xff]  ;;  %v356_v31 = vld [vmem:[%s9062_s19 + $0x108] sm:$0xff] }
  0xae   : > { %4705 = vmatprep.subr.bf16.mxu0 %v7970_v37  ;;  %v395_v37 = vld [vmem:[%s9062_s19 + $0x240] sm:$0xff]  ;;  %v498_v10 = vld [vmem:[%s9062_s19 + $0x578] sm:$0xff] }
  0xaf   : > { %v326_v24 = vld [vmem:[%s9062_s19 + $0x18] sm:$0xff] }
  0xb0   : > { %4487 = vmatpush1.bf16.msra.mxu1 %v7972_v38  ;;  %v377_v38 = vld [vmem:[%s9062_s19 + $0x1b0] sm:$0xff]  ;;  %v350_v25 = vld [vmem:[%s9062_s19 + $0xd8] sm:$0xff] }
  0xb1   : > { %4706 = vmatpush1.bf16.msra.mxu0 %v7973_v39  ;;  %4488 = vmatprep.subr.bf16.mxu1 %v7974_v40  ;;  %v9115_v39 = vpack.c.bf16 %v395_v37, %v371_v36  ;;  %v401_v40 = vld [vmem:[%s9062_s19 + $0x270] sm:$0xff] }
  0xb2   : > { %4707 = vmatprep.subr.bf16.mxu0 %v7976_v41  ;;  %v9119_v41 = vpack.c.bf16 %v401_v40, %v377_v38  ;;  %v8072_v36 = vld [vmem:[#allocation7 + $0x274] ss:$12 sps:$4 sm:$0xff]   ;;  %v8070_v38 = vld [vmem:[#allocation7 + $0x270] ss:$12 sps:$4 sm:$0xff]  }
  0xb3   : > { %v8075_v37 = vld [vmem:[#allocation7 + $0x6f4] ss:$12 sps:$4 sm:$0xff]   ;;  %v8073_v40 = vld [vmem:[#allocation7 + $0x6f0] ss:$12 sps:$4 sm:$0xff]  }
  0xb4   : > { %4489 = vmatpush1.bf16.msra.mxu1 %v7978_v42  ;;  %v8034_v42 = vld [vmem:[#allocation7 + $0x1e0] ss:$12 sps:$4 sm:$0xff]  }
  0xb5   : > { %4708 = vmatpush1.bf16.msra.mxu0 %v7979_v43  ;;  %4490 = vmatprep.subr.bf16.mxu1 %v7980_v44  ;;  %v8037_v43 = vld [vmem:[#allocation7 + $0x660] ss:$12 sps:$4 sm:$0xff]  }
  0xb6   : > { %4709 = vmatprep.subr.bf16.mxu0 %v7982_v45  ;;  %v420_v44 = vld [vmem:[%s9062_s19 + $0x308] sm:$0xff] }
  0xb7   : > { %v444_v45 = vld [vmem:[%s9062_s19 + $0x3c8] sm:$0xff] }
  0xb8   : > { %4491 = vmatpush1.bf16.msra.mxu1 %v7984_v46  ;;  %v8042_v46 = vld [vmem:[#allocation7 + $0x1fc] ss:$12 sps:$4 sm:$0xff]   ;;  %v9124_v48 = vpack.c.bf16 %v444_v45, %v420_v44 }
  0xb9   : > { %4710 = vmatpush1.bf16.msra.mxu0 %v7985_v47  ;;  %4492 = vmatprep.subr.bf16.mxu1 %v7986_v50  ;;  %v8045_v47 = vld [vmem:[#allocation7 + $0x67c] ss:$12 sps:$4 sm:$0xff]   ;;  %v8043_v50 = vld [vmem:[#allocation7 + $0x678] ss:$12 sps:$4 sm:$0xff]  }
  0xba   : > { %4711 = vmatprep.subr.bf16.mxu0 %v7988_v51  ;;  %v426_v51 = vld [vmem:[%s9062_s19 + $0x338] sm:$0xff]  ;;  %v8076_v44 = vld [vmem:[#allocation7 + $0x288] ss:$12 sps:$4 sm:$0xff]  }
  0xbb   : > { %v8079_v45 = vld [vmem:[#allocation7 + $0x708] ss:$12 sps:$4 sm:$0xff]  }
  0xbc   : > { %4493 = vmatpush1.bf16.msra.mxu1 %v7990_v56  ;;  %v8051_v56 = vld [vmem:[#allocation7 + $0x694] ss:$12 sps:$4 sm:$0xff]  }
  0xbd   : > { %4712 = vmatpush1.bf16.msra.mxu0 %v7991_v57  ;;  %4494 = vmatprep.subr.bf16.mxu1 %v7992_v58  ;;  %v9130_v57 = vpack.c.bf16 %v450_v53, %v426_v51  ;;  %v419_v58 = vld [vmem:[%s9062_s19 + $0x300] sm:$0xff]  ;;  %v8090_v51 = vld [vmem:[#allocation7 + $0x2bc] ss:$12 sps:$4 sm:$0xff]  }
  0xbe   : > { %4713 = vmatprep.subr.bf16.mxu0 %v7994_v59  ;;  %v443_v59 = vld [vmem:[%s9062_s19 + $0x3c0] sm:$0xff]  ;;  %v8093_v53 = vld [vmem:[#allocation7 + $0x73c] ss:$12 sps:$4 sm:$0xff]  }
  0xc0   : > { %4495 = vmatpush1.bf16.msra.mxu1 %v7996_v60  ;;  %v425_v60 = vld [vmem:[%s9062_s19 + $0x330] sm:$0xff] }
  0xc1   : > { %4714 = vmatpush1.bf16.msra.mxu0 %v7997_v61  ;;  %4496 = vmatprep.subr.bf16.mxu1 %v7998_v62  ;;  %v9135_v61 = vpack.c.bf16 %v443_v59, %v419_v58  ;;  %v449_v62 = vld [vmem:[%s9062_s19 + $0x3f0] sm:$0xff] }
  0xc2   : > { %4715 = vmatprep.subr.bf16.mxu0 %v8000_v63  ;;  %v9139_v63 = vpack.c.bf16 %v449_v62, %v425_v60  ;;  %v8096_v58 = vld [vmem:[#allocation7 + $0x2d4] ss:$12 sps:$4 sm:$0xff]   ;;  %v8094_v60 = vld [vmem:[#allocation7 + $0x2d0] ss:$12 sps:$4 sm:$0xff]  }
  0xc3   : > { %v8099_v59 = vld [vmem:[#allocation7 + $0x754] ss:$12 sps:$4 sm:$0xff]   ;;  %v8097_v62 = vld [vmem:[#allocation7 + $0x750] ss:$12 sps:$4 sm:$0xff]  }
  0xc4   : > { %4497 = vmatpush1.bf16.msra.mxu1 %v8002_v0  ;;  %v8046_v0 = vld [vmem:[#allocation7 + $0x210] ss:$12 sps:$4 sm:$0xff]  }
  0xc5   : > { %4716 = vmatpush1.bf16.msra.mxu0 %v8003_v1  ;;  %4498 = vmatprep.subr.bf16.mxu1 %v8004_v2  ;;  %v8049_v1 = vld [vmem:[#allocation7 + $0x690] ss:$12 sps:$4 sm:$0xff]   ;;  %v468_v2 = vld [vmem:[%s9062_s19 + $0x488] sm:$0xff] }
  0xc6   : > { %4717 = vmatprep.subr.bf16.mxu0 %v8006_v3  ;;  %v492_v3 = vld [vmem:[%s9062_s19 + $0x548] sm:$0xff] }
  0xc7   : > { %v9144_v6 = vpack.c.bf16 %v492_v3, %v468_v2  ;;  %v8100_v2 = vld [vmem:[#allocation7 + $0x2e8] ss:$12 sps:$4 sm:$0xff]  }
  0xc8   : > { %4499 = vmatpush1.bf16.msra.mxu1 %v8008_v4  ;;  %v8054_v4 = vld [vmem:[#allocation7 + $0x22c] ss:$12 sps:$4 sm:$0xff]   ;;  %v8103_v3 = vld [vmem:[#allocation7 + $0x768] ss:$12 sps:$4 sm:$0xff]  }
  0xc9   : > { %4718 = vmatpush1.bf16.msra.mxu0 %v8009_v5  ;;  %4541 = vmatprep.subr.bf16.mxu1 %v8012_v7  ;;  %v8057_v5 = vld [vmem:[#allocation7 + $0x6ac] ss:$12 sps:$4 sm:$0xff]   ;;  %v8052_v7 = vld [vmem:[#allocation7 + $0x228] ss:$12 sps:$4 sm:$0xff]  }
  0xca   : > { %4760 = vmatprep.subr.bf16.mxu0 %v8015_v11  ;;  %v8060_v11 = vld [vmem:[#allocation7 + $0x244] ss:$12 sps:$4 sm:$0xff]  }
  0xcb   : > { %4501 = vmatmul.mubr.bf16.vlgmr.msra.gmra.mrb[0].mxu1 %v9097_v14 }
  0xcc   : > { %4720 = vmatmul.mubr.bf16.vlgmr.msra.gmra.mrb[0].mxu0 %v9099_v15  ;;  %4542 = vmatpush1.bf16.msra.mxu1 %v8010_v12  ;;  %v8063_v12 = vld [vmem:[#allocation7 + $0x6c4] ss:$12 sps:$4 sm:$0xff]  }
  0xcd   : > { %4761 = vmatpush1.bf16.msra.mxu0 %v8013_v13  ;;  %4543 = vmatprep.subr.bf16.mxu1 %v8018_v16  ;;  %v9150_v13 = vpack.c.bf16 %v498_v10, %v474_v9  ;;  %v467_v16 = vld [vmem:[%s9062_s19 + $0x480] sm:$0xff] }
  0xce   : > { %4762 = vmatprep.subr.bf16.mxu0 %v8021_v17  ;;  %4510 = vmatprep.mubr.bf16.mxu1 %v9105_v28  ;;  %v491_v17 = vld [vmem:[%s9062_s19 + $0x540] sm:$0xff] }
  0xcf   : > { %4729 = vmatprep.mubr.bf16.mxu0 %v9110_v35  ;;  %v8108_v9 = vld [vmem:[#allocation7 + $0x304] ss:$12 sps:$4 sm:$0xff]  }
  0xd0   : > { %4544 = vmatpush1.bf16.msra.mxu1 %v8016_v18  ;;  %v473_v18 = vld [vmem:[%s9062_s19 + $0x4b0] sm:$0xff] }
  0xd1   : > { %4763 = vmatpush1.bf16.msra.mxu0 %v8019_v19  ;;  %4545 = vmatprep.subr.bf16.mxu1 %v8024_v20  ;;  %v9155_v19 = vpack.c.bf16 %v491_v17, %v467_v16  ;;  %v497_v20 = vld [vmem:[%s9062_s19 + $0x570] sm:$0xff] }
  0xd2   : > { %4764 = vmatprep.subr.bf16.mxu0 %v8027_v21  ;;  %v9159_v21 = vpack.c.bf16 %v497_v20, %v473_v18  ;;  %v8111_v10 = vld [vmem:[#allocation7 + $0x784] ss:$12 sps:$4 sm:$0xff]   ;;  %v374_v18 = vld [vmem:[%s9062_s19 + $0x198] sm:$0xff] }
  0xd3   : > { %4511 = vmatmul.mubr.bf16.gmra.mrb[4].mxu1 %v9115_v39  ;;  %v398_v20 = vld [vmem:[%s9062_s19 + $0x258] sm:$0xff] }
  0xd4   : > { %4546 = vmatpush1.bf16.msra.mxu1 %v8022_v22  ;;  %4730 = vmatmul.mubr.bf16.gmra.mrb[4].mxu0 %v9119_v41  ;;  %v8058_v22 = vld [vmem:[#allocation7 + $0x240] ss:$12 sps:$4 sm:$0xff]  }
  0xd5   : > { %4765 = vmatpush1.bf16.msra.mxu0 %v8025_v23  ;;  %4547 = vmatprep.subr.bf16.mxu1 %v8030_v26  ;;  %v8061_v23 = vld [vmem:[#allocation7 + $0x6c0] ss:$12 sps:$4 sm:$0xff]   ;;  %v8066_v26 = vld [vmem:[#allocation7 + $0x25c] ss:$12 sps:$4 sm:$0xff]  }
  0xd6   : > { %4766 = vmatprep.subr.bf16.mxu0 %v8033_v27  ;;  %4520 = vmatprep.mubr.bf16.mxu1 %v9124_v48  ;;  %v8069_v27 = vld [vmem:[#allocation7 + $0x6dc] ss:$12 sps:$4 sm:$0xff]  }
  0xd7   : > { %4739 = vmatprep.mubr.bf16.mxu0 %v9130_v57 }
  0xd8   : > { %4548 = vmatpush1.bf16.msra.mxu1 %v8028_v29  ;;  %v9164_v29 = vpack.c.bf16 %v350_v25, %v326_v24  ;;  %v8114_v24 = vld [vmem:[#allocation7 + $0x31c] ss:$12 sps:$4 sm:$0xff]  }
  0xd9   : > { %4767 = vmatpush1.bf16.msra.mxu0 %v8031_v30  ;;  %4549 = vmatprep.subr.bf16.mxu1 %v8036_v33  ;;  %v332_v30 = vld [vmem:[%s9062_s19 + $0x48] sm:$0xff]  ;;  %v8064_v33 = vld [vmem:[#allocation7 + $0x258] ss:$12 sps:$4 sm:$0xff]  }
  0xda   : > { %4768 = vmatprep.subr.bf16.mxu0 %v8039_v34  ;;  %v9170_v32 = vpack.c.bf16 %v356_v31, %v332_v30  ;;  %v8067_v34 = vld [vmem:[#allocation7 + $0x6d8] ss:$12 sps:$4 sm:$0xff]   ;;  %v8117_v25 = vld [vmem:[#allocation7 + $0x79c] ss:$12 sps:$4 sm:$0xff]   ;;  %v9185_v30 = vpack.c.bf16 %v398_v20, %v374_v18  ;;  %v373_v31 = vld [vmem:[%s9062_s19 + $0x190] sm:$0xff] }
  0xdb   : > { %4521 = vmatmul.mubr.bf16.gmra.mrb[8].mxu1 %v9135_v61  ;;  %v8138_v18 = vld [vmem:[#allocation7 + $0x37c] ss:$12 sps:$4 sm:$0xff]  }
  0xdc   : > { %4550 = vmatpush1.bf16.msra.mxu1 %v8034_v42  ;;  %4740 = vmatmul.mubr.bf16.gmra.mrb[8].mxu0 %v9139_v63  ;;  %v8078_v42 = vld [vmem:[#allocation7 + $0x28c] ss:$12 sps:$4 sm:$0xff]   ;;  %v8141_v20 = vld [vmem:[#allocation7 + $0x7fc] ss:$12 sps:$4 sm:$0xff]  }
  0xdd   : > { %4769 = vmatpush1.bf16.msra.mxu0 %v8037_v43  ;;  %4551 = vmatprep.subr.bf16.mxu1 %v8042_v46  ;;  %v8081_v43 = vld [vmem:[#allocation7 + $0x70c] ss:$12 sps:$4 sm:$0xff]   ;;  %v8084_v46 = vld [vmem:[#allocation7 + $0x2a4] ss:$12 sps:$4 sm:$0xff]  }
  0xde   : > { %4770 = vmatprep.subr.bf16.mxu0 %v8045_v47  ;;  %4530 = vmatprep.mubr.bf16.mxu1 %v9144_v6  ;;  %v8087_v47 = vld [vmem:[#allocation7 + $0x724] ss:$12 sps:$4 sm:$0xff]  }
  0xdf   : > { %4749 = vmatprep.mubr.bf16.mxu0 %v9150_v13 }
  0xe0   : > { %4552 = vmatpush1.bf16.msra.mxu1 %v8040_v49  ;;  %v8082_v49 = vld [vmem:[#allocation7 + $0x2a0] ss:$12 sps:$4 sm:$0xff]  }
  0xe1   : > { %4771 = vmatpush1.bf16.msra.mxu0 %v8043_v50  ;;  %4553 = vmatprep.subr.bf16.mxu1 %v8048_v54  ;;  %v8085_v50 = vld [vmem:[#allocation7 + $0x720] ss:$12 sps:$4 sm:$0xff]   ;;  %v8088_v54 = vld [vmem:[#allocation7 + $0x2b8] ss:$12 sps:$4 sm:$0xff]  }
  0xe2   : > { %4772 = vmatprep.subr.bf16.mxu0 %v8051_v56  ;;  %v8091_v56 = vld [vmem:[#allocation7 + $0x738] ss:$12 sps:$4 sm:$0xff]  }
  0xe3   : > { %4531 = vmatmul.mubr.bf16.gmra.mrb[12].mxu1 %v9155_v19 }
  0xe4   : > { %4554 = vmatpush1.bf16.msra.mxu1 %v8046_v0  ;;  %4750 = vmatmul.mubr.bf16.gmra.mrb[12].mxu0 %v9159_v21  ;;  %v8102_v0 = vld [vmem:[#allocation7 + $0x2ec] ss:$12 sps:$4 sm:$0xff]  }
  0xe5   : > { %4773 = vmatpush1.bf16.msra.mxu0 %v8049_v1  ;;  %4555 = vmatprep.subr.bf16.mxu1 %v8054_v4  ;;  %v8105_v1 = vld [vmem:[#allocation7 + $0x76c] ss:$12 sps:$4 sm:$0xff]   ;;  %v325_v4 = vld [vmem:[%s9062_s19 + $0x10] sm:$0xff] }
  0xe6   : > { %4774 = vmatprep.subr.bf16.mxu0 %v8057_v5  ;;  %4573 = vmatprep.mubr.bf16.mxu1 %v9164_v29  ;;  %v349_v5 = vld [vmem:[%s9062_s19 + $0xd0] sm:$0xff] }
  0xe7   : > { %4792 = vmatprep.mubr.bf16.mxu0 %v9170_v32  ;;  %v9177_v16 = vpack.c.bf16 %v349_v5, %v325_v4  ;;  %v8130_v4 = vld [vmem:[#allocation7 + $0x360] ss:$12 sps:$4 sm:$0xff]  }
  0xe8   : > { %4556 = vmatpush1.bf16.msra.mxu1 %v8052_v7  ;;  %v331_v7 = vld [vmem:[%s9062_s19 + $0x40] sm:$0xff] }
  0xe9   : > { %4775 = vmatpush1.bf16.msra.mxu0 %v8055_v8  ;;  %4557 = vmatprep.subr.bf16.mxu1 %v8060_v11  ;;  %v355_v8 = vld [vmem:[%s9062_s19 + $0x100] sm:$0xff] }
  0xea   : > { %4776 = vmatprep.subr.bf16.mxu0 %v8063_v12  ;;  %v8106_v11 = vld [vmem:[#allocation7 + $0x300] ss:$12 sps:$4 sm:$0xff]   ;;  %v9179_v17 = vpack.c.bf16 %v355_v8, %v331_v7 }
  0xeb   : > { %v8109_v12 = vld [vmem:[#allocation7 + $0x780] ss:$12 sps:$4 sm:$0xff]  }
  0xec   : > { %4558 = vmatpush1.bf16.msra.mxu1 %v8058_v22  ;;  %v380_v22 = vld [vmem:[%s9062_s19 + $0x1c8] sm:$0xff] }
  0xed   : > { %4777 = vmatpush1.bf16.msra.mxu0 %v8061_v23  ;;  %4559 = vmatprep.subr.bf16.mxu1 %v8066_v26  ;;  %v404_v23 = vld [vmem:[%s9062_s19 + $0x288] sm:$0xff]  ;;  %v8112_v26 = vld [vmem:[#allocation7 + $0x318] ss:$12 sps:$4 sm:$0xff]  }
  0xee   : > { %4778 = vmatprep.subr.bf16.mxu0 %v8069_v27  ;;  %v8115_v27 = vld [vmem:[#allocation7 + $0x798] ss:$12 sps:$4 sm:$0xff]   ;;  %v8133_v5 = vld [vmem:[#allocation7 + $0x7e0] ss:$12 sps:$4 sm:$0xff]  }
  0xf0   : > { %4560 = vmatpush1.bf16.msra.mxu1 %v8064_v33  ;;  %v9188_v33 = vpack.c.bf16 %v404_v23, %v380_v22  ;;  %v8136_v22 = vld [vmem:[#allocation7 + $0x378] ss:$12 sps:$4 sm:$0xff]  }
  0xf1   : > { %4779 = vmatpush1.bf16.msra.mxu0 %v8067_v34  ;;  %4561 = vmatprep.subr.bf16.mxu1 %v8072_v36  ;;  %v397_v34 = vld [vmem:[%s9062_s19 + $0x250] sm:$0xff]  ;;  %v379_v36 = vld [vmem:[%s9062_s19 + $0x1c0] sm:$0xff] }
  0xf2   : > { %4780 = vmatprep.subr.bf16.mxu0 %v8075_v37  ;;  %v403_v37 = vld [vmem:[%s9062_s19 + $0x280] sm:$0xff] }
  0xf3   : > { %v8139_v23 = vld [vmem:[#allocation7 + $0x7f8] ss:$12 sps:$4 sm:$0xff]  }
  0xf4   : > { %4562 = vmatpush1.bf16.msra.mxu1 %v8070_v38  ;;  %v8120_v38 = vld [vmem:[#allocation7 + $0x334] ss:$12 sps:$4 sm:$0xff]  }
  0xf5   : > { %4781 = vmatpush1.bf16.msra.mxu0 %v8073_v40  ;;  %4563 = vmatprep.subr.bf16.mxu1 %v8078_v42  ;;  %v8123_v40 = vld [vmem:[#allocation7 + $0x7b4] ss:$12 sps:$4 sm:$0xff]   ;;  %v8118_v42 = vld [vmem:[#allocation7 + $0x330] ss:$12 sps:$4 sm:$0xff]  }
  0xf6   : > { %4782 = vmatprep.subr.bf16.mxu0 %v8081_v43  ;;  %v8121_v43 = vld [vmem:[#allocation7 + $0x7b0] ss:$12 sps:$4 sm:$0xff]  }
  0xf8   : > { %4564 = vmatpush1.bf16.msra.mxu1 %v8076_v44  ;;  %v9197_v44 = vpack.c.bf16 %v397_v34, %v373_v31  ;;  %v475_v31 = vld [vmem:[%s9062_s19 + $0x4c0] sm:$0xff] }
  0xf9   : > { %4783 = vmatpush1.bf16.msra.mxu0 %v8079_v45  ;;  %4565 = vmatprep.subr.bf16.mxu1 %v8084_v46  ;;  %v9199_v45 = vpack.c.bf16 %v403_v37, %v379_v36  ;;  %v422_v46 = vld [vmem:[%s9062_s19 + $0x318] sm:$0xff]  ;;  %v499_v34 = vld [vmem:[%s9062_s19 + $0x580] sm:$0xff] }
  0xfa   : > { %4784 = vmatprep.subr.bf16.mxu0 %v8087_v47  ;;  %v446_v47 = vld [vmem:[%s9062_s19 + $0x3d8] sm:$0xff]  ;;  %v8144_v36 = vld [vmem:[#allocation7 + $0x394] ss:$12 sps:$4 sm:$0xff]  }
  0xfb   : > { %v8147_v37 = vld [vmem:[#allocation7 + $0x814] ss:$12 sps:$4 sm:$0xff]  }
  0xfc   : > { %4566 = vmatpush1.bf16.msra.mxu1 %v8082_v49  ;;  %v428_v49 = vld [vmem:[%s9062_s19 + $0x348] sm:$0xff] }
  0xfd   : > { %4785 = vmatpush1.bf16.msra.mxu0 %v8085_v50  ;;  %4567 = vmatprep.subr.bf16.mxu1 %v8090_v51  ;;  %v452_v50 = vld [vmem:[%s9062_s19 + $0x408] sm:$0xff] }
  0xfe   : > { %4786 = vmatprep.subr.bf16.mxu0 %v8093_v53  ;;  %v8126_v51 = vld [vmem:[#allocation7 + $0x34c] ss:$12 sps:$4 sm:$0xff]  }
  0xff   : > { %v8129_v53 = vld [vmem:[#allocation7 + $0x7cc] ss:$12 sps:$4 sm:$0xff]  }
 0x100   : > { %4568 = vmatpush1.bf16.msra.mxu1 %v8088_v54  ;;  %v8124_v54 = vld [vmem:[#allocation7 + $0x348] ss:$12 sps:$4 sm:$0xff]  }
 0x101   : > { %4787 = vmatpush1.bf16.msra.mxu0 %v8091_v56  ;;  %4569 = vmatprep.subr.bf16.mxu1 %v8096_v58  ;;  %v8127_v56 = vld [vmem:[#allocation7 + $0x7c8] ss:$12 sps:$4 sm:$0xff]   ;;  %v9205_v58 = vpack.c.bf16 %v446_v47, %v422_v46  ;;  %v9242_v46 = vpack.c.bf16 %v499_v34, %v475_v31  ;;  %v358_v47 = vld [vmem:[%s9062_s19 + $0x118] sm:$0xff]  ;;  %v8180_v31 = vld [vmem:[#allocation7 + $0x424] ss:$12 sps:$4 sm:$0xff]  }
 0x102   : > { %4788 = vmatprep.subr.bf16.mxu0 %v8099_v59  ;;  %v421_v59 = vld [vmem:[%s9062_s19 + $0x310] sm:$0xff] }
 0x103   : > { %v8183_v34 = vld [vmem:[#allocation7 + $0x8a4] ss:$12 sps:$4 sm:$0xff]  }
 0x104   : > { %4570 = vmatpush1.bf16.msra.mxu1 %v8094_v60  ;;  %v9208_v60 = vpack.c.bf16 %v452_v50, %v428_v49  ;;  %v8142_v49 = vld [vmem:[#allocation7 + $0x390] ss:$12 sps:$4 sm:$0xff]  }
 0x105   : > { %4789 = vmatpush1.bf16.msra.mxu0 %v8097_v62  ;;  %4571 = vmatprep.subr.bf16.mxu1 %v8102_v0  ;;  %v445_v62 = vld [vmem:[%s9062_s19 + $0x3d0] sm:$0xff]  ;;  %v427_v0 = vld [vmem:[%s9062_s19 + $0x340] sm:$0xff] }
 0x106   : > { %4790 = vmatprep.subr.bf16.mxu0 %v8105_v1  ;;  %v451_v1 = vld [vmem:[%s9062_s19 + $0x400] sm:$0xff]  ;;  %v9217_v7 = vpack.c.bf16 %v445_v62, %v421_v59  ;;  %v8145_v50 = vld [vmem:[#allocation7 + $0x810] ss:$12 sps:$4 sm:$0xff]   ;;  %v8148_v59 = vld [vmem:[#allocation7 + $0x3a8] ss:$12 sps:$4 sm:$0xff]  }
 0x107   : > { %v9219_v8 = vpack.c.bf16 %v451_v1, %v427_v0  ;;  %v8151_v62 = vld [vmem:[#allocation7 + $0x828] ss:$12 sps:$4 sm:$0xff]   ;;  %v8156_v0 = vld [vmem:[#allocation7 + $0x3c4] ss:$12 sps:$4 sm:$0xff]  }
 0x108   : > { %4572 = vmatpush1.bf16.msra.mxu1 %v8100_v2  ;;  %v8132_v2 = vld [vmem:[#allocation7 + $0x364] ss:$12 sps:$4 sm:$0xff]  }
 0x109   : > { %4791 = vmatpush1.bf16.msra.mxu0 %v8103_v3  ;;  %4614 = vmatprep.subr.bf16.mxu1 %v8108_v9  ;;  %v8135_v3 = vld [vmem:[#allocation7 + $0x7e4] ss:$12 sps:$4 sm:$0xff]   ;;  %v470_v9 = vld [vmem:[%s9062_s19 + $0x498] sm:$0xff] }
 0x10a   : > { %4833 = vmatprep.subr.bf16.mxu0 %v8111_v10  ;;  %v494_v10 = vld [vmem:[%s9062_s19 + $0x558] sm:$0xff]  ;;  %v8159_v1 = vld [vmem:[#allocation7 + $0x844] ss:$12 sps:$4 sm:$0xff]  }
 0x10b   : > { %4574 = vmatmul.mubr.bf16.vlgmr.msra.gmra.mrb[0].mxu1 %v9177_v16 }
 0x10c   : > { %4793 = vmatmul.mubr.bf16.vlgmr.msra.gmra.mrb[0].mxu0 %v9179_v17  ;;  %4615 = vmatpush1.bf16.msra.mxu1 %v8106_v11  ;;  %v476_v11 = vld [vmem:[%s9062_s19 + $0x4c8] sm:$0xff] }
 0x10d   : > { %4834 = vmatpush1.bf16.msra.mxu0 %v8109_v12  ;;  %4616 = vmatprep.subr.bf16.mxu1 %v8114_v24  ;;  %v500_v12 = vld [vmem:[%s9062_s19 + $0x588] sm:$0xff]  ;;  %v9225_v24 = vpack.c.bf16 %v494_v10, %v470_v9  ;;  %v8160_v9 = vld [vmem:[#allocation7 + $0x3d8] ss:$12 sps:$4 sm:$0xff]  }
 0x10e   : > { %4835 = vmatprep.subr.bf16.mxu0 %v8117_v25  ;;  %4583 = vmatprep.mubr.bf16.mxu1 %v9185_v30  ;;  %v469_v25 = vld [vmem:[%s9062_s19 + $0x490] sm:$0xff]  ;;  %v8163_v10 = vld [vmem:[#allocation7 + $0x858] ss:$12 sps:$4 sm:$0xff]  }
 0x10f   : > { %4802 = vmatprep.mubr.bf16.mxu0 %v9188_v33 }
 0x110   : > { %4617 = vmatpush1.bf16.msra.mxu1 %v8112_v26  ;;  %v9228_v26 = vpack.c.bf16 %v500_v12, %v476_v11  ;;  %v8168_v11 = vld [vmem:[#allocation7 + $0x3f4] ss:$12 sps:$4 sm:$0xff]  }
 0x111   : > { %4836 = vmatpush1.bf16.msra.mxu0 %v8115_v27  ;;  %4618 = vmatprep.subr.bf16.mxu1 %v8120_v38  ;;  %v493_v27 = vld [vmem:[%s9062_s19 + $0x550] sm:$0xff]  ;;  %v328_v38 = vld [vmem:[%s9062_s19 + $0x28] sm:$0xff] }
 0x112   : > { %4837 = vmatprep.subr.bf16.mxu0 %v8123_v40  ;;  %v352_v40 = vld [vmem:[%s9062_s19 + $0xe8] sm:$0xff]  ;;  %v8171_v12 = vld [vmem:[#allocation7 + $0x874] ss:$12 sps:$4 sm:$0xff]  }
 0x113   : > { %4584 = vmatmul.mubr.bf16.gmra.mrb[4].mxu1 %v9197_v44 }
 0x114   : > { %4803 = vmatmul.mubr.bf16.gmra.mrb[4].mxu0 %v9199_v45  ;;  %4619 = vmatpush1.bf16.msra.mxu1 %v8118_v42  ;;  %v334_v42 = vld [vmem:[%s9062_s19 + $0x58] sm:$0xff] }
 0x115   : > { %4838 = vmatpush1.bf16.msra.mxu0 %v8121_v43  ;;  %4620 = vmatprep.subr.bf16.mxu1 %v8126_v51  ;;  %v9240_v43 = vpack.c.bf16 %v493_v27, %v469_v25  ;;  %v8150_v51 = vld [vmem:[#allocation7 + $0x3ac] ss:$12 sps:$4 sm:$0xff]   ;;  %v8172_v25 = vld [vmem:[#allocation7 + $0x408] ss:$12 sps:$4 sm:$0xff]  }
 0x116   : > { %4839 = vmatprep.subr.bf16.mxu0 %v8129_v53  ;;  %4593 = vmatprep.mubr.bf16.mxu1 %v9205_v58  ;;  %v8153_v53 = vld [vmem:[#allocation7 + $0x82c] ss:$12 sps:$4 sm:$0xff]   ;;  %v8175_v27 = vld [vmem:[#allocation7 + $0x888] ss:$12 sps:$4 sm:$0xff]  }
 0x117   : > { %4812 = vmatprep.mubr.bf16.mxu0 %v9208_v60 }
 0x118   : > { %4621 = vmatpush1.bf16.msra.mxu1 %v8124_v54  ;;  %v9245_v54 = vpack.c.bf16 %v352_v40, %v328_v38  ;;  %v8186_v38 = vld [vmem:[#allocation7 + $0x43c] ss:$12 sps:$4 sm:$0xff]  }
 0x119   : > { %4840 = vmatpush1.bf16.msra.mxu0 %v8127_v56  ;;  %4622 = vmatprep.subr.bf16.mxu1 %v8132_v2  ;;  %v9247_v56 = vpack.c.bf16 %v358_v47, %v334_v42  ;;  %v8154_v2 = vld [vmem:[#allocation7 + $0x3c0] ss:$12 sps:$4 sm:$0xff]   ;;  %v8189_v40 = vld [vmem:[#allocation7 + $0x8bc] ss:$12 sps:$4 sm:$0xff]   ;;  %v8184_v42 = vld [vmem:[#allocation7 + $0x438] ss:$12 sps:$4 sm:$0xff]  }
 0x11a   : > { %4841 = vmatprep.subr.bf16.mxu0 %v8135_v3  ;;  %v8157_v3 = vld [vmem:[#allocation7 + $0x840] ss:$12 sps:$4 sm:$0xff]   ;;  %v8187_v47 = vld [vmem:[#allocation7 + $0x8b8] ss:$12 sps:$4 sm:$0xff]  }
 0x11b   : > { %4594 = vmatmul.mubr.bf16.gmra.mrb[8].mxu1 %v9217_v7 }
 0x11c   : > { %4813 = vmatmul.mubr.bf16.gmra.mrb[8].mxu0 %v9219_v8  ;;  %4623 = vmatpush1.bf16.msra.mxu1 %v8130_v4  ;;  %v8162_v4 = vld [vmem:[#allocation7 + $0x3dc] ss:$12 sps:$4 sm:$0xff]  }
 0x11d   : > { %4842 = vmatpush1.bf16.msra.mxu0 %v8133_v5  ;;  %4624 = vmatprep.subr.bf16.mxu1 %v8138_v18  ;;  %v8165_v5 = vld [vmem:[#allocation7 + $0x85c] ss:$12 sps:$4 sm:$0xff]  }
 0x11e   : > { %4843 = vmatprep.subr.bf16.mxu0 %v8141_v20  ;;  %4603 = vmatprep.mubr.bf16.mxu1 %v9225_v24  ;;  %v8166_v18 = vld [vmem:[#allocation7 + $0x3f0] ss:$12 sps:$4 sm:$0xff]  }
 0x11f   : > { %4822 = vmatprep.mubr.bf16.mxu0 %v9228_v26  ;;  %v8169_v20 = vld [vmem:[#allocation7 + $0x870] ss:$12 sps:$4 sm:$0xff]  }
 0x120   : > { %4625 = vmatpush1.bf16.msra.mxu1 %v8136_v22  ;;  %v8174_v22 = vld [vmem:[#allocation7 + $0x40c] ss:$12 sps:$4 sm:$0xff]  }
 0x121   : > { %4844 = vmatpush1.bf16.msra.mxu0 %v8139_v23  ;;  %4626 = vmatprep.subr.bf16.mxu1 %v8144_v36  ;;  %v8177_v23 = vld [vmem:[#allocation7 + $0x88c] ss:$12 sps:$4 sm:$0xff]  }
 0x122   : > { %4845 = vmatprep.subr.bf16.mxu0 %v8147_v37  ;;  %v8178_v36 = vld [vmem:[#allocation7 + $0x420] ss:$12 sps:$4 sm:$0xff]  }
 0x123   : > { %4604 = vmatmul.mubr.bf16.gmra.mrb[12].mxu1 %v9240_v43  ;;  %v8181_v37 = vld [vmem:[#allocation7 + $0x8a0] ss:$12 sps:$4 sm:$0xff]  }
 0x124   : > { %4823 = vmatmul.mubr.bf16.gmra.mrb[12].mxu0 %v9242_v46  ;;  %4627 = vmatpush1.bf16.msra.mxu1 %v8142_v49  ;;  %v8192_v49 = vld [vmem:[#allocation7 + $0x454] ss:$12 sps:$4 sm:$0xff]  }
 0x125   : > { %4846 = vmatpush1.bf16.msra.mxu0 %v8145_v50  ;;  %4628 = vmatprep.subr.bf16.mxu1 %v8150_v51  ;;  %v8195_v50 = vld [vmem:[#allocation7 + $0x8d4] ss:$12 sps:$4 sm:$0xff]   ;;  %v8190_v51 = vld [vmem:[#allocation7 + $0x450] ss:$12 sps:$4 sm:$0xff]  }
 0x126   : > { %4847 = vmatprep.subr.bf16.mxu0 %v8153_v53  ;;  %4646 = vmatprep.mubr.bf16.mxu1 %v9245_v54  ;;  %v8193_v53 = vld [vmem:[#allocation7 + $0x8d0] ss:$12 sps:$4 sm:$0xff]  }
 0x127   : > { %4865 = vmatprep.mubr.bf16.mxu0 %v9247_v56 }
 0x128   : > { %4629 = vmatpush1.bf16.msra.mxu1 %v8148_v59  ;;  %v8198_v59 = vld [vmem:[#allocation7 + $0x46c] ss:$12 sps:$4 sm:$0xff]  }
 0x129   : > { %4848 = vmatpush1.bf16.msra.mxu0 %v8151_v62  ;;  %4630 = vmatprep.subr.bf16.mxu1 %v8156_v0  ;;  %v8201_v62 = vld [vmem:[#allocation7 + $0x8ec] ss:$12 sps:$4 sm:$0xff]   ;;  %v8196_v0 = vld [vmem:[#allocation7 + $0x468] ss:$12 sps:$4 sm:$0xff]  }
 0x12a   : > { %4849 = vmatprep.subr.bf16.mxu0 %v8159_v1  ;;  %v8199_v1 = vld [vmem:[#allocation7 + $0x8e8] ss:$12 sps:$4 sm:$0xff]  }
 0x12c   : > { %4631 = vmatpush1.bf16.msra.mxu1 %v8154_v2  ;;  %v327_v2 = vld [vmem:[%s9062_s19 + $0x20] sm:$0xff] }
 0x12d   : > { %4850 = vmatpush1.bf16.msra.mxu0 %v8157_v3  ;;  %4632 = vmatprep.subr.bf16.mxu1 %v8162_v4  ;;  %v351_v3 = vld [vmem:[%s9062_s19 + $0xe0] sm:$0xff] }
 0x12e   : > { %4851 = vmatprep.subr.bf16.mxu0 %v8165_v5  ;;  %v8204_v4 = vld [vmem:[#allocation7 + $0x904] ss:$12 sps:$4 sm:$0xff]  }
 0x12f   : > { %v333_v5 = vld [vmem:[%s9062_s19 + $0x50] sm:$0xff] }
 0x130   : > { %4633 = vmatpush1.bf16.msra.mxu1 %v8160_v9  ;;  %v357_v9 = vld [vmem:[%s9062_s19 + $0x110] sm:$0xff] }
 0x131   : > { %4852 = vmatpush1.bf16.msra.mxu0 %v8163_v10  ;;  %4634 = vmatprep.subr.bf16.mxu1 %v8168_v11  ;;  %v8205_v10 = vld [vmem:[#allocation7 + $0xc8] ss:$12 sps:$4 sm:$0xff]  }
 0x132   : > { %4853 = vmatprep.subr.bf16.mxu0 %v8171_v12  ;;  %v376_v11 = vld [vmem:[%s9062_s19 + $0x1a8] sm:$0xff] }
 0x133   : > { %v400_v12 = vld [vmem:[%s9062_s19 + $0x268] sm:$0xff] }
 0x134   : > { %4635 = vmatpush1.bf16.msra.mxu1 %v8166_v18  ;;  %v382_v18 = vld [vmem:[%s9062_s19 + $0x1d8] sm:$0xff] }
 0x135   : > { %4854 = vmatpush1.bf16.msra.mxu0 %v8169_v20  ;;  %4636 = vmatprep.subr.bf16.mxu1 %v8174_v22  ;;  %v9260_v20 = vpack.c.bf16 %v351_v3, %v327_v2  ;;  %v9262_v22 = vpack.c.bf16 %v357_v9, %v333_v5  ;;  %v454_v3 = vld [vmem:[%s9062_s19 + $0x418] sm:$0xff] }
 0x136   : > { %4855 = vmatprep.subr.bf16.mxu0 %v8177_v23  ;;  %v406_v23 = vld [vmem:[%s9062_s19 + $0x298] sm:$0xff] }
 0x137   : > { %v8216_v5 = vld [vmem:[#allocation7 + $0x38] ss:$12 sps:$4 sm:$0xff]  }
 0x138   : > { %4637 = vmatpush1.bf16.msra.mxu1 %v8172_v25  ;;  %v8202_v25 = vld [vmem:[#allocation7 + $0x900] ss:$12 sps:$4 sm:$0xff]  }
 0x139   : > { %4856 = vmatpush1.bf16.msra.mxu0 %v8175_v27  ;;  %4638 = vmatprep.subr.bf16.mxu1 %v8180_v31  ;;  %v8206_v27 = vld [vmem:[#allocation7 + $0x8] ss:$12 sps:$4 sm:$0xff]   ;;  %v8219_v9 = vld [vmem:[#allocation7 + $0x94c] ss:$12 sps:$4 sm:$0xff]  }
 0x13a   : > { %4857 = vmatprep.subr.bf16.mxu0 %v8183_v34  ;;  %v8209_v31 = vld [vmem:[#allocation7 + $0x91c] ss:$12 sps:$4 sm:$0xff]   ;;  %v8210_v34 = vld [vmem:[#allocation7 + $0xe0] ss:$12 sps:$4 sm:$0xff]  }
 0x13c   : > { %4639 = vmatpush1.bf16.msra.mxu1 %v8178_v36  ;;  %v8207_v36 = vld [vmem:[#allocation7 + $0x918] ss:$12 sps:$4 sm:$0xff]  }
 0x13d   : > { %4858 = vmatpush1.bf16.msra.mxu0 %v8181_v37  ;;  %4640 = vmatprep.subr.bf16.mxu1 %v8186_v38  ;;  %v8211_v37 = vld [vmem:[#allocation7 + $0x20] ss:$12 sps:$4 sm:$0xff]   ;;  %v9265_v38 = vpack.c.bf16 %v400_v12, %v376_v11  ;;  %v8217_v11 = vld [vmem:[#allocation7 + $0x948] ss:$12 sps:$4 sm:$0xff]   ;;  %v8221_v12 = vld [vmem:[#allocation7 + $0x50] ss:$12 sps:$4 sm:$0xff]  }
 0x13e   : > { %4859 = vmatprep.subr.bf16.mxu0 %v8189_v40  ;;  %v375_v40 = vld [vmem:[%s9062_s19 + $0x1a0] sm:$0xff] }
 0x140   : > { %4641 = vmatpush1.bf16.msra.mxu1 %v8184_v42  ;;  %v399_v42 = vld [vmem:[%s9062_s19 + $0x260] sm:$0xff] }
 0x141   : > { %4860 = vmatpush1.bf16.msra.mxu0 %v8187_v47  ;;  %4642 = vmatprep.subr.bf16.mxu1 %v8192_v49  ;;  %v9269_v47 = vpack.c.bf16 %v406_v23, %v382_v18  ;;  %v8214_v49 = vld [vmem:[#allocation7 + $0x934] ss:$12 sps:$4 sm:$0xff]  }
 0x142   : > { %4861 = vmatprep.subr.bf16.mxu0 %v8195_v50  ;;  %v381_v50 = vld [vmem:[%s9062_s19 + $0x1d0] sm:$0xff]  ;;  %v423_v23 = vld [vmem:[%s9062_s19 + $0x320] sm:$0xff] }
 0x144   : > { %4643 = vmatpush1.bf16.msra.mxu1 %v8190_v51  ;;  %v405_v51 = vld [vmem:[%s9062_s19 + $0x290] sm:$0xff] }
 0x145   : > { %4862 = vmatpush1.bf16.msra.mxu0 %v8193_v53  ;;  %4644 = vmatprep.subr.bf16.mxu1 %v8198_v59  ;;  %v8215_v53 = vld [vmem:[#allocation7 + $0xf8] ss:$12 sps:$4 sm:$0xff]   ;;  %v424_v59 = vld [vmem:[%s9062_s19 + $0x328] sm:$0xff]  ;;  %v9282_v2 = vpack.c.bf16 %v405_v51, %v381_v50 }
 0x146   : > { %4863 = vmatprep.subr.bf16.mxu0 %v8201_v62  ;;  %v448_v62 = vld [vmem:[%s9062_s19 + $0x3e8] sm:$0xff] }
 0x147   : > { %v9285_v18 = vpack.c.bf16 %v448_v62, %v424_v59  ;;  %v8222_v59 = vld [vmem:[#allocation7 + $0x960] ss:$12 sps:$4 sm:$0xff]   ;;  %v8226_v62 = vld [vmem:[#allocation7 + $0x68] ss:$12 sps:$4 sm:$0xff]  }
 0x148   : > { %4645 = vmatpush1.bf16.msra.mxu1 %v8196_v0  ;;  %v430_v0 = vld [vmem:[%s9062_s19 + $0x358] sm:$0xff] }
 0x149   : > { %4864 = vmatpush1.bf16.msra.mxu0 %v8199_v1  ;;  %7148 = vmatprep.subr.bf16.mxu1 %v8205_v10  ;;  %v9280_v1 = vpack.c.bf16 %v399_v42, %v375_v40  ;;  %v8220_v10 = vld [vmem:[#allocation7 + $0x110] ss:$12 sps:$4 sm:$0xff]   ;;  %v472_v40 = vld [vmem:[%s9062_s19 + $0x4a8] sm:$0xff] }
 0x14a   : > { %4906 = vmatprep.subr.bf16.mxu0 %v8204_v4  ;;  %v8212_v4 = vld [vmem:[#allocation7 + $0x930] ss:$12 sps:$4 sm:$0xff]   ;;  %v496_v42 = vld [vmem:[%s9062_s19 + $0x568] sm:$0xff] }
 0x14b   : > { %4647 = vmatmul.mubr.bf16.vlgmr.msra.gmra.mrb[0].mxu1 %v9260_v20 }
 0x14c   : > { %4866 = vmatmul.mubr.bf16.vlgmr.msra.gmra.mrb[0].mxu0 %v9262_v22  ;;  %7149 = vmatpush3.bf16.msra.mxu1 %v8206_v27  ;;  %v9289_v27 = vpack.c.bf16 %v454_v3, %v430_v0  ;;  %v8229_v0 = vld [vmem:[#allocation7 + $0x97c] ss:$12 sps:$4 sm:$0xff]   ;;  %v8230_v3 = vld [vmem:[#allocation7 + $0x140] ss:$12 sps:$4 sm:$0xff]  }
 0x14d   : > { %4907 = vmatpush1.bf16.msra.mxu0 %v8202_v25  ;;  %7150 = vmatprep.subr.bf16.mxu1 %v8210_v34  ;;  %v447_v25 = vld [vmem:[%s9062_s19 + $0x3e0] sm:$0xff]  ;;  %v429_v34 = vld [vmem:[%s9062_s19 + $0x350] sm:$0xff] }
 0x14e   : > { %4908 = vmatprep.subr.bf16.mxu0 %v8209_v31  ;;  %4656 = vmatprep.mubr.bf16.mxu1 %v9265_v38  ;;  %v8224_v31 = vld [vmem:[#allocation7 + $0x964] ss:$12 sps:$4 sm:$0xff]   ;;  %v9300_v50 = vpack.c.bf16 %v447_v25, %v423_v23 }
 0x14f   : > { %4875 = vmatprep.mubr.bf16.mxu0 %v9269_v47  ;;  %v495_v23 = vld [vmem:[%s9062_s19 + $0x560] sm:$0xff] }
 0x150   : > { %7151 = vmatpush3.bf16.msra.mxu1 %v8211_v37  ;;  %v8225_v37 = vld [vmem:[#allocation7 + $0x128] ss:$12 sps:$4 sm:$0xff]  }
 0x151   : > { %4909 = vmatpush1.bf16.msra.mxu0 %v8207_v36  ;;  %7152 = vmatprep.subr.bf16.mxu1 %v8215_v53  ;;  %v453_v36 = vld [vmem:[%s9062_s19 + $0x410] sm:$0xff]  ;;  %v502_v53 = vld [vmem:[%s9062_s19 + $0x598] sm:$0xff] }
 0x152   : > { %4910 = vmatprep.subr.bf16.mxu0 %v8214_v49  ;;  %v478_v49 = vld [vmem:[%s9062_s19 + $0x4d8] sm:$0xff]  ;;  %v9302_v51 = vpack.c.bf16 %v453_v36, %v429_v34  ;;  %v336_v36 = vld [vmem:[%s9062_s19 + $0x68] sm:$0xff] }
 0x153   : > { %4657 = vmatmul.mubr.bf16.gmra.mrb[4].mxu1 %v9280_v1  ;;  %v9309_v25 = vpack.c.bf16 %v502_v53, %v478_v49  ;;  %v8235_v34 = vld [vmem:[#allocation7 + $0x158] ss:$12 sps:$4 sm:$0xff]   ;;  %v8232_v49 = vld [vmem:[#allocation7 + $0x990] ss:$12 sps:$4 sm:$0xff]  }
 0x154   : > { %4876 = vmatmul.mubr.bf16.gmra.mrb[4].mxu0 %v9282_v2  ;;  %7153 = vmatpush3.bf16.msra.mxu1 %v8216_v5  ;;  %v8231_v5 = vld [vmem:[#allocation7 + $0x80] ss:$12 sps:$4 sm:$0xff]   ;;  %v8236_v53 = vld [vmem:[#allocation7 + $0x98] ss:$12 sps:$4 sm:$0xff]  }
 0x155   : > { %4911 = vmatpush1.bf16.msra.mxu0 %v8212_v4  ;;  %7154 = vmatprep.subr.bf16.mxu1 %v8220_v10  ;;  %v8227_v4 = vld [vmem:[#allocation7 + $0x978] ss:$12 sps:$4 sm:$0xff]   ;;  %10071 = vst [vmem:[#allocation13_spill] sm:$0xff] %v9309_v25 }
 0x156   : > { %4912 = vmatprep.subr.bf16.mxu0 %v8219_v9  ;;  %4666 = vmatprep.mubr.bf16.mxu1 %v9285_v18  ;;  %v9305_v9 = vpack.c.bf16 %v496_v42, %v472_v40  ;;  %v471_v10 = vld [vmem:[%s9062_s19 + $0x4a0] sm:$0xff]  ;;  %v360_v42 = vld [vmem:[%s9062_s19 + $0x128] sm:$0xff] }
 0x157   : > { %4885 = vmatprep.mubr.bf16.mxu0 %v9289_v27 }
 0x158   : > { %7155 = vmatpush3.bf16.msra.mxu1 %v8221_v12  ;;  %v501_v12 = vld [vmem:[%s9062_s19 + $0x590] sm:$0xff] }
 0x159   : > { %4913 = vmatpush1.bf16.msra.mxu0 %v8217_v11  ;;  %7156 = vmatprep.subr.bf16.mxu1 %v8225_v37  ;;  %v477_v11 = vld [vmem:[%s9062_s19 + $0x4d0] sm:$0xff]  ;;  %v9318_v37 = vpack.c.bf16 %v495_v23, %v471_v10 }
 0x15a   : > { %4914 = vmatprep.subr.bf16.mxu0 %v8224_v31  ;;  %v8234_v31 = vld [vmem:[#allocation7 + $0x994] ss:$12 sps:$4 sm:$0xff]   ;;  %v9320_v40 = vpack.c.bf16 %v501_v12, %v477_v11  ;;  %v8244_v10 = vld [vmem:[#allocation7 + $0x9c4] ss:$12 sps:$4 sm:$0xff]   ;;  %v8249_v11 = vld [vmem:[#allocation7 + $0x9dc] ss:$12 sps:$4 sm:$0xff]  }
 0x15b   : > { %4667 = vmatmul.mubr.bf16.gmra.mrb[8].mxu1 %v9300_v50  ;;  %v8246_v23 = vld [vmem:[#allocation7 + $0x188] ss:$12 sps:$4 sm:$0xff]   ;;  %v8250_v12 = vld [vmem:[#allocation7 + $0x260] ss:$12 sps:$4 sm:$0xff]  }
 0x15c   : > { %4886 = vmatmul.mubr.bf16.gmra.mrb[8].mxu0 %v9302_v51  ;;  %7157 = vmatpush3.bf16.msra.mxu1 %v8226_v62  ;;  %v8240_v62 = vld [vmem:[#allocation7 + $0x170] ss:$12 sps:$4 sm:$0xff]  }
 0x15d   : > { %4915 = vmatpush1.bf16.msra.mxu0 %v8222_v59  ;;  %7158 = vmatprep.subr.bf16.mxu1 %v8230_v3  ;;  %v8239_v59 = vld [vmem:[#allocation7 + $0x9ac] ss:$12 sps:$4 sm:$0xff]   ;;  %v9323_v3 = vpack.c.bf16 %v360_v42, %v336_v36  ;;  %v8254_v36 = vld [vmem:[#allocation7 + $0x9f4] ss:$12 sps:$4 sm:$0xff]   ;;  %v8252_v42 = vld [vmem:[#allocation7 + $0x9f0] ss:$12 sps:$4 sm:$0xff]  }
 0x15e   : > { %4916 = vmatprep.subr.bf16.mxu0 %v8229_v0  ;;  %4676 = vmatprep.mubr.bf16.mxu1 %v9305_v9  ;;  %v8237_v0 = vld [vmem:[#allocation7 + $0x9a8] ss:$12 sps:$4 sm:$0xff]  }
 0x15f   : > { %4895 = vmatprep.mubr.bf16.mxu0 %v9309_v25  ;;  %v8241_v25 = vld [vmem:[#allocation7 + $0xb0] ss:$12 sps:$4 sm:$0xff]  }
 0x160   : > { %7159 = vmatpush3.bf16.msra.mxu1 %v8231_v5  ;;  %v8242_v5 = vld [vmem:[#allocation7 + $0x9c0] ss:$12 sps:$4 sm:$0xff]  }
 0x161   : > { %4917 = vmatpush1.bf16.msra.mxu0 %v8227_v4  ;;  %7160 = vmatprep.subr.bf16.mxu1 %v8235_v34  ;;  %v8245_v4 = vld [vmem:[#allocation7 + $0x248] ss:$12 sps:$4 sm:$0xff]   ;;  %v8251_v34 = vld [vmem:[#allocation7 + $0x1a0] ss:$12 sps:$4 sm:$0xff]  }
 0x162   : > { %4918 = vmatprep.subr.bf16.mxu0 %v8234_v31  ;;  %v8247_v31 = vld [vmem:[#allocation7 + $0x9d8] ss:$12 sps:$4 sm:$0xff]  }
 0x163   : > { %4677 = vmatmul.mubr.bf16.gmra.mrb[12].mxu1 %v9318_v37 }
 0x164   : > { %4896 = vmatmul.mubr.bf16.gmra.mrb[12].mxu0 %v9320_v40  ;;  %7161 = vmatpush3.bf16.msra.mxu1 %v8236_v53  ;;  %v8260_v53 = vld [vmem:[#allocation7 + $0x290] ss:$12 sps:$4 sm:$0xff]  }
 0x165   : > { %4919 = vmatpush1.bf16.msra.mxu0 %v8232_v49  ;;  %7162 = vmatprep.subr.bf16.mxu1 %v8240_v62  ;;  %v8259_v49 = vld [vmem:[#allocation7 + $0xa0c] ss:$12 sps:$4 sm:$0xff]   ;;  %v8264_v62 = vld [vmem:[#allocation7 + $0xa24] ss:$12 sps:$4 sm:$0xff]  }
 0x166   : > { %4920 = vmatprep.subr.bf16.mxu0 %v8239_v59  ;;  %5376 = vmatprep.mubr.bf16.mxu1 %v9085_v52  ;;  %v8255_v52 = vld [vmem:[#allocation7 + $0x278] ss:$12 sps:$4 sm:$0xff]   ;;  %v8261_v59 = vld [vmem:[#allocation7 + $0x1d0] ss:$12 sps:$4 sm:$0xff]  }
 0x167   : > { %4938 = vmatprep.mubr.bf16.mxu0 %v9323_v3 }
 0x168   : > { %7163 = vmatpush3.bf16.msra.mxu1 %v8241_v25  ;;  %v8256_v25 = vld [vmem:[#allocation7 + $0x1b8] ss:$12 sps:$4 sm:$0xff]  }
 0x169   : > { %4921 = vmatpush1.bf16.msra.mxu0 %v8237_v0  ;;  %7188 = vmatprep.subr.bf16.mxu1 %v8245_v4  ;;  %v8265_v0 = vld [vmem:[#allocation7 + $0x2a8] ss:$12 sps:$4 sm:$0xff]  }
 0x16a   : > { %4922 = vmatprep.subr.bf16.mxu0 %v8244_v10  ;;  %v8266_v10 = vld [vmem:[#allocation7 + $0x1e8] ss:$12 sps:$4 sm:$0xff]  }
 0x16b   : > { %5377 = vmatmul.mubr.bf16.vlgmr.msra.gmra.mrb[16].mxu1 %v9097_v14  ;;  %v8257_v14 = vld [vmem:[#allocation7 + $0xa08] ss:$12 sps:$4 sm:$0xff]  }
 0x16c   : > { %7189 = vmatpush3.bf16.msra.mxu1 %v8246_v23  ;;  %5384 = vmatprep.mubr.bf16.mxu1 %v9105_v28  ;;  %v8262_v28 = vld [vmem:[#allocation7 + $0xa20] ss:$12 sps:$4 sm:$0xff]   ;;  %v8269_v4 = vld [vmem:[#allocation7 + $0xa3c] ss:$12 sps:$4 sm:$0xff]  }
 0x16d   : > { %4923 = vmatpush1.bf16.msra.mxu0 %v8242_v5  ;;  %7190 = vmatprep.subr.bf16.mxu1 %v8250_v12  ;;  %v8270_v5 = vld [vmem:[#allocation7 + $0x2c0] ss:$12 sps:$4 sm:$0xff]   ;;  %v8275_v12 = vld [vmem:[#allocation7 + $0x2d8] ss:$12 sps:$4 sm:$0xff]  }
 0x16e   : > { %4924 = vmatprep.subr.bf16.mxu0 %v8249_v11  ;;  %v8271_v23 = vld [vmem:[#allocation7 + $0x200] ss:$12 sps:$4 sm:$0xff]  }
 0x16f   : > { %v8274_v11 = vld [vmem:[#allocation7 + $0xa54] ss:$12 sps:$4 sm:$0xff]  }
 0x170   : > { %7191 = vmatpush3.bf16.msra.mxu1 %v8251_v34  ;;  %v8280_v34 = vld [vmem:[#allocation7 + $0x2f0] ss:$12 sps:$4 sm:$0xff]  }
 0x171   : > { %4925 = vmatpush1.bf16.msra.mxu0 %v8247_v31  ;;  %7192 = vmatprep.subr.bf16.mxu1 %v8255_v52  ;;  %v8276_v31 = vld [vmem:[#allocation7 + $0x218] ss:$12 sps:$4 sm:$0xff]   ;;  %v8281_v52 = vld [vmem:[#allocation7 + $0x230] ss:$12 sps:$4 sm:$0xff]  }
 0x172   : > { %4926 = vmatprep.subr.bf16.mxu0 %v8254_v36  ;;  %v8277_v36 = vld [vmem:[#allocation7 + $0xa68] ss:$12 sps:$4 sm:$0xff]  }
 0x173   : > { %5385 = vmatmul.mubr.bf16.gmra.mrb[20].mxu1 %v9115_v39  ;;  %v8267_v39 = vld [vmem:[#allocation7 + $0xa38] ss:$12 sps:$4 sm:$0xff]  }
 0x174   : > { %7193 = vmatpush3.bf16.msra.mxu1 %v8256_v25  ;;  %5392 = vmatprep.mubr.bf16.mxu1 %v9124_v48  ;;  %v8272_v48 = vld [vmem:[#allocation7 + $0xa50] ss:$12 sps:$4 sm:$0xff]   ;;  %v359_v25 = vld [vmem:[%s9062_s19 + $0x120] sm:$0xff] }
 0x175   : > { %4927 = vmatpush1.bf16.msra.mxu0 %v8252_v42  ;;  %7194 = vmatprep.subr.bf16.mxu1 %v8260_v53  ;;  %v335_v42 = vld [vmem:[%s9062_s19 + $0x60] sm:$0xff]  ;;  %v384_v53 = vld [vmem:[%s9062_s19 + $0x1e8] sm:$0xff] }
 0x176   : > { %4928 = vmatprep.subr.bf16.mxu0 %v8259_v49  ;;  %v8285_v49 = vld [vmem:[#allocation7 + $0x3c8] ss:$12 sps:$4 sm:$0xff]  }
 0x178   : > { %7195 = vmatpush3.bf16.msra.mxu1 %v8261_v59  ;;  %v408_v59 = vld [vmem:[%s9062_s19 + $0x2a8] sm:$0xff] }
 0x179   : > { %4929 = vmatpush1.bf16.msra.mxu0 %v8257_v14  ;;  %7196 = vmatprep.subr.bf16.mxu1 %v8265_v0  ;;  %v9340_v14 = vpack.c.bf16 %v359_v25, %v335_v42  ;;  %v8289_v0 = vld [vmem:[#allocation7 + $0xa9c] ss:$12 sps:$4 sm:$0xff]   ;;  %v431_v25 = vld [vmem:[%s9062_s19 + $0x360] sm:$0xff] }
 0x17a   : > { %4930 = vmatprep.subr.bf16.mxu0 %v8264_v62  ;;  %v8286_v62 = vld [vmem:[#allocation7 + $0x308] ss:$12 sps:$4 sm:$0xff]  }
 0x17b   : > { %5393 = vmatmul.mubr.bf16.gmra.mrb[24].mxu1 %v9135_v61  ;;  %v8279_v61 = vld [vmem:[#allocation7 + $0xa6c] ss:$12 sps:$4 sm:$0xff]  }
 0x17c   : > { %7197 = vmatpush3.bf16.msra.mxu1 %v8266_v10  ;;  %5400 = vmatprep.mubr.bf16.mxu1 %v9144_v6  ;;  %v8284_v6 = vld [vmem:[#allocation7 + $0xa84] ss:$12 sps:$4 sm:$0xff]  }
 0x17d   : > { %4931 = vmatpush1.bf16.msra.mxu0 %v8262_v28  ;;  %7198 = vmatprep.subr.bf16.mxu1 %v8270_v5  ;;  %v8290_v28 = vld [vmem:[#allocation7 + $0x3e0] ss:$12 sps:$4 sm:$0xff]   ;;  %v8287_v10 = vld [vmem:[#allocation7 + $0xa98] ss:$12 sps:$4 sm:$0xff]  }
 0x17e   : > { %4932 = vmatprep.subr.bf16.mxu0 %v8269_v4  ;;  %v9343_v4 = vpack.c.bf16 %v408_v59, %v384_v53  ;;  %v383_v5 = vld [vmem:[%s9062_s19 + $0x1e0] sm:$0xff]  ;;  %v8305_v53 = vld [vmem:[#allocation7 + $0x428] ss:$12 sps:$4 sm:$0xff]  }
 0x17f   : > { %v480_v59 = vld [vmem:[%s9062_s19 + $0x4e8] sm:$0xff] }
 0x180   : > { %7199 = vmatpush3.bf16.msra.mxu1 %v8271_v23  ;;  %v8294_v23 = vld [vmem:[#allocation7 + $0xab4] ss:$12 sps:$4 sm:$0xff]  }
 0x181   : > { %4933 = vmatpush1.bf16.msra.mxu0 %v8267_v39  ;;  %7200 = vmatprep.subr.bf16.mxu1 %v8275_v12  ;;  %v407_v39 = vld [vmem:[%s9062_s19 + $0x2a0] sm:$0xff]  ;;  %v432_v12 = vld [vmem:[%s9062_s19 + $0x368] sm:$0xff] }
 0x182   : > { %4934 = vmatprep.subr.bf16.mxu0 %v8274_v11  ;;  %v8295_v11 = vld [vmem:[#allocation7 + $0x3f8] ss:$12 sps:$4 sm:$0xff]  }
 0x183   : > { %5401 = vmatmul.mubr.bf16.gmra.mrb[28].mxu1 %v9155_v19  ;;  %v8282_v19 = vld [vmem:[#allocation7 + $0xa80] ss:$12 sps:$4 sm:$0xff]  }
 0x184   : > { %7201 = vmatpush3.bf16.msra.mxu1 %v8276_v31  ;;  %5441 = vmatprep.mubr.bf16.mxu1 %v9164_v29  ;;  %v8291_v29 = vld [vmem:[#allocation7 + $0x320] ss:$12 sps:$4 sm:$0xff]   ;;  %v8292_v31 = vld [vmem:[#allocation7 + $0xab0] ss:$12 sps:$4 sm:$0xff]  }
 0x185   : > { %4935 = vmatpush1.bf16.msra.mxu0 %v8272_v48  ;;  %7202 = vmatprep.subr.bf16.mxu1 %v8280_v34  ;;  %v9352_v48 = vpack.c.bf16 %v407_v39, %v383_v5  ;;  %v8299_v34 = vld [vmem:[#allocation7 + $0xacc] ss:$12 sps:$4 sm:$0xff]   ;;  %v479_v39 = vld [vmem:[%s9062_s19 + $0x4e0] sm:$0xff] }
 0x186   : > { %4936 = vmatprep.subr.bf16.mxu0 %v8279_v61  ;;  %v8296_v61 = vld [vmem:[#allocation7 + $0x338] ss:$12 sps:$4 sm:$0xff]  }
 0x188   : > { %7203 = vmatpush3.bf16.msra.mxu1 %v8281_v52  ;;  %v8297_v52 = vld [vmem:[#allocation7 + $0xac8] ss:$12 sps:$4 sm:$0xff]  }
 0x189   : > { %4937 = vmatpush1.bf16.msra.mxu0 %v8277_v36  ;;  %7228 = vmatprep.subr.bf16.mxu1 %v8285_v49  ;;  %v8300_v36 = vld [vmem:[#allocation7 + $0x410] ss:$12 sps:$4 sm:$0xff]  }
 0x18a   : > { %4979 = vmatprep.subr.bf16.mxu0 %v8284_v6  ;;  %v455_v6 = vld [vmem:[%s9062_s19 + $0x420] sm:$0xff] }
 0x18b   : > { %5442 = vmatmul.mubr.bf16.vlgmr.msra.gmra.mrb[32].mxu1 %v9177_v16  ;;  %v456_v16 = vld [vmem:[%s9062_s19 + $0x428] sm:$0xff]  ;;  %v8304_v49 = vld [vmem:[#allocation7 + $0xae4] ss:$12 sps:$4 sm:$0xff]  }
 0x18c   : > { %4939 = vmatmul.mubr.bf16.vlgmr.msra.gmra.mrb[0].mxu0 %v9340_v14  ;;  %7229 = vmatpush3.bf16.msra.mxu1 %v8286_v62  ;;  %v9355_v42 = vpack.c.bf16 %v456_v16, %v432_v12  ;;  %v8302_v62 = vld [vmem:[#allocation7 + $0xae0] ss:$12 sps:$4 sm:$0xff]   ;;  %v8315_v12 = vld [vmem:[#allocation7 + $0x458] ss:$12 sps:$4 sm:$0xff]   ;;  %v8312_v16 = vld [vmem:[#allocation7 + $0xb10] ss:$12 sps:$4 sm:$0xff]  }
 0x18d   : > { %4980 = vmatpush1.bf16.msra.mxu0 %v8282_v19  ;;  %7230 = vmatprep.subr.bf16.mxu1 %v8290_v28  ;;  %v9364_v19 = vpack.c.bf16 %v455_v6, %v431_v25  ;;  %v8309_v28 = vld [vmem:[#allocation7 + $0xafc] ss:$12 sps:$4 sm:$0xff]   ;;  %v8324_v6 = vld [vmem:[#allocation7 + $0xb44] ss:$12 sps:$4 sm:$0xff]  }
 0x18e   : > { %4981 = vmatprep.subr.bf16.mxu0 %v8289_v0  ;;  %5449 = vmatprep.mubr.bf16.mxu1 %v9185_v30  ;;  %v8301_v30 = vld [vmem:[#allocation7 + $0x350] ss:$12 sps:$4 sm:$0xff]   ;;  %v8306_v0 = vld [vmem:[#allocation7 + $0x368] ss:$12 sps:$4 sm:$0xff]  }
 0x18f   : > { %4948 = vmatprep.mubr.bf16.mxu0 %v9343_v4  ;;  %v8317_v25 = vld [vmem:[#allocation7 + $0xb28] ss:$12 sps:$4 sm:$0xff]  }
 0x190   : > { %7231 = vmatpush3.bf16.msra.mxu1 %v8291_v29  ;;  %v8307_v29 = vld [vmem:[#allocation7 + $0xaf8] ss:$12 sps:$4 sm:$0xff]  }
 0x191   : > { %4982 = vmatpush1.bf16.msra.mxu0 %v8287_v10  ;;  %7232 = vmatprep.subr.bf16.mxu1 %v8295_v11  ;;  %v8310_v10 = vld [vmem:[#allocation7 + $0x440] ss:$12 sps:$4 sm:$0xff]  }
 0x192   : > { %4983 = vmatprep.subr.bf16.mxu0 %v8294_v23  ;;  %v503_v23 = vld [vmem:[%s9062_s19 + $0x5a0] sm:$0xff] }
 0x193   : > { %5450 = vmatmul.mubr.bf16.gmra.mrb[36].mxu1 %v9197_v44  ;;  %v504_v44 = vld [vmem:[%s9062_s19 + $0x5a8] sm:$0xff]  ;;  %v8314_v11 = vld [vmem:[#allocation7 + $0xb14] ss:$12 sps:$4 sm:$0xff]  }
 0x194   : > { %4949 = vmatmul.mubr.bf16.gmra.mrb[4].mxu0 %v9352_v48  ;;  %7233 = vmatpush3.bf16.msra.mxu1 %v8296_v61  ;;  %v9367_v5 = vpack.c.bf16 %v504_v44, %v480_v59  ;;  %v338_v61 = vld [vmem:[%s9062_s19 + $0x78] sm:$0xff]  ;;  %v8326_v59 = vld [vmem:[#allocation7 + $0x488] ss:$12 sps:$4 sm:$0xff]  }
 0x195   : > { %4984 = vmatpush1.bf16.msra.mxu0 %v8292_v31  ;;  %7234 = vmatprep.subr.bf16.mxu1 %v8300_v36  ;;  %v8316_v31 = vld [vmem:[#allocation7 + $0x398] ss:$12 sps:$4 sm:$0xff]   ;;  %v8329_v44 = vld [vmem:[#allocation7 + $0xb5c] ss:$12 sps:$4 sm:$0xff]  }
 0x196   : > { %4985 = vmatprep.subr.bf16.mxu0 %v8299_v34  ;;  %5457 = vmatprep.mubr.bf16.mxu1 %v9205_v58  ;;  %v8311_v58 = vld [vmem:[#allocation7 + $0x380] ss:$12 sps:$4 sm:$0xff]   ;;  %v362_v34 = vld [vmem:[%s9062_s19 + $0x138] sm:$0xff] }
 0x197   : > { %4958 = vmatprep.mubr.bf16.mxu0 %v9355_v42  ;;  %v8319_v36 = vld [vmem:[#allocation7 + $0xb2c] ss:$12 sps:$4 sm:$0xff]  }
 0x198   : > { %7235 = vmatpush3.bf16.msra.mxu1 %v8301_v30  ;;  %v9379_v30 = vpack.c.bf16 %v362_v34, %v338_v61  ;;  %v8350_v61 = vld [vmem:[#allocation7 + $0x5c0] ss:$12 sps:$4 sm:$0xff]  }
 0x199   : > { %4986 = vmatpush1.bf16.msra.mxu0 %v8297_v52  ;;  %7236 = vmatprep.subr.bf16.mxu1 %v8305_v53  ;;  %v8320_v52 = vld [vmem:[#allocation7 + $0x470] ss:$12 sps:$4 sm:$0xff]   ;;  %v8322_v53 = vld [vmem:[#allocation7 + $0xb40] ss:$12 sps:$4 sm:$0xff]  }
 0x19a   : > { %4987 = vmatprep.subr.bf16.mxu0 %v8304_v49  ;;  %v8325_v49 = vld [vmem:[#allocation7 + $0x548] ss:$12 sps:$4 sm:$0xff]   ;;  %v8351_v34 = vld [vmem:[#allocation7 + $0x500] ss:$12 sps:$4 sm:$0xff]  }
 0x19b   : > { %5458 = vmatmul.mubr.bf16.gmra.mrb[40].mxu1 %v9217_v7  ;;  %v9376_v7 = vpack.c.bf16 %v503_v23, %v479_v39  ;;  %v8340_v39 = vld [vmem:[#allocation7 + $0x590] ss:$12 sps:$4 sm:$0xff]   ;;  %v8337_v23 = vld [vmem:[#allocation7 + $0xb88] ss:$12 sps:$4 sm:$0xff]  }
 0x19c   : > { %4959 = vmatmul.mubr.bf16.gmra.mrb[8].mxu0 %v9364_v19  ;;  %7237 = vmatpush3.bf16.msra.mxu1 %v8306_v0  ;;  %v8331_v0 = vld [vmem:[#allocation7 + $0x4a0] ss:$12 sps:$4 sm:$0xff]  }
 0x19d   : > { %4988 = vmatpush1.bf16.msra.mxu0 %v8302_v62  ;;  %7238 = vmatprep.subr.bf16.mxu1 %v8310_v10  ;;  %v8327_v62 = vld [vmem:[#allocation7 + $0xb58] ss:$12 sps:$4 sm:$0xff]   ;;  %v8332_v10 = vld [vmem:[#allocation7 + $0xb70] ss:$12 sps:$4 sm:$0xff]  }
 0x19e   : > { %4989 = vmatprep.subr.bf16.mxu0 %v8309_v28  ;;  %5465 = vmatprep.mubr.bf16.mxu1 %v9225_v24  ;;  %v8321_v24 = vld [vmem:[#allocation7 + $0x3b0] ss:$12 sps:$4 sm:$0xff]   ;;  %v8334_v28 = vld [vmem:[#allocation7 + $0xb74] ss:$12 sps:$4 sm:$0xff]  }
 0x19f   : > { %4968 = vmatprep.mubr.bf16.mxu0 %v9367_v5 }
 0x1a0   : > { %7239 = vmatpush3.bf16.msra.mxu1 %v8311_v58  ;;  %v8339_v58 = vld [vmem:[#allocation7 + $0xb8c] ss:$12 sps:$4 sm:$0xff]  }
 0x1a1   : > { %4990 = vmatpush1.bf16.msra.mxu0 %v8307_v29  ;;  %7240 = vmatprep.subr.bf16.mxu1 %v8315_v12  ;;  %v8336_v29 = vld [vmem:[#allocation7 + $0x4b8] ss:$12 sps:$4 sm:$0xff]   ;;  %v8345_v12 = vld [vmem:[#allocation7 + $0x5a8] ss:$12 sps:$4 sm:$0xff]  }
 0x1a2   : > { %4991 = vmatprep.subr.bf16.mxu0 %v8314_v11  ;;  %v8344_v11 = vld [vmem:[#allocation7 + $0xba4] ss:$12 sps:$4 sm:$0xff]  }
 0x1a3   : > { %5466 = vmatmul.mubr.bf16.gmra.mrb[44].mxu1 %v9240_v43  ;;  %v8330_v43 = vld [vmem:[#allocation7 + $0x560] ss:$12 sps:$4 sm:$0xff]  }
 0x1a4   : > { %4969 = vmatmul.mubr.bf16.gmra.mrb[12].mxu0 %v9376_v7  ;;  %7241 = vmatpush3.bf16.msra.mxu1 %v8316_v31  ;;  %v8349_v31 = vld [vmem:[#allocation7 + $0xbbc] ss:$12 sps:$4 sm:$0xff]  }
 0x1a5   : > { %4992 = vmatpush1.bf16.msra.mxu0 %v8312_v16  ;;  %7242 = vmatprep.subr.bf16.mxu1 %v8320_v52  ;;  %v8346_v16 = vld [vmem:[#allocation7 + $0x4e8] ss:$12 sps:$4 sm:$0xff]   ;;  %v8355_v52 = vld [vmem:[#allocation7 + $0x5d8] ss:$12 sps:$4 sm:$0xff]  }
 0x1a6   : > { %4993 = vmatprep.subr.bf16.mxu0 %v8319_v36  ;;  %5506 = vmatprep.mubr.bf16.mxu1 %v9245_v54  ;;  %v8335_v54 = vld [vmem:[#allocation7 + $0x578] ss:$12 sps:$4 sm:$0xff]   ;;  %v8354_v36 = vld [vmem:[#allocation7 + $0xbd4] ss:$12 sps:$4 sm:$0xff]  }
 0x1a7   : > { %5011 = vmatprep.mubr.bf16.mxu0 %v9379_v30 }
 0x1a8   : > { %7243 = vmatpush3.bf16.msra.mxu1 %v8321_v24  ;;  %v8359_v24 = vld [vmem:[#allocation7 + $0xbec] ss:$12 sps:$4 sm:$0xff]  }
 0x1a9   : > { %4994 = vmatpush1.bf16.msra.mxu0 %v8317_v25  ;;  %7268 = vmatprep.subr.bf16.mxu1 %v8325_v49  ;;  %v8356_v25 = vld [vmem:[#allocation7 + $0x518] ss:$12 sps:$4 sm:$0xff]   ;;  %v8361_v49 = vld [vmem:[#allocation7 + $0x530] ss:$12 sps:$4 sm:$0xff]  }
 0x1aa   : > { %4995 = vmatprep.subr.bf16.mxu0 %v8324_v6  ;;  %v8357_v6 = vld [vmem:[#allocation7 + $0xbe8] ss:$12 sps:$4 sm:$0xff]  }
 0x1ab   : > { %5507 = vmatmul.mubr.bf16.vlgmr.msra.gmra.mrb[48].mxu1 %v9260_v20  ;;  %v8341_v20 = vld [vmem:[#allocation7 + $0x4d0] ss:$12 sps:$4 sm:$0xff]  }
 0x1ac   : > { %7269 = vmatpush3.bf16.msra.mxu1 %v8326_v59  ;;  %5514 = vmatprep.mubr.bf16.mxu1 %v9265_v38  ;;  %v8342_v38 = vld [vmem:[#allocation7 + $0xba0] ss:$12 sps:$4 sm:$0xff]   ;;  %v361_v59 = vld [vmem:[%s9062_s19 + $0x130] sm:$0xff] }
 0x1ad   : > { %4996 = vmatpush1.bf16.msra.mxu0 %v8322_v53  ;;  %7270 = vmatprep.subr.bf16.mxu1 %v8330_v43  ;;  %v337_v53 = vld [vmem:[%s9062_s19 + $0x70] sm:$0xff]  ;;  %v8362_v43 = vld [vmem:[#allocation7 + $0xc00] ss:$12 sps:$4 sm:$0xff]  }
 0x1ae   : > { %4997 = vmatprep.subr.bf16.mxu0 %v8329_v44  ;;  %v8365_v44 = vld [vmem:[#allocation7 + $0x6c8] ss:$12 sps:$4 sm:$0xff]  }
 0x1b0   : > { %7271 = vmatpush3.bf16.msra.mxu1 %v8331_v0  ;;  %v9396_v0 = vpack.c.bf16 %v361_v59, %v337_v53  ;;  %v8386_v53 = vld [vmem:[#allocation7 + $0x668] ss:$12 sps:$4 sm:$0xff]  }
 0x1b1   : > { %4998 = vmatpush1.bf16.msra.mxu0 %v8327_v62  ;;  %7272 = vmatprep.subr.bf16.mxu1 %v8335_v54  ;;  %v386_v62 = vld [vmem:[%s9062_s19 + $0x1f8] sm:$0xff] }
 0x1b2   : > { %4999 = vmatprep.subr.bf16.mxu0 %v8334_v28  ;;  %v410_v28 = vld [vmem:[%s9062_s19 + $0x2b8] sm:$0xff] }
 0x1b3   : > { %5515 = vmatmul.mubr.bf16.gmra.mrb[52].mxu1 %v9280_v1  ;;  %v8347_v1 = vld [vmem:[#allocation7 + $0xbb8] ss:$12 sps:$4 sm:$0xff]   ;;  %v8369_v54 = vld [vmem:[#allocation7 + $0xc1c] ss:$12 sps:$4 sm:$0xff]  }
 0x1b4   : > { %7273 = vmatpush3.bf16.msra.mxu1 %v8336_v29  ;;  %5522 = vmatprep.mubr.bf16.mxu1 %v9285_v18  ;;  %v8352_v18 = vld [vmem:[#allocation7 + $0xbd0] ss:$12 sps:$4 sm:$0xff]   ;;  %v8367_v29 = vld [vmem:[#allocation7 + $0xc18] ss:$12 sps:$4 sm:$0xff]  }
 0x1b5   : > { %5000 = vmatpush1.bf16.msra.mxu0 %v8332_v10  ;;  %7274 = vmatprep.subr.bf16.mxu1 %v8340_v39  ;;  %v8370_v10 = vld [vmem:[#allocation7 + $0x6e0] ss:$12 sps:$4 sm:$0xff]   ;;  %v385_v39 = vld [vmem:[%s9062_s19 + $0x1f0] sm:$0xff]  ;;  %v8389_v59 = vld [vmem:[#allocation7 + $0xc7c] ss:$12 sps:$4 sm:$0xff]  }
 0x1b6   : > { %5001 = vmatprep.subr.bf16.mxu0 %v8339_v58  ;;  %v9399_v58 = vpack.c.bf16 %v410_v28, %v386_v62  ;;  %v8394_v62 = vld [vmem:[#allocation7 + $0xc94] ss:$12 sps:$4 sm:$0xff]  }
 0x1b7   : > { %v481_v28 = vld [vmem:[%s9062_s19 + $0x4f0] sm:$0xff] }
 0x1b8   : > { %7275 = vmatpush3.bf16.msra.mxu1 %v8341_v20  ;;  %v8374_v20 = vld [vmem:[#allocation7 + $0xc34] ss:$12 sps:$4 sm:$0xff]  }
 0x1b9   : > { %5002 = vmatpush1.bf16.msra.mxu0 %v8337_v23  ;;  %7276 = vmatprep.subr.bf16.mxu1 %v8345_v12  ;;  %v409_v23 = vld [vmem:[%s9062_s19 + $0x2b0] sm:$0xff] }
 0x1ba   : > { %5003 = vmatprep.subr.bf16.mxu0 %v8344_v11  ;;  %v8375_v11 = vld [vmem:[#allocation7 + $0x6f8] ss:$12 sps:$4 sm:$0xff]   ;;  %v8372_v12 = vld [vmem:[#allocation7 + $0xc30] ss:$12 sps:$4 sm:$0xff]  }
 0x1bb   : > { %5523 = vmatmul.mubr.bf16.gmra.mrb[56].mxu1 %v9300_v50  ;;  %v8360_v50 = vld [vmem:[#allocation7 + $0x5f0] ss:$12 sps:$4 sm:$0xff]  }
 0x1bc   : > { %7277 = vmatpush3.bf16.msra.mxu1 %v8346_v16  ;;  %5530 = vmatprep.mubr.bf16.mxu1 %v9305_v9  ;;  %v8364_v9 = vld [vmem:[#allocation7 + $0xc04] ss:$12 sps:$4 sm:$0xff]   ;;  %v9408_v16 = vpack.c.bf16 %v409_v23, %v385_v39  ;;  %v8399_v23 = vld [vmem:[#allocation7 + $0xcac] ss:$12 sps:$4 sm:$0xff]  }
 0x1bd   : > { %5004 = vmatpush1.bf16.msra.mxu0 %v8342_v38  ;;  %7278 = vmatprep.subr.bf16.mxu1 %v8350_v61  ;;  %v434_v38 = vld [vmem:[%s9062_s19 + $0x378] sm:$0xff] }
 0x1be   : > { %5005 = vmatprep.subr.bf16.mxu0 %v8349_v31  ;;  %v8376_v31 = vld [vmem:[#allocation7 + $0x638] ss:$12 sps:$4 sm:$0xff]  }
 0x1bf   : > { %v8379_v61 = vld [vmem:[#allocation7 + $0xc4c] ss:$12 sps:$4 sm:$0xff]  }
 0x1c0   : > { %7279 = vmatpush3.bf16.msra.mxu1 %v8351_v34  ;;  %v8377_v34 = vld [vmem:[#allocation7 + $0xc48] ss:$12 sps:$4 sm:$0xff]  }
 0x1c1   : > { %5006 = vmatpush1.bf16.msra.mxu0 %v8347_v1  ;;  %7280 = vmatprep.subr.bf16.mxu1 %v8355_v52  ;;  %v8380_v1 = vld [vmem:[#allocation7 + $0x710] ss:$12 sps:$4 sm:$0xff]  }
 0x1c2   : > { %5007 = vmatprep.subr.bf16.mxu0 %v8354_v36  ;;  %v433_v52 = vld [vmem:[%s9062_s19 + $0x370] sm:$0xff] }
 0x1c3   : > { %5531 = vmatmul.mubr.bf16.gmra.mrb[60].mxu1 %v9318_v37  ;;  %v8366_v37 = vld [vmem:[#allocation7 + $0x608] ss:$12 sps:$4 sm:$0xff]  }
 0x1c4   : > { %7281 = vmatpush3.bf16.msra.mxu1 %v8356_v25  ;;  %5571 = vmatprep.mubr.bf16.mxu1 %v9090_v55  ;;  %v8371_v55 = vld [vmem:[#allocation7 + $0x620] ss:$12 sps:$4 sm:$0xff]   ;;  %v8384_v25 = vld [vmem:[#allocation7 + $0xc64] ss:$12 sps:$4 sm:$0xff]  }
 0x1c5   : > { %5008 = vmatpush1.bf16.msra.mxu0 %v8352_v18  ;;  %7282 = vmatprep.subr.bf16.mxu1 %v8360_v50  ;;  %v457_v18 = vld [vmem:[%s9062_s19 + $0x430] sm:$0xff]  ;;  %v8382_v50 = vld [vmem:[#allocation7 + $0xc60] ss:$12 sps:$4 sm:$0xff]  }
 0x1c6   : > { %5009 = vmatprep.subr.bf16.mxu0 %v8359_v24  ;;  %v8385_v24 = vld [vmem:[#allocation7 + $0x728] ss:$12 sps:$4 sm:$0xff]  }
 0x1c8   : > { %7283 = vmatpush3.bf16.msra.mxu1 %v8361_v49  ;;  %v506_v49 = vld [vmem:[%s9062_s19 + $0x5b8] sm:$0xff] }
 0x1c9   : > { %5010 = vmatpush1.bf16.msra.mxu0 %v8357_v6  ;;  %7308 = vmatprep.subr.bf16.mxu1 %v8365_v44  ;;  %v482_v6 = vld [vmem:[%s9062_s19 + $0x4f8] sm:$0xff] }
 0x1ca   : > { %5052 = vmatprep.subr.bf16.mxu0 %v8364_v9  ;;  %v8390_v9 = vld [vmem:[#allocation7 + $0x740] ss:$12 sps:$4 sm:$0xff]   ;;  %v8387_v44 = vld [vmem:[#allocation7 + $0xc78] ss:$12 sps:$4 sm:$0xff]  }
 0x1cb   : > { %5572 = vmatmul.mubr.bf16.vlgmr.msra.gmra.mrb[64].mxu1 %v9099_v15  ;;  %v458_v15 = vld [vmem:[%s9062_s19 + $0x438] sm:$0xff] }
 0x1cc   : > { %5012 = vmatmul.mubr.bf16.vlgmr.msra.gmra.mrb[0].mxu0 %v9396_v0  ;;  %7309 = vmatpush3.bf16.msra.mxu1 %v8366_v37  ;;  %v9411_v36 = vpack.c.bf16 %v458_v15, %v434_v38  ;;  %v505_v37 = vld [vmem:[%s9062_s19 + $0x5b0] sm:$0xff] }
 0x1cd   : > { %5053 = vmatpush1.bf16.msra.mxu0 %v8362_v43  ;;  %7310 = vmatprep.subr.bf16.mxu1 %v8370_v10  ;;  %v8391_v43 = vld [vmem:[#allocation7 + $0x680] ss:$12 sps:$4 sm:$0xff]   ;;  %v8392_v10 = vld [vmem:[#allocation7 + $0xc90] ss:$12 sps:$4 sm:$0xff]   ;;  %v9432_v39 = vpack.c.bf16 %v505_v37, %v481_v28  ;;  %v8405_v15 = vld [vmem:[#allocation7 + $0x848] ss:$12 sps:$4 sm:$0xff]  }
 0x1ce   : > { %5054 = vmatprep.subr.bf16.mxu0 %v8369_v54  ;;  %5579 = vmatprep.mubr.bf16.mxu1 %v9110_v35  ;;  %v8381_v35 = vld [vmem:[#allocation7 + $0x650] ss:$12 sps:$4 sm:$0xff]   ;;  %v8395_v54 = vld [vmem:[#allocation7 + $0x758] ss:$12 sps:$4 sm:$0xff]  }
 0x1cf   : > { %5021 = vmatprep.mubr.bf16.mxu0 %v9399_v58  ;;  %v8404_v38 = vld [vmem:[#allocation7 + $0xcc4] ss:$12 sps:$4 sm:$0xff]  }
 0x1d0   : > { %7311 = vmatpush3.bf16.msra.mxu1 %v8371_v55  ;;  %v340_v55 = vld [vmem:[%s9062_s19 + $0x88] sm:$0xff]  ;;  %v8435_v28 = vld [vmem:[#allocation7 + $0x8d8] ss:$12 sps:$4 sm:$0xff]  }
 0x1d1   : > { %5055 = vmatpush1.bf16.msra.mxu0 %v8367_v29  ;;  %7312 = vmatprep.subr.bf16.mxu1 %v8375_v11  ;;  %v8396_v29 = vld [vmem:[#allocation7 + $0x698] ss:$12 sps:$4 sm:$0xff]  }
 0x1d2   : > { %5056 = vmatprep.subr.bf16.mxu0 %v8374_v20  ;;  %v8400_v20 = vld [vmem:[#allocation7 + $0x770] ss:$12 sps:$4 sm:$0xff]   ;;  %v8436_v37 = vld [vmem:[#allocation7 + $0x818] ss:$12 sps:$4 sm:$0xff]  }
 0x1d3   : > { %5580 = vmatmul.mubr.bf16.gmra.mrb[68].mxu1 %v9119_v41  ;;  %v9420_v41 = vpack.c.bf16 %v457_v18, %v433_v52  ;;  %v8414_v52 = vld [vmem:[#allocation7 + $0xcf4] ss:$12 sps:$4 sm:$0xff]   ;;  %v8412_v18 = vld [vmem:[#allocation7 + $0xcf0] ss:$12 sps:$4 sm:$0xff]  }
 0x1d4   : > { %5022 = vmatmul.mubr.bf16.gmra.mrb[4].mxu0 %v9408_v16  ;;  %7313 = vmatpush3.bf16.msra.mxu1 %v8376_v31  ;;  %v8402_v31 = vld [vmem:[#allocation7 + $0xcc0] ss:$12 sps:$4 sm:$0xff]  }
 0x1d5   : > { %5057 = vmatpush1.bf16.msra.mxu0 %v8372_v12  ;;  %7314 = vmatprep.subr.bf16.mxu1 %v8380_v1  ;;  %v8397_v12 = vld [vmem:[#allocation7 + $0xca8] ss:$12 sps:$4 sm:$0xff]   ;;  %v8410_v1 = vld [vmem:[#allocation7 + $0x860] ss:$12 sps:$4 sm:$0xff]  }
 0x1d6   : > { %5058 = vmatprep.subr.bf16.mxu0 %v8379_v61  ;;  %5587 = vmatprep.mubr.bf16.mxu1 %v9130_v57  ;;  %v9423_v57 = vpack.c.bf16 %v506_v49, %v482_v6  ;;  %v8406_v61 = vld [vmem:[#allocation7 + $0x788] ss:$12 sps:$4 sm:$0xff]   ;;  %v8421_v6 = vld [vmem:[#allocation7 + $0x7d0] ss:$12 sps:$4 sm:$0xff]  }
 0x1d7   : > { %5031 = vmatprep.mubr.bf16.mxu0 %v9411_v36  ;;  %v8424_v49 = vld [vmem:[#allocation7 + $0xd24] ss:$12 sps:$4 sm:$0xff]  }
 0x1d8   : > { %7315 = vmatpush3.bf16.msra.mxu1 %v8381_v35  ;;  %v8411_v35 = vld [vmem:[#allocation7 + $0x7a0] ss:$12 sps:$4 sm:$0xff]  }
 0x1d9   : > { %5059 = vmatpush1.bf16.msra.mxu0 %v8377_v34  ;;  %7316 = vmatprep.subr.bf16.mxu1 %v8385_v24  ;;  %v8407_v34 = vld [vmem:[#allocation7 + $0xcd8] ss:$12 sps:$4 sm:$0xff]  }
 0x1da   : > { %5060 = vmatprep.subr.bf16.mxu0 %v8384_v25  ;;  %v8416_v25 = vld [vmem:[#allocation7 + $0x7b8] ss:$12 sps:$4 sm:$0xff]  }
 0x1db   : > { %5588 = vmatmul.mubr.bf16.gmra.mrb[72].mxu1 %v9139_v63  ;;  %v364_v63 = vld [vmem:[%s9062_s19 + $0x148] sm:$0xff] }
 0x1dc   : > { %5032 = vmatmul.mubr.bf16.gmra.mrb[8].mxu0 %v9420_v41  ;;  %7317 = vmatpush3.bf16.msra.mxu1 %v8386_v53  ;;  %v9435_v11 = vpack.c.bf16 %v364_v63, %v340_v55  ;;  %v8419_v24 = vld [vmem:[#allocation7 + $0xd0c] ss:$12 sps:$4 sm:$0xff]   ;;  %v8425_v53 = vld [vmem:[#allocation7 + $0x8a8] ss:$12 sps:$4 sm:$0xff]   ;;  %v339_v55 = vld [vmem:[%s9062_s19 + $0x80] sm:$0xff] }
 0x1dd   : > { %5061 = vmatpush1.bf16.msra.mxu0 %v8382_v50  ;;  %7318 = vmatprep.subr.bf16.mxu1 %v8390_v9  ;;  %v8420_v50 = vld [vmem:[#allocation7 + $0x890] ss:$12 sps:$4 sm:$0xff]   ;;  %v363_v63 = vld [vmem:[%s9062_s19 + $0x140] sm:$0xff] }
 0x1de   : > { %5062 = vmatprep.subr.bf16.mxu0 %v8389_v59  ;;  %5595 = vmatprep.mubr.bf16.mxu1 %v9150_v13  ;;  %v8401_v13 = vld [vmem:[#allocation7 + $0x6b0] ss:$12 sps:$4 sm:$0xff]   ;;  %v8426_v59 = vld [vmem:[#allocation7 + $0x7e8] ss:$12 sps:$4 sm:$0xff]  }
 0x1df   : > { %5041 = vmatprep.mubr.bf16.mxu0 %v9423_v57  ;;  %v8429_v9 = vld [vmem:[#allocation7 + $0xd3c] ss:$12 sps:$4 sm:$0xff]  }
 0x1e0   : > { %7319 = vmatpush3.bf16.msra.mxu1 %v8391_v43  ;;  %v8431_v43 = vld [vmem:[#allocation7 + $0x800] ss:$12 sps:$4 sm:$0xff]  }
 0x1e1   : > { %5063 = vmatpush1.bf16.msra.mxu0 %v8387_v44  ;;  %7320 = vmatprep.subr.bf16.mxu1 %v8395_v54  ;;  %v8430_v44 = vld [vmem:[#allocation7 + $0x8c0] ss:$12 sps:$4 sm:$0xff]  }
 0x1e2   : > { %5064 = vmatprep.subr.bf16.mxu0 %v8394_v62  ;;  %v8434_v62 = vld [vmem:[#allocation7 + $0xd54] ss:$12 sps:$4 sm:$0xff]   ;;  %v8439_v54 = vld [vmem:[#allocation7 + $0xd6c] ss:$12 sps:$4 sm:$0xff]  }
 0x1e3   : > { %5596 = vmatmul.mubr.bf16.gmra.mrb[76].mxu1 %v9159_v21  ;;  %v8409_v21 = vld [vmem:[#allocation7 + $0xcdc] ss:$12 sps:$4 sm:$0xff]  }
 0x1e4   : > { %5042 = vmatmul.mubr.bf16.gmra.mrb[12].mxu0 %v9432_v39  ;;  %7321 = vmatpush3.bf16.msra.mxu1 %v8396_v29  ;;  %v8441_v29 = vld [vmem:[#allocation7 + $0x830] ss:$12 sps:$4 sm:$0xff]  }
 0x1e5   : > { %5065 = vmatpush1.bf16.msra.mxu0 %v8392_v10  ;;  %7322 = vmatprep.subr.bf16.mxu1 %v8400_v20  ;;  %v8437_v10 = vld [vmem:[#allocation7 + $0xd68] ss:$12 sps:$4 sm:$0xff]   ;;  %v8442_v20 = vld [vmem:[#allocation7 + $0xd80] ss:$12 sps:$4 sm:$0xff]  }
 0x1e6   : > { %5066 = vmatprep.subr.bf16.mxu0 %v8399_v23  ;;  %5636 = vmatprep.mubr.bf16.mxu1 %v9170_v32  ;;  %v8415_v32 = vld [vmem:[#allocation7 + $0x878] ss:$12 sps:$4 sm:$0xff]   ;;  %v8445_v23 = vld [vmem:[#allocation7 + $0x9c8] ss:$12 sps:$4 sm:$0xff]  }
 0x1e7   : > { %5084 = vmatprep.mubr.bf16.mxu0 %v9435_v11 }
 0x1e8   : > { %7323 = vmatpush3.bf16.msra.mxu1 %v8401_v13  ;;  %v388_v13 = vld [vmem:[%s9062_s19 + $0x208] sm:$0xff] }
 0x1e9   : > { %5067 = vmatpush1.bf16.msra.mxu0 %v8397_v12  ;;  %7348 = vmatprep.subr.bf16.mxu1 %v8405_v15  ;;  %v9451_v12 = vpack.c.bf16 %v363_v63, %v339_v55  ;;  %v8449_v15 = vld [vmem:[#allocation7 + $0xd9c] ss:$12 sps:$4 sm:$0xff]   ;;  %v8475_v55 = vld [vmem:[#allocation7 + $0xa58] ss:$12 sps:$4 sm:$0xff]  }
 0x1ea   : > { %5068 = vmatprep.subr.bf16.mxu0 %v8404_v38  ;;  %v412_v38 = vld [vmem:[%s9062_s19 + $0x2c8] sm:$0xff]  ;;  %v342_v63 = vld [vmem:[%s9062_s19 + $0x98] sm:$0xff] }
 0x1eb   : > { %5637 = vmatmul.mubr.bf16.vlgmr.msra.gmra.mrb[80].mxu1 %v9179_v17  ;;  %v8417_v17 = vld [vmem:[#allocation7 + $0xd08] ss:$12 sps:$4 sm:$0xff]  }
 0x1ec   : > { %7349 = vmatpush3.bf16.msra.mxu1 %v8406_v61  ;;  %5644 = vmatprep.mubr.bf16.mxu1 %v9188_v33  ;;  %v8422_v33 = vld [vmem:[#allocation7 + $0xd20] ss:$12 sps:$4 sm:$0xff]   ;;  %v8447_v61 = vld [vmem:[#allocation7 + $0xd98] ss:$12 sps:$4 sm:$0xff]  }
 0x1ed   : > { %5069 = vmatpush1.bf16.msra.mxu0 %v8402_v31  ;;  %7350 = vmatprep.subr.bf16.mxu1 %v8410_v1  ;;  %v8450_v31 = vld [vmem:[#allocation7 + $0x9e0] ss:$12 sps:$4 sm:$0xff]  }
 0x1ee   : > { %5070 = vmatprep.subr.bf16.mxu0 %v8409_v21  ;;  %v9455_v21 = vpack.c.bf16 %v412_v38, %v388_v13  ;;  %v387_v1 = vld [vmem:[%s9062_s19 + $0x200] sm:$0xff]  ;;  %v366_v13 = vld [vmem:[%s9062_s19 + $0x158] sm:$0xff] }
 0x1f0   : > { %7351 = vmatpush3.bf16.msra.mxu1 %v8411_v35  ;;  %v8454_v35 = vld [vmem:[#allocation7 + $0xdb4] ss:$12 sps:$4 sm:$0xff]  }
 0x1f1   : > { %5071 = vmatpush1.bf16.msra.mxu0 %v8407_v34  ;;  %7352 = vmatprep.subr.bf16.mxu1 %v8415_v32  ;;  %v411_v34 = vld [vmem:[%s9062_s19 + $0x2c0] sm:$0xff]  ;;  %v8452_v32 = vld [vmem:[#allocation7 + $0xdb0] ss:$12 sps:$4 sm:$0xff]  }
 0x1f2   : > { %5072 = vmatprep.subr.bf16.mxu0 %v8414_v52  ;;  %v8455_v52 = vld [vmem:[#allocation7 + $0x9f8] ss:$12 sps:$4 sm:$0xff]  }
 0x1f3   : > { %5645 = vmatmul.mubr.bf16.gmra.mrb[84].mxu1 %v9199_v45  ;;  %v8427_v45 = vld [vmem:[#allocation7 + $0xd38] ss:$12 sps:$4 sm:$0xff]  }
 0x1f4   : > { %7353 = vmatpush3.bf16.msra.mxu1 %v8416_v25  ;;  %5652 = vmatprep.mubr.bf16.mxu1 %v9208_v60  ;;  %v8432_v60 = vld [vmem:[#allocation7 + $0xd50] ss:$12 sps:$4 sm:$0xff]   ;;  %v460_v25 = vld [vmem:[%s9062_s19 + $0x448] sm:$0xff] }
 0x1f5   : > { %5073 = vmatpush1.bf16.msra.mxu0 %v8412_v18  ;;  %7354 = vmatprep.subr.bf16.mxu1 %v8420_v50  ;;  %v9463_v18 = vpack.c.bf16 %v411_v34, %v387_v1  ;;  %v8459_v50 = vld [vmem:[#allocation7 + $0xdcc] ss:$12 sps:$4 sm:$0xff]   ;;  %v9499_v1 = vpack.c.bf16 %v366_v13, %v342_v63  ;;  %v8477_v34 = vld [vmem:[#allocation7 + $0xe28] ss:$12 sps:$4 sm:$0xff]  }
 0x1f6   : > { %5074 = vmatprep.subr.bf16.mxu0 %v8419_v24  ;;  %v8456_v24 = vld [vmem:[#allocation7 + $0x938] ss:$12 sps:$4 sm:$0xff]   ;;  %v8506_v63 = vld [vmem:[#allocation7 + $0xae8] ss:$12 sps:$4 sm:$0xff]   ;;  %v8510_v13 = vld [vmem:[#allocation7 + $0xbc0] ss:$12 sps:$4 sm:$0xff]  }
 0x1f8   : > { %7355 = vmatpush3.bf16.msra.mxu1 %v8421_v6  ;;  %v8457_v6 = vld [vmem:[#allocation7 + $0xdc8] ss:$12 sps:$4 sm:$0xff]  }
 0x1f9   : > { %5075 = vmatpush1.bf16.msra.mxu0 %v8417_v17  ;;  %7356 = vmatprep.subr.bf16.mxu1 %v8425_v53  ;;  %v8460_v17 = vld [vmem:[#allocation7 + $0xa10] ss:$12 sps:$4 sm:$0xff]  }
 0x1fa   : > { %5076 = vmatprep.subr.bf16.mxu0 %v8424_v49  ;;  %v8461_v49 = vld [vmem:[#allocation7 + $0x950] ss:$12 sps:$4 sm:$0xff]  }
 0x1fb   : > { %5653 = vmatmul.mubr.bf16.gmra.mrb[88].mxu1 %v9219_v8  ;;  %v8440_v8 = vld [vmem:[#allocation7 + $0x8f0] ss:$12 sps:$4 sm:$0xff]  }
 0x1fc   : > { %7357 = vmatpush3.bf16.msra.mxu1 %v8426_v59  ;;  %5660 = vmatprep.mubr.bf16.mxu1 %v9228_v26  ;;  %v8444_v26 = vld [vmem:[#allocation7 + $0xd84] ss:$12 sps:$4 sm:$0xff]  }
 0x1fd   : > { %5077 = vmatpush1.bf16.msra.mxu0 %v8422_v33  ;;  %7358 = vmatprep.subr.bf16.mxu1 %v8430_v44  ;;  %v8464_v53 = vld [vmem:[#allocation7 + $0xde4] ss:$12 sps:$4 sm:$0xff]   ;;  %v8462_v44 = vld [vmem:[#allocation7 + $0xde0] ss:$12 sps:$4 sm:$0xff]  }
 0x1fe   : > { %5078 = vmatprep.subr.bf16.mxu0 %v8429_v9  ;;  %v435_v33 = vld [vmem:[%s9062_s19 + $0x380] sm:$0xff]  ;;  %v8465_v9 = vld [vmem:[#allocation7 + $0xa28] ss:$12 sps:$4 sm:$0xff]  }
 0x1ff   : > { %v459_v59 = vld [vmem:[%s9062_s19 + $0x440] sm:$0xff] }
 0x200   : > { %7359 = vmatpush3.bf16.msra.mxu1 %v8431_v43  ;;  %v484_v43 = vld [vmem:[%s9062_s19 + $0x508] sm:$0xff] }
 0x201   : > { %5079 = vmatpush1.bf16.msra.mxu0 %v8427_v45  ;;  %7360 = vmatprep.subr.bf16.mxu1 %v8435_v28  ;;  %v8466_v45 = vld [vmem:[#allocation7 + $0x968] ss:$12 sps:$4 sm:$0xff]  }
 0x202   : > { %5080 = vmatprep.subr.bf16.mxu0 %v8434_v62  ;;  %v508_v62 = vld [vmem:[%s9062_s19 + $0x5c8] sm:$0xff] }
 0x203   : > { %5661 = vmatmul.mubr.bf16.gmra.mrb[92].mxu1 %v9242_v46  ;;  %v8446_v46 = vld [vmem:[#allocation7 + $0x908] ss:$12 sps:$4 sm:$0xff]  }
 0x204   : > { %7361 = vmatpush3.bf16.msra.mxu1 %v8436_v37  ;;  %5701 = vmatprep.mubr.bf16.mxu1 %v9247_v56  ;;  %v8451_v56 = vld [vmem:[#allocation7 + $0x920] ss:$12 sps:$4 sm:$0xff]   ;;  %v8469_v28 = vld [vmem:[#allocation7 + $0xdfc] ss:$12 sps:$4 sm:$0xff]   ;;  %v8467_v37 = vld [vmem:[#allocation7 + $0xdf8] ss:$12 sps:$4 sm:$0xff]  }
 0x205   : > { %5081 = vmatpush1.bf16.msra.mxu0 %v8432_v60  ;;  %7362 = vmatprep.subr.bf16.mxu1 %v8440_v8  ;;  %v8470_v60 = vld [vmem:[#allocation7 + $0xa40] ss:$12 sps:$4 sm:$0xff]  }
 0x206   : > { %5082 = vmatprep.subr.bf16.mxu0 %v8439_v54  ;;  %v8471_v54 = vld [vmem:[#allocation7 + $0x980] ss:$12 sps:$4 sm:$0xff]  }
 0x207   : > { %v8474_v8 = vld [vmem:[#allocation7 + $0xe14] ss:$12 sps:$4 sm:$0xff]  }
 0x208   : > { %7363 = vmatpush3.bf16.msra.mxu1 %v8441_v29  ;;  %v507_v29 = vld [vmem:[%s9062_s19 + $0x5c0] sm:$0xff] }
 0x209   : > { %5083 = vmatpush1.bf16.msra.mxu0 %v8437_v10  ;;  %7388 = vmatprep.subr.bf16.mxu1 %v8445_v23  ;;  %v483_v10 = vld [vmem:[%s9062_s19 + $0x500] sm:$0xff] }
 0x20a   : > { %5125 = vmatprep.subr.bf16.mxu0 %v8444_v26  ;;  %v10072_v23 = vld [vmem:[#allocation13_spill] sm:$0xff]  ;;  %v9493_v38 = vpack.c.bf16 %v507_v29, %v483_v10  ;;  %v8502_v29 = vld [vmem:[#allocation7 + $0xea0] ss:$12 sps:$4 sm:$0xff]  }
 0x20b   : > { %5702 = vmatmul.mubr.bf16.vlgmr.msra.gmra.mrb[96].mxu1 %v9262_v22  ;;  %v436_v22 = vld [vmem:[%s9062_s19 + $0x388] sm:$0xff] }
 0x20c   : > { %5085 = vmatmul.mubr.bf16.vlgmr.msra.gmra.mrb[0].mxu0 %v9451_v12  ;;  %7389 = vmatpush3.bf16.msra.mxu1 %v8446_v46 }
 0x20d   : > { %5126 = vmatpush1.bf16.msra.mxu0 %v8442_v20  ;;  %7390 = vmatprep.subr.bf16.mxu1 %v8450_v31  ;;  %v8472_v20 = vld [vmem:[#allocation7 + $0xe10] ss:$12 sps:$4 sm:$0xff]   ;;  %v8479_v31 = vld [vmem:[#allocation7 + $0xe2c] ss:$12 sps:$4 sm:$0xff]  }
 0x20e   : > { %5127 = vmatprep.subr.bf16.mxu0 %v8449_v15  ;;  %5709 = vmatprep.mubr.bf16.mxu1 %v9269_v47  ;;  %v9467_v47 = vpack.c.bf16 %v460_v25, %v436_v22  ;;  %v8476_v15 = vld [vmem:[#allocation7 + $0x998] ss:$12 sps:$4 sm:$0xff]   ;;  %v8482_v25 = vld [vmem:[#allocation7 + $0xe40] ss:$12 sps:$4 sm:$0xff]  }
 0x20f   : > { %5094 = vmatprep.mubr.bf16.mxu0 %v9455_v21 }
 0x210   : > { %7391 = vmatpush3.bf16.msra.mxu1 %v8451_v56  ;;  %v8480_v56 = vld [vmem:[#allocation7 + $0xa70] ss:$12 sps:$4 sm:$0xff]  }
 0x211   : > { %5128 = vmatpush1.bf16.msra.mxu0 %v8447_v61  ;;  %7392 = vmatprep.subr.bf16.mxu1 %v8455_v52  ;;  %v8484_v52 = vld [vmem:[#allocation7 + $0xe44] ss:$12 sps:$4 sm:$0xff]  }
 0x212   : > { %5129 = vmatprep.subr.bf16.mxu0 %v8454_v35  ;;  %v8481_v35 = vld [vmem:[#allocation7 + $0x9b0] ss:$12 sps:$4 sm:$0xff]  }
 0x213   : > { %5710 = vmatmul.mubr.bf16.gmra.mrb[100].mxu1 %v9282_v2  ;;  %v9476_v2 = vpack.c.bf16 %v459_v59, %v435_v33  ;;  %v8494_v33 = vld [vmem:[#allocation7 + $0xe74] ss:$12 sps:$4 sm:$0xff]   ;;  %v8495_v59 = vld [vmem:[#allocation7 + $0xb78] ss:$12 sps:$4 sm:$0xff]  }
 0x214   : > { %5095 = vmatmul.mubr.bf16.gmra.mrb[4].mxu0 %v9463_v18  ;;  %7393 = vmatpush3.bf16.msra.mxu1 %v8456_v24 }
 0x215   : > { %5130 = vmatpush1.bf16.msra.mxu0 %v8452_v32  ;;  %7394 = vmatprep.subr.bf16.mxu1 %v8460_v17  ;;  %v8485_v32 = vld [vmem:[#allocation7 + $0xb48] ss:$12 sps:$4 sm:$0xff]  }
 0x216   : > { %5131 = vmatprep.subr.bf16.mxu0 %v8459_v50  ;;  %5717 = vmatprep.mubr.bf16.mxu1 %v9289_v27  ;;  %v9479_v27 = vpack.c.bf16 %v508_v62, %v484_v43  ;;  %v8489_v50 = vld [vmem:[#allocation7 + $0xe5c] ss:$12 sps:$4 sm:$0xff]   ;;  %v8496_v43 = vld [vmem:[#allocation7 + $0xab8] ss:$12 sps:$4 sm:$0xff]  }
 0x217   : > { %5104 = vmatprep.mubr.bf16.mxu0 %v9467_v47 }
 0x218   : > { %7395 = vmatpush3.bf16.msra.mxu1 %v8461_v49  ;;  %v8490_v49 = vld [vmem:[#allocation7 + $0xb60] ss:$12 sps:$4 sm:$0xff]  }
 0x219   : > { %5132 = vmatpush1.bf16.msra.mxu0 %v8457_v6  ;;  %7396 = vmatprep.subr.bf16.mxu1 %v8465_v9 }
 0x21a   : > { %5133 = vmatprep.subr.bf16.mxu0 %v8464_v53  ;;  %v8487_v53 = vld [vmem:[#allocation7 + $0xe58] ss:$12 sps:$4 sm:$0xff]  }
 0x21b   : > { %5718 = vmatmul.mubr.bf16.gmra.mrb[104].mxu1 %v9302_v51 }
 0x21c   : > { %5105 = vmatmul.mubr.bf16.gmra.mrb[8].mxu0 %v9476_v2  ;;  %7397 = vmatpush3.bf16.msra.mxu1 %v8466_v45 }
 0x21d   : > { %5134 = vmatpush1.bf16.msra.mxu0 %v8462_v44  ;;  %7398 = vmatprep.subr.bf16.mxu1 %v8470_v60  ;;  %v8492_v44 = vld [vmem:[#allocation7 + $0xe70] ss:$12 sps:$4 sm:$0xff]  }
 0x21e   : > { %5135 = vmatprep.subr.bf16.mxu0 %v8469_v28  ;;  %v9486_v26 = vpop.f32.mrb[0].mxu1  ;;  %5725 = vmatprep.mubr.bf16.mxu1 %v10072_v23  ;;  %v8499_v28 = vld [vmem:[#allocation7 + $0xe8c] ss:$12 sps:$4 sm:$0xff]   ;;  %v8500_v60 = vld [vmem:[#allocation7 + $0xb90] ss:$12 sps:$4 sm:$0xff]  }
 0x21f   : > { %5114 = vmatprep.mubr.bf16.mxu0 %v9479_v27  ;;  %v9491_v51 = vpop.f32.mrb[1].mxu1 }
 0x220   : > { %v9495_v46 = vpop.f32.mrb[2].mxu1  ;;  %7399 = vmatpush3.bf16.msra.mxu1 %v8471_v54  ;;  %v8501_v54 = vld [vmem:[#allocation7 + $0xad0] ss:$12 sps:$4 sm:$0xff]  }
 0x221   : > { %5136 = vmatpush1.bf16.msra.mxu0 %v8467_v37  ;;  %v9497_v61 = vpop.f32.mrb[3].mxu1  ;;  %7400 = vmatprep.subr.bf16.mxu1 %v8475_v55  ;;  %v8497_v37 = vld [vmem:[#allocation7 + $0xe88] ss:$12 sps:$4 sm:$0xff]  }
 0x222   : > { %5137 = vmatprep.subr.bf16.mxu0 %v8474_v8  ;;  %v8505_v8 = vld [vmem:[#allocation7 + $0xba8] ss:$12 sps:$4 sm:$0xff]  }
 0x223   : > { %5726 = vmatmul.mubr.bf16.gmra.mrb[108].mxu1 %v9320_v40  ;;  %v8486_v40 = vld [vmem:[#allocation7 + $0xa88] ss:$12 sps:$4 sm:$0xff]  }
 0x224   : > { %5115 = vmatmul.mubr.bf16.gmra.mrb[12].mxu0 %v9493_v38  ;;  %7401 = vmatpush3.bf16.msra.mxu1 %v8476_v15  ;;  %v8507_v15 = vld [vmem:[#allocation7 + $0xeb8] ss:$12 sps:$4 sm:$0xff]  }
 0x225   : > { %5138 = vmatpush1.bf16.msra.mxu0 %v8472_v20  ;;  %7402 = vmatprep.subr.bf16.mxu1 %v8480_v56  ;;  %v8509_v20 = vld [vmem:[#allocation7 + $0xebc] ss:$12 sps:$4 sm:$0xff]   ;;  %v8515_v56 = vld [vmem:[#allocation7 + $0xbd8] ss:$12 sps:$4 sm:$0xff]  }
 0x226   : > { %5139 = vmatprep.subr.bf16.mxu0 %v8479_v31  ;;  %v9503_v22 = vpop.f32.mrb[4].mxu1  ;;  %5766 = vmatprep.mubr.bf16.mxu1 %v9323_v3  ;;  %v8491_v3 = vld [vmem:[#allocation7 + $0xaa0] ss:$12 sps:$4 sm:$0xff]  }
 0x227   : > { %5157 = vmatprep.mubr.bf16.mxu0 %v9499_v1  ;;  %v9507_v24 = vpop.f32.mrb[5].mxu1  ;;  %v8511_v31 = vld [vmem:[#allocation7 + $0xb00] ss:$12 sps:$4 sm:$0xff]  }
 0x228   : > { %v9509_v17 = vpop.f32.mrb[6].mxu1  ;;  %7403 = vmatpush3.bf16.msra.mxu1 %v8481_v35  ;;  %v8512_v35 = vld [vmem:[#allocation7 + $0xed0] ss:$12 sps:$4 sm:$0xff]  }
 0x229   : > { %5140 = vmatpush1.bf16.msra.mxu0 %v8477_v34  ;;  %v9511_v6 = vpop.f32.mrb[7].mxu1  ;;  %7428 = vmatprep.subr.bf16.mxu1 %v8485_v32  ;;  %v8516_v32 = vld [vmem:[#allocation7 + $0xb18] ss:$12 sps:$4 sm:$0xff]  }
 0x22a   : > { %5141 = vmatprep.subr.bf16.mxu0 %v8484_v52 }
 0x22b   : > { %5767 = vmatmul.mubr.bf16.vlgmr.msra.gmra.mrb[112].mxu1 %v9340_v14 }
 0x22c   : > { %7429 = vmatpush3.bf16.msra.mxu1 %v8486_v40  ;;  %5774 = vmatprep.mubr.bf16.mxu1 %v9343_v4  ;;  %v8504_v4 = vld [vmem:[#allocation7 + $0xea4] ss:$12 sps:$4 sm:$0xff]  }
 0x22d   : > { %5142 = vmatpush1.bf16.msra.mxu0 %v8482_v25  ;;  %7430 = vmatprep.subr.bf16.mxu1 %v8490_v49  ;;  %v8520_v49 = vld [vmem:[#allocation7 + $0xbf0] ss:$12 sps:$4 sm:$0xff]  }
 0x22e   : > { %5143 = vmatprep.subr.bf16.mxu0 %v8489_v50  ;;  %v9514_v9 = vpop.f32.mrb[8].mxu1  ;;  %v8519_v50 = vld [vmem:[#allocation7 + $0xeec] ss:$12 sps:$4 sm:$0xff]  }
 0x22f   : > { %v9517_v45 = vpop.f32.mrb[9].mxu1 }
 0x230   : > { %v9519_v62 = vpop.f32.mrb[10].mxu1  ;;  %7431 = vmatpush3.bf16.msra.mxu1 %v8491_v3  ;;  %v8517_v3 = vld [vmem:[#allocation7 + $0xee8] ss:$12 sps:$4 sm:$0xff]  }
 0x231   : > { %5144 = vmatpush1.bf16.msra.mxu0 %v8487_v53  ;;  %v9521_v14 = vpop.f32.mrb[11].mxu1  ;;  %7432 = vmatprep.subr.bf16.mxu1 %v8495_v59  ;;  %v341_v59 = vld [vmem:[%s9062_s19 + $0x90] sm:$0xff] }
 0x232   : > { %5145 = vmatprep.subr.bf16.mxu0 %v8494_v33  ;;  %v8524_v33 = vld [vmem:[#allocation7 + $0xf04] ss:$12 sps:$4 sm:$0xff]  }
 0x233   : > { %5775 = vmatmul.mubr.bf16.gmra.mrb[116].mxu1 %v9352_v48 }
 0x234   : > { %7433 = vmatpush3.bf16.msra.mxu1 %v8496_v43  ;;  %5782 = vmatprep.mubr.bf16.mxu1 %v9355_v42  ;;  %v8514_v42 = vld [vmem:[#allocation7 + $0xed4] ss:$12 sps:$4 sm:$0xff]  }
 0x235   : > { %5146 = vmatpush1.bf16.msra.mxu0 %v8492_v44  ;;  %7434 = vmatprep.subr.bf16.mxu1 %v8500_v60  ;;  %v365_v44 = vld [vmem:[%s9062_s19 + $0x150] sm:$0xff]  ;;  %v8522_v60 = vld [vmem:[#allocation7 + $0xf00] ss:$12 sps:$4 sm:$0xff]  }
 0x236   : > { %5147 = vmatprep.subr.bf16.mxu0 %v8499_v28  ;;  %v9524_v10 = vpop.f32.mrb[12].mxu1  ;;  %v8525_v43 = vld [vmem:[#allocation7 + $0xcc8] ss:$12 sps:$4 sm:$0xff]  }
 0x237   : > { %v9527_v55 = vpop.f32.mrb[13].mxu1 }
 0x238   : > { %v9529_v23 = vpop.f32.mrb[14].mxu1  ;;  %7435 = vmatpush3.bf16.msra.mxu1 %v8501_v54 }
 0x239   : > { %5148 = vmatpush1.bf16.msra.mxu0 %v8497_v37  ;;  %v9531_v48 = vpop.f32.mrb[15].mxu1  ;;  %7436 = vmatprep.subr.bf16.mxu1 %v8505_v8  ;;  %v8526_v37 = vld [vmem:[#allocation7 + $0xc08] ss:$12 sps:$4 sm:$0xff]   ;;  %v414_v8 = vld [vmem:[%s9062_s19 + $0x2d8] sm:$0xff] }
 0x23a   : > { %5149 = vmatprep.subr.bf16.mxu0 %v8504_v4  ;;  %v9543_v4 = vpack.c.bf16 %v365_v44, %v341_v59 }
 0x23b   : > { %5783 = vmatmul.mubr.bf16.gmra.mrb[120].mxu1 %v9364_v19 }
 0x23c   : > { %7437 = vmatpush3.bf16.msra.mxu1 %v8506_v63  ;;  %5790 = vmatprep.mubr.bf16.mxu1 %v9367_v5  ;;  %v8521_v5 = vld [vmem:[#allocation7 + $0xb30] ss:$12 sps:$4 sm:$0xff]  }
 0x23d   : > { %5150 = vmatpush1.bf16.msra.mxu0 %v8502_v29  ;;  %7438 = vmatprep.subr.bf16.mxu1 %v8510_v13  ;;  %v8529_v13 = vld [vmem:[#allocation7 + $0xf1c] ss:$12 sps:$4 sm:$0xff]  }
 0x23e   : > { %5151 = vmatprep.subr.bf16.mxu0 %v8509_v20  ;;  %v7164_v34 = vpop.f32.mrb[16].mxu1 }
 0x23f   : > { %v7165_v52 = vpop.f32.mrb[17].mxu1 }
 0x240   : > { %v9535_v25 = vadd.f32 %v7165_v52, %v7164_v34  ;;  %v7167_v19 = vpop.f32.mrb[18].mxu1  ;;  %7439 = vmatpush3.bf16.msra.mxu1 %v8511_v31  ;;  %v8527_v31 = vld [vmem:[#allocation7 + $0xf18] ss:$12 sps:$4 sm:$0xff]   ;;  %v8534_v34 = vld [vmem:[#allocation7 + $0xf34] ss:$12 sps:$4 sm:$0xff]  }
 0x241   : > { %5152 = vmatpush1.bf16.msra.mxu0 %v8507_v15  ;;  %v7168_v40 = vpop.f32.mrb[19].mxu1  ;;  %7440 = vmatprep.subr.bf16.mxu1 %v8515_v56  ;;  %v8530_v15 = vld [vmem:[#allocation7 + $0xce0] ss:$12 sps:$4 sm:$0xff]   ;;  %v413_v52 = vld [vmem:[%s9062_s19 + $0x2d0] sm:$0xff] }
 0x242   : > { %5153 = vmatprep.subr.bf16.mxu0 %v8514_v42  ;;  %v9537_v53 = vadd.f32 %v7168_v40, %v7167_v19  ;;  %v8531_v56 = vld [vmem:[#allocation7 + $0xc20] ss:$12 sps:$4 sm:$0xff]   ;;  %v8532_v40 = vld [vmem:[#allocation7 + $0xf30] ss:$12 sps:$4 sm:$0xff]  }
 0x243   : > { %5791 = vmatmul.mubr.bf16.gmra.mrb[124].mxu1 %v9376_v7  ;;  %v390_v7 = vld [vmem:[%s9062_s19 + $0x218] sm:$0xff] }
 0x244   : > { %7441 = vmatpush3.bf16.msra.mxu1 %v8516_v32  ;;  %5831 = vmatprep.mubr.bf16.mxu1 %v9379_v30  ;;  %v9551_v42 = vpack.c.bf16 %v414_v8, %v390_v7  ;;  %v8535_v32 = vld [vmem:[#allocation7 + $0xcf8] ss:$12 sps:$4 sm:$0xff]   ;;  %v8541_v7 = vld [vmem:[#allocation7 + $0xc50] ss:$12 sps:$4 sm:$0xff]  }
 0x245   : > { %5154 = vmatpush1.bf16.msra.mxu0 %v8512_v35  ;;  %7442 = vmatprep.subr.bf16.mxu1 %v8520_v49  ;;  %v389_v35 = vld [vmem:[%s9062_s19 + $0x210] sm:$0xff] }
 0x246   : > { %5155 = vmatprep.subr.bf16.mxu0 %v8519_v50  ;;  %v7170_v28 = vpop.f32.mrb[20].mxu1  ;;  %v8536_v50 = vld [vmem:[#allocation7 + $0xc38] ss:$12 sps:$4 sm:$0xff]  }
 0x247   : > { %v7171_v54 = vpop.f32.mrb[21].mxu1 }
 0x248   : > { %v9547_v29 = vadd.f32 %v7171_v54, %v7170_v28  ;;  %v7173_v63 = vpop.f32.mrb[22].mxu1  ;;  %7443 = vmatpush3.bf16.msra.mxu1 %v8521_v5  ;;  %v462_v5 = vld [vmem:[%s9062_s19 + $0x458] sm:$0xff] }
 0x249   : > { %5156 = vmatpush1.bf16.msra.mxu0 %v8517_v3  ;;  %v7174_v20 = vpop.f32.mrb[23].mxu1  ;;  %7468 = vmatprep.subr.bf16.mxu1 %v8525_v43  ;;  %v9560_v3 = vpack.c.bf16 %v413_v52, %v389_v35  ;;  %v8540_v28 = vld [vmem:[#allocation7 + $0xd10] ss:$12 sps:$4 sm:$0xff]  }
 0x24a   : > { %5198 = vmatprep.subr.bf16.mxu0 %v8524_v33  ;;  %v9549_v30 = vadd.f32 %v7174_v20, %v7173_v63  ;;  %v1381_v33 = vlaneseq  ;;  %v8544_v63 = vld [vmem:[#allocation7 + $0xf64] ss:$12 sps:$4 sm:$0xff]  }
 0x24b   : > { %5832 = vmatmul.mubr.bf16.vlgmr.msra.gmra.mrb[128].mxu1 %v9396_v0  ;;  %v438_v0 = vld [vmem:[%s9062_s19 + $0x398] sm:$0xff]  ;;  %v437_v20 = vld [vmem:[%s9062_s19 + $0x390] sm:$0xff] }
 0x24c   : > { %5158 = vmatmul.mubr.bf16.vlgmr.msra.gmra.mrb[0].mxu0 %v9543_v4  ;;  %7469 = vmatpush3.bf16.msra.mxu1 %v8526_v37  ;;  %v8537_v37 = vld [vmem:[#allocation7 + $0xf48] ss:$12 sps:$4 sm:$0xff]   ;;  %v9567_v54 = vpack.c.bf16 %v462_v5, %v438_v0  ;;  %v9571_v8 = vshrl.u32 %v1381_v33, 7  ;;  %v8550_v5 = vld [vmem:[#allocation7 + $0xd40] ss:$12 sps:$4 sm:$0xff]  }
 0x24d   : > { %5199 = vmatpush1.bf16.msra.mxu0 %v8522_v60  ;;  %7470 = vmatprep.subr.bf16.mxu1 %v8530_v15  ;;  %v8545_v15 = vld [vmem:[#allocation7 + $0xd28] ss:$12 sps:$4 sm:$0xff]  }
 0x24e   : > { %5200 = vmatprep.subr.bf16.mxu0 %v8529_v13  ;;  %v7176_v19 = vpop.f32.mrb[24].mxu1  ;;  %5839 = vmatprep.mubr.bf16.mxu1 %v9399_v58  ;;  %v8539_v58 = vld [vmem:[#allocation7 + $0xf4c] ss:$12 sps:$4 sm:$0xff]   ;;  %v461_v13 = vld [vmem:[%s9062_s19 + $0x450] sm:$0xff]  ;;  %v8549_v0 = vld [vmem:[#allocation7 + $0xf7c] ss:$12 sps:$4 sm:$0xff]  }
 0x24f   : > { %5167 = vmatprep.mubr.bf16.mxu0 %v9551_v42  ;;  %v7177_v49 = vpop.f32.mrb[25].mxu1  ;;  %v9578_v52 = vpack.c.bf16 %v461_v13, %v437_v20  ;;  %v8555_v20 = vld [vmem:[#allocation7 + $0xd58] ss:$12 sps:$4 sm:$0xff]  }
 0x250   : > { %v9563_v59 = vadd.f32 %v7177_v49, %v7176_v19  ;;  %v7179_v44 = vpop.f32.mrb[26].mxu1  ;;  %7471 = vmatpush3.bf16.msra.mxu1 %v8531_v56  ;;  %v8542_v56 = vld [vmem:[#allocation7 + $0xf60] ss:$12 sps:$4 sm:$0xff]   ;;  %v510_v19 = vld [vmem:[%s9062_s19 + $0x5d8] sm:$0xff] }
 0x251   : > { %5201 = vmatpush1.bf16.msra.mxu0 %v8527_v31  ;;  %v7180_v43 = vpop.f32.mrb[27].mxu1  ;;  %7472 = vmatprep.subr.bf16.mxu1 %v8535_v32  ;;  %v486_v32 = vld [vmem:[%s9062_s19 + $0x518] sm:$0xff]  ;;  %v1379_v49 = vld [vmem:[#allocation9] sm:$0x7] }
 0x252   : > { %5202 = vmatprep.subr.bf16.mxu0 %v8534_v34  ;;  %v9565_v60 = vadd.f32 %v7180_v43, %v7179_v44  ;;  %v1391_v34 = vsub.s32 2, %v9571_v8  ;;  %v8547_v44 = vld [vmem:[#allocation7 + $0xf78] ss:$12 sps:$4 sm:$0xff]   ;;  %v8551_v43 = vld [vmem:[#allocation7 + $0xc80] ss:$12 sps:$4 sm:$0xff]  }
 0x253   : > { %5840 = vmatmul.mubr.bf16.gmra.mrb[132].mxu1 %v9408_v16  ;;  %v8546_v16 = vld [vmem:[#allocation7 + $0xc68] ss:$12 sps:$4 sm:$0xff]  }
 0x254   : > { %5168 = vmatmul.mubr.bf16.gmra.mrb[4].mxu0 %v9560_v3  ;;  %7473 = vmatpush3.bf16.msra.mxu1 %v8536_v50 }
 0x255   : > { %5203 = vmatpush1.bf16.msra.mxu0 %v8532_v40  ;;  %7474 = vmatprep.subr.bf16.mxu1 %v8540_v28  ;;  %v8554_v28 = vld [vmem:[#allocation7 + $0xf94] ss:$12 sps:$4 sm:$0xff]  }
 0x256   : > { %5204 = vmatprep.subr.bf16.mxu0 %v8539_v58  ;;  %v7182_v31 = vpop.f32.mrb[28].mxu1  ;;  %5847 = vmatprep.mubr.bf16.mxu1 %v9411_v36  ;;  %v9586_v58 = vpack.c.bf16 %v510_v19, %v486_v32 }
 0x257   : > { %5177 = vmatprep.mubr.bf16.mxu0 %v9567_v54  ;;  %v7183_v35 = vpop.f32.mrb[29].mxu1 }
 0x258   : > { %v9582_v40 = vadd.f32 %v7183_v35, %v7182_v31  ;;  %v7185_v50 = vpop.f32.mrb[30].mxu1  ;;  %7475 = vmatpush3.bf16.msra.mxu1 %v8541_v7  ;;  %v9591_v7 = vrot.slane %v1379_v49, %v1391_v34  ;;  %v8556_v31 = vld [vmem:[#allocation7 + $0xc98] ss:$12 sps:$4 sm:$0xff]   ;;  %v368_v35 = vld [vmem:[%s9062_s19 + $0x168] sm:$0xff] }
 0x259   : > { %5205 = vmatpush1.bf16.msra.mxu0 %v8537_v37  ;;  %v7186_v36 = vpop.f32.mrb[31].mxu1  ;;  %7476 = vmatprep.subr.bf16.mxu1 %v8545_v15  ;;  %v485_v37 = vld [vmem:[%s9062_s19 + $0x510] sm:$0xff] }
 0x25a   : > { %5206 = vmatprep.subr.bf16.mxu0 %v8544_v63  ;;  %v9584_v33 = vadd.f32 %v7186_v36, %v7185_v50  ;;  %v509_v63 = vld [vmem:[%s9062_s19 + $0x5d0] sm:$0xff]  ;;  %v8559_v50 = vld [vmem:[#allocation7 + $0xfac] ss:$12 sps:$4 sm:$0xff]   ;;  %v5382_v49 = vadd.f32 %v9537_v53, %v9591_v7 }
 0x25b   : > { %5848 = vmatmul.mubr.bf16.gmra.mrb[136].mxu1 %v9420_v41  ;;  %v8552_v15 = vld [vmem:[#allocation7 + $0xf90] ss:$12 sps:$4 sm:$0xff]   ;;  %v344_v41 = vld [vmem:[%s9062_s19 + $0xa8] sm:$0xff]  ;;  %v9598_v19 = vpack.c.bf16 %v509_v63, %v485_v37 }
 0x25c   : > { %5178 = vmatmul.mubr.bf16.gmra.mrb[8].mxu0 %v9578_v52  ;;  %7477 = vmatpush3.bf16.msra.mxu1 %v8546_v16  ;;  %v9606_v37 = vpack.c.bf16 %v368_v35, %v344_v41  ;;  %v8565_v63 = vld [vmem:[#allocation7 + $0xe48] ss:$12 sps:$4 sm:$0xff]  }
 0x25d   : > { %5207 = vmatpush1.bf16.msra.mxu0 %v8542_v56  ;;  %7478 = vmatprep.subr.bf16.mxu1 %v8550_v5  ;;  %v5379_v56 = vadd.f32 %v9535_v25, %v9591_v7  ;;  %v8557_v25 = vld [vmem:[#allocation7 + $0xfa8] ss:$12 sps:$4 sm:$0xff]  }
 0x25e   : > { %5208 = vmatprep.subr.bf16.mxu0 %v8549_v0  ;;  %v7204_v13 = vpop.f32.mrb[32].mxu1  ;;  %5855 = vmatprep.mubr.bf16.mxu1 %v9423_v57  ;;  %v8560_v57 = vld [vmem:[#allocation7 + $0xd70] ss:$12 sps:$4 sm:$0xff]  }
 0x25f   : > { %5187 = vmatprep.mubr.bf16.mxu0 %v9586_v58  ;;  %v7205_v32 = vpop.f32.mrb[33].mxu1 }
 0x260   : > { %v7206_v16 = vadd.f32 %v7205_v32, %v7204_v13  ;;  %v7207_v34 = vpop.f32.mrb[34].mxu1  ;;  %7479 = vmatpush3.bf16.msra.mxu1 %v8551_v43  ;;  %v8561_v43 = vld [vmem:[#allocation7 + $0xcb0] ss:$12 sps:$4 sm:$0xff]  }
 0x261   : > { %5209 = vmatpush1.bf16.msra.mxu0 %v8547_v44  ;;  %v7208_v0 = vpop.f32.mrb[35].mxu1  ;;  %7480 = vmatprep.subr.bf16.mxu1 %v8555_v20  ;;  %v8562_v20 = vld [vmem:[#allocation7 + $0xfc0] ss:$12 sps:$4 sm:$0xff]  }
 0x262   : > { %5210 = vmatprep.subr.bf16.mxu0 %v8554_v28  ;;  %v9604_v36 = vadd.f32 %v7206_v16, %v5379_v56  ;;  %v7209_v5 = vadd.f32 %v7208_v0, %v7207_v34  ;;  %v8564_v28 = vld [vmem:[#allocation7 + $0xfc4] ss:$12 sps:$4 sm:$0xff]   ;;  %v8570_v56 = vld [vmem:[#allocation7 + $0xe60] ss:$12 sps:$4 sm:$0xff]  }
 0x263   : > { %5856 = vmatmul.mubr.bf16.gmra.mrb[140].mxu1 %v9432_v39  ;;  %v5387_v39 = vadd.f32 %v9547_v29, %v9591_v7  ;;  %v8571_v0 = vld [vmem:[#allocation7 + $0xda0] ss:$12 sps:$4 sm:$0xff]  }
 0x264   : > { %5188 = vmatmul.mubr.bf16.gmra.mrb[12].mxu0 %v9598_v19  ;;  %v9610_v44 = vadd.f32 %v7209_v5, %v5382_v49  ;;  %7481 = vmatpush3.bf16.msra.mxu1 %v8556_v31  ;;  %v8569_v31 = vld [vmem:[#allocation7 + $0xfdc] ss:$12 sps:$4 sm:$0xff]   ;;  %v8575_v49 = vld [vmem:[#allocation7 + $0xe78] ss:$12 sps:$4 sm:$0xff]  }
 0x265   : > { %5211 = vmatpush1.bf16.msra.mxu0 %v8552_v15  ;;  %7482 = vmatprep.subr.bf16.mxu1 %v8560_v57  ;;  %v8566_v15 = vld [vmem:[#allocation7 + $0xd88] ss:$12 sps:$4 sm:$0xff]  }
 0x266   : > { %5212 = vmatprep.subr.bf16.mxu0 %v8559_v50  ;;  %v7210_v53 = vpop.f32.mrb[36].mxu1  ;;  %5896 = vmatprep.mubr.bf16.mxu1 %v9435_v11  ;;  %v5390_v11 = vadd.f32 %v9549_v30, %v9591_v7  ;;  %v8567_v50 = vld [vmem:[#allocation7 + $0xfd8] ss:$12 sps:$4 sm:$0xff]   ;;  %v8574_v57 = vld [vmem:[#allocation7 + $0xff4] ss:$12 sps:$4 sm:$0xff]  }
 0x267   : > { %5230 = vmatprep.mubr.bf16.mxu0 %v9606_v37  ;;  %v7211_v13 = vpop.f32.mrb[37].mxu1 }
 0x268   : > { %v7212_v41 = vadd.f32 %v7211_v13, %v7210_v53  ;;  %v7213_v35 = vpop.f32.mrb[38].mxu1  ;;  %7483 = vmatpush3.bf16.msra.mxu1 %v8561_v43  ;;  %v5395_v43 = vadd.f32 %v9563_v59, %v9591_v7  ;;  %v8579_v53 = vld [vmem:[#allocation7 + $0x100c] ss:$12 sps:$4 sm:$0xff]   ;;  %v8580_v13 = vld [vmem:[#allocation7 + $0xe90] ss:$12 sps:$4 sm:$0xff]  }
 0x269   : > { %5213 = vmatpush1.bf16.msra.mxu0 %v8557_v25  ;;  %v7214_v32 = vpop.f32.mrb[39].mxu1  ;;  %7508 = vmatprep.subr.bf16.mxu1 %v8565_v63  ;;  %v8572_v25 = vld [vmem:[#allocation7 + $0xff0] ss:$12 sps:$4 sm:$0xff]   ;;  %v8576_v63 = vld [vmem:[#allocation7 + $0xdb8] ss:$12 sps:$4 sm:$0xff]  }
 0x26a   : > { %5214 = vmatprep.subr.bf16.mxu0 %v8564_v28  ;;  %v9618_v16 = vadd.f32 %v7212_v41, %v5387_v39  ;;  %v7215_v34 = vadd.f32 %v7214_v32, %v7213_v35  ;;  %v5398_v39 = vadd.f32 %v9565_v60, %v9591_v7  ;;  %v8577_v35 = vld [vmem:[#allocation7 + $0x1008] ss:$12 sps:$4 sm:$0xff]  }
 0x26b   : > { %5897 = vmatmul.mubr.bf16.vlgmr.msra.gmra.mrb[144].mxu1 %v9451_v12  ;;  %v8585_v32 = vld [vmem:[#allocation7 + $0xea8] ss:$12 sps:$4 sm:$0xff]  }
 0x26c   : > { %v9621_v29 = vadd.f32 %v7215_v34, %v5390_v11  ;;  %7509 = vmatpush3.bf16.msra.mxu1 %v8566_v15  ;;  %5904 = vmatprep.mubr.bf16.mxu1 %v9455_v21  ;;  %v8581_v15 = vld [vmem:[#allocation7 + $0xdd0] ss:$12 sps:$4 sm:$0xff]   ;;  %v8582_v11 = vld [vmem:[#allocation7 + $0x1020] ss:$12 sps:$4 sm:$0xff]   ;;  %v5403_v34 = vadd.f32 %v9582_v40, %v9591_v7 }
 0x26d   : > { %5215 = vmatpush1.bf16.msra.mxu0 %v8562_v20  ;;  %7510 = vmatprep.subr.bf16.mxu1 %v8570_v56 }
 0x26e   : > { %5216 = vmatprep.subr.bf16.mxu0 %v8569_v31  ;;  %v7216_v5 = vpop.f32.mrb[40].mxu1  ;;  %v8584_v31 = vld [vmem:[#allocation7 + $0x1024] ss:$12 sps:$4 sm:$0xff]  }
 0x26f   : > { %v7217_v30 = vpop.f32.mrb[41].mxu1 }
 0x270   : > { %v7218_v28 = vadd.f32 %v7217_v30, %v7216_v5  ;;  %v7219_v12 = vpop.f32.mrb[42].mxu1  ;;  %7511 = vmatpush3.bf16.msra.mxu1 %v8571_v0  ;;  %v8586_v0 = vld [vmem:[#allocation7 + $0xde8] ss:$12 sps:$4 sm:$0xff]   ;;  %v8590_v5 = vld [vmem:[#allocation7 + $0xec0] ss:$12 sps:$4 sm:$0xff]  }
 0x271   : > { %5217 = vmatpush1.bf16.msra.mxu0 %v8567_v50  ;;  %v7220_v20 = vpop.f32.mrb[43].mxu1  ;;  %7512 = vmatprep.subr.bf16.mxu1 %v8575_v49 }
 0x272   : > { %5218 = vmatprep.subr.bf16.mxu0 %v8574_v57  ;;  %v9628_v41 = vadd.f32 %v7218_v28, %v5395_v43  ;;  %v7221_v21 = vadd.f32 %v7220_v20, %v7219_v12  ;;  %v8589_v57 = vld [vmem:[#allocation7 + $0x103c] ss:$12 sps:$4 sm:$0xff]   ;;  %v8587_v43 = vld [vmem:[#allocation7 + $0x1038] ss:$12 sps:$4 sm:$0xff]   ;;  %v8591_v28 = vld [vmem:[#allocation7 + $0xe00] ss:$12 sps:$4 sm:$0xff]  }
 0x273   : > { %5905 = vmatmul.mubr.bf16.gmra.mrb[148].mxu1 %v9463_v18  ;;  %v8594_v12 = vld [vmem:[#allocation7 + $0x1054] ss:$12 sps:$4 sm:$0xff]   ;;  %v8592_v20 = vld [vmem:[#allocation7 + $0x1050] ss:$12 sps:$4 sm:$0xff]  }
 0x274   : > { %v9631_v59 = vadd.f32 %v7221_v21, %v5398_v39  ;;  %7513 = vmatpush3.bf16.msra.mxu1 %v8576_v63  ;;  %5912 = vmatprep.mubr.bf16.mxu1 %v9467_v47  ;;  %v8595_v63 = vld [vmem:[#allocation7 + $0xed8] ss:$12 sps:$4 sm:$0xff]  }
 0x275   : > { %5219 = vmatpush1.bf16.msra.mxu0 %v8572_v25  ;;  %7514 = vmatprep.subr.bf16.mxu1 %v8580_v13  ;;  %v5406_v25 = vadd.f32 %v9584_v33, %v9591_v7  ;;  %v8599_v39 = vld [vmem:[#allocation7 + $0x106c] ss:$12 sps:$4 sm:$0xff]  }
 0x276   : > { %5220 = vmatprep.subr.bf16.mxu0 %v8579_v53  ;;  %v7222_v56 = vpop.f32.mrb[44].mxu1 }
 0x277   : > { %v7223_v60 = vpop.f32.mrb[45].mxu1 }
 0x278   : > { %v7224_v50 = vadd.f32 %v7223_v60, %v7222_v56  ;;  %v7225_v18 = vpop.f32.mrb[46].mxu1  ;;  %7515 = vmatpush3.bf16.msra.mxu1 %v8581_v15  ;;  %v8601_v56 = vld [vmem:[#allocation7 + $0xe30] ss:$12 sps:$4 sm:$0xff]   ;;  %v367_v60 = vld [vmem:[%s9062_s19 + $0x160] sm:$0xff] }
 0x279   : > { %5221 = vmatpush1.bf16.msra.mxu0 %v8577_v35  ;;  %v7226_v49 = vpop.f32.mrb[47].mxu1  ;;  %7516 = vmatprep.subr.bf16.mxu1 %v8585_v32  ;;  %v8600_v35 = vld [vmem:[#allocation7 + $0xef0] ss:$12 sps:$4 sm:$0xff]  }
 0x27a   : > { %5222 = vmatprep.subr.bf16.mxu0 %v8584_v31  ;;  %v9638_v30 = vadd.f32 %v7224_v50, %v5403_v34  ;;  %v7227_v47 = vadd.f32 %v7226_v49, %v7225_v18  ;;  %v8604_v34 = vld [vmem:[#allocation7 + $0x1084] ss:$12 sps:$4 sm:$0xff]   ;;  %v8605_v50 = vld [vmem:[#allocation7 + $0xfc8] ss:$12 sps:$4 sm:$0xff]  }
 0x27b   : > { %5913 = vmatmul.mubr.bf16.gmra.mrb[152].mxu1 %v9476_v2  ;;  %v8596_v2 = vld [vmem:[#allocation7 + $0xe18] ss:$12 sps:$4 sm:$0xff]  }
 0x27c   : > { %v9641_v40 = vadd.f32 %v7227_v47, %v5406_v25  ;;  %7517 = vmatpush3.bf16.msra.mxu1 %v8586_v0  ;;  %5920 = vmatprep.mubr.bf16.mxu1 %v9479_v27  ;;  %v8597_v27 = vld [vmem:[#allocation7 + $0x1068] ss:$12 sps:$4 sm:$0xff]  }
 0x27d   : > { %5223 = vmatpush1.bf16.msra.mxu0 %v8582_v11  ;;  %7518 = vmatprep.subr.bf16.mxu1 %v8590_v5  ;;  %v343_v11 = vld [vmem:[%s9062_s19 + $0xa0] sm:$0xff]  ;;  %v392_v0 = vld [vmem:[%s9062_s19 + $0x228] sm:$0xff] }
 0x27e   : > { %5224 = vmatprep.subr.bf16.mxu0 %v8589_v57  ;;  %v7244_v53 = vpop.f32.mrb[48].mxu1  ;;  %v416_v57 = vld [vmem:[%s9062_s19 + $0x2e8] sm:$0xff] }
 0x27f   : > { %v7245_v33 = vpop.f32.mrb[49].mxu1  ;;  %v8602_v5 = vld [vmem:[#allocation7 + $0x1080] ss:$12 sps:$4 sm:$0xff]   ;;  %v8606_v25 = vld [vmem:[#allocation7 + $0xf08] ss:$12 sps:$4 sm:$0xff]  }
 0x280   : > { %v7246_v7 = vadd.f32 %v7245_v33, %v7244_v53  ;;  %v7247_v13 = vpop.f32.mrb[50].mxu1  ;;  %7519 = vmatpush3.bf16.msra.mxu1 %v8591_v28  ;;  %v8610_v28 = vld [vmem:[#allocation7 + $0xfe0] ss:$12 sps:$4 sm:$0xff]   ;;  %v8607_v53 = vld [vmem:[#allocation7 + $0x1098] ss:$12 sps:$4 sm:$0xff]  }
 0x281   : > { %5225 = vmatpush1.bf16.msra.mxu0 %v8587_v43  ;;  %v7248_v21 = vpop.f32.mrb[51].mxu1  ;;  %7520 = vmatprep.subr.bf16.mxu1 %v8595_v63  ;;  %v8609_v43 = vld [vmem:[#allocation7 + $0x109c] ss:$12 sps:$4 sm:$0xff]   ;;  %v9661_v63 = vpack.c.bf16 %v416_v57, %v392_v0  ;;  %v8611_v33 = vld [vmem:[#allocation7 + $0xf20] ss:$12 sps:$4 sm:$0xff]  }
 0x282   : > { %5226 = vmatprep.subr.bf16.mxu0 %v8594_v12  ;;  %v9645_v15 = vadd.f32 %v7246_v7, %v9604_v36  ;;  %v7249_v31 = vadd.f32 %v7248_v21, %v7247_v13  ;;  %v391_v7 = vld [vmem:[%s9062_s19 + $0x220] sm:$0xff]  ;;  %v8617_v0 = vld [vmem:[#allocation7 + $0x10c8] ss:$12 sps:$4 sm:$0xff]  }
 0x283   : > { %5921 = vmatmul.mubr.bf16.gmra.mrb[156].mxu1 %v9493_v38  ;;  %v9654_v38 = vpack.c.bf16 %v367_v60, %v343_v11  ;;  %v415_v13 = vld [vmem:[%s9062_s19 + $0x2e0] sm:$0xff] }
 0x284   : > { %v9649_v32 = vadd.f32 %v7249_v31, %v9610_v44  ;;  %7521 = vmatpush3.bf16.msra.mxu1 %v8596_v2  ;;  %5961 = vmatprep.mubr.bf16.mxu1 %v9499_v1  ;;  %v8615_v2 = vld [vmem:[#allocation7 + $0xff8] ss:$12 sps:$4 sm:$0xff]   ;;  %v9672_v21 = vpack.c.bf16 %v415_v13, %v391_v7  ;;  %v8626_v7 = vld [vmem:[#allocation7 + $0xf68] ss:$12 sps:$4 sm:$0xff]  }
 0x285   : > { %5227 = vmatpush1.bf16.msra.mxu0 %v8592_v20  ;;  %7522 = vmatprep.subr.bf16.mxu1 %v8600_v35  ;;  %v464_v35 = vld [vmem:[%s9062_s19 + $0x468] sm:$0xff]  ;;  %v8616_v11 = vld [vmem:[#allocation7 + $0xf38] ss:$12 sps:$4 sm:$0xff]  }
 0x286   : > { %5228 = vmatprep.subr.bf16.mxu0 %v8599_v39  ;;  %v7250_v36 = vpop.f32.mrb[52].mxu1 }
 0x287   : > { %v7251_v18 = vpop.f32.mrb[53].mxu1 }
 0x288   : > { %v7252_v49 = vadd.f32 %v7251_v18, %v7250_v36  ;;  %v7253_v44 = vpop.f32.mrb[54].mxu1  ;;  %7523 = vmatpush3.bf16.msra.mxu1 %v8601_v56  ;;  %v8612_v56 = vld [vmem:[#allocation7 + $0x10b0] ss:$12 sps:$4 sm:$0xff]  }
 0x289   : > { %5229 = vmatpush1.bf16.msra.mxu0 %v8597_v27  ;;  %v7254_v47 = vpop.f32.mrb[55].mxu1  ;;  %7548 = vmatprep.subr.bf16.mxu1 %v8605_v50 }
 0x28a   : > { %5271 = vmatprep.subr.bf16.mxu0 %v8604_v34  ;;  %v9659_v1 = vadd.f32 %v7252_v49, %v9618_v16  ;;  %v7255_v12 = vadd.f32 %v7254_v47, %v7253_v44  ;;  %v8614_v16 = vld [vmem:[#allocation7 + $0x10b4] ss:$12 sps:$4 sm:$0xff]   ;;  %v8619_v34 = vld [vmem:[#allocation7 + $0x10cc] ss:$12 sps:$4 sm:$0xff]   ;;  %v8621_v49 = vld [vmem:[#allocation7 + $0xf50] ss:$12 sps:$4 sm:$0xff]  }
 0x28b   : > { %5962 = vmatmul.mubr.bf16.vlgmr.msra.gmra.mrb[160].mxu1 %v9543_v4  ;;  %v439_v44 = vld [vmem:[%s9062_s19 + $0x3a0] sm:$0xff] }
 0x28c   : > { %5231 = vmatmul.mubr.bf16.vlgmr.msra.gmra.mrb[0].mxu0 %v9654_v38  ;;  %v9666_v20 = vadd.f32 %v7255_v12, %v9621_v29  ;;  %7549 = vmatpush3.bf16.msra.mxu1 %v8606_v25  ;;  %v440_v29 = vld [vmem:[%s9062_s19 + $0x3a8] sm:$0xff] }
 0x28d   : > { %5272 = vmatpush1.bf16.msra.mxu0 %v8602_v5  ;;  %7550 = vmatprep.subr.bf16.mxu1 %v8610_v28  ;;  %v9679_v18 = vpack.c.bf16 %v464_v35, %v440_v29  ;;  %v463_v5 = vld [vmem:[%s9062_s19 + $0x460] sm:$0xff]  ;;  %v8625_v25 = vld [vmem:[#allocation7 + $0x1028] ss:$12 sps:$4 sm:$0xff]  }
 0x28e   : > { %5273 = vmatprep.subr.bf16.mxu0 %v8609_v43  ;;  %v7256_v39 = vpop.f32.mrb[56].mxu1  ;;  %5969 = vmatprep.mubr.bf16.mxu1 %v9551_v42  ;;  %v8620_v42 = vld [vmem:[#allocation7 + $0x1010] ss:$12 sps:$4 sm:$0xff]   ;;  %v9690_v43 = vpack.c.bf16 %v463_v5, %v439_v44  ;;  %v512_v28 = vld [vmem:[%s9062_s19 + $0x5e8] sm:$0xff]  ;;  %v8627_v29 = vld [vmem:[#allocation7 + $0x10f8] ss:$12 sps:$4 sm:$0xff]  }
 0x28f   : > { %5240 = vmatprep.mubr.bf16.mxu0 %v9661_v63  ;;  %v7257_v4 = vpop.f32.mrb[57].mxu1  ;;  %v8636_v44 = vld [vmem:[#allocation7 + $0xf98] ss:$12 sps:$4 sm:$0xff]  }
 0x290   : > { %v7258_v31 = vadd.f32 %v7257_v4, %v7256_v39  ;;  %v7259_v27 = vpop.f32.mrb[58].mxu1  ;;  %7551 = vmatpush3.bf16.msra.mxu1 %v8611_v33  ;;  %v8622_v33 = vld [vmem:[#allocation7 + $0x10e0] ss:$12 sps:$4 sm:$0xff]  }
 0x291   : > { %5274 = vmatpush1.bf16.msra.mxu0 %v8607_v53  ;;  %v7260_v60 = vpop.f32.mrb[59].mxu1  ;;  %7552 = vmatprep.subr.bf16.mxu1 %v8615_v2 }
 0x292   : > { %5275 = vmatprep.subr.bf16.mxu0 %v8614_v16  ;;  %v9677_v50 = vadd.f32 %v7258_v31, %v9628_v41  ;;  %v7261_v36 = vadd.f32 %v7260_v60, %v7259_v27  ;;  %v8624_v41 = vld [vmem:[#allocation7 + $0x10e4] ss:$12 sps:$4 sm:$0xff]   ;;  %v8629_v16 = vld [vmem:[#allocation7 + $0x10fc] ss:$12 sps:$4 sm:$0xff]   ;;  %v8631_v31 = vld [vmem:[#allocation7 + $0xf80] ss:$12 sps:$4 sm:$0xff]  }
 0x293   : > { %5970 = vmatmul.mubr.bf16.gmra.mrb[164].mxu1 %v9560_v3  ;;  %v487_v27 = vld [vmem:[%s9062_s19 + $0x520] sm:$0xff] }
 0x294   : > { %5241 = vmatmul.mubr.bf16.gmra.mrb[4].mxu0 %v9672_v21  ;;  %v9684_v57 = vadd.f32 %v7261_v36, %v9631_v59  ;;  %7553 = vmatpush3.bf16.msra.mxu1 %v8616_v11  ;;  %v488_v59 = vld [vmem:[%s9062_s19 + $0x528] sm:$0xff]  ;;  %v8635_v11 = vld [vmem:[#allocation7 + $0x1058] ss:$12 sps:$4 sm:$0xff]  }
 0x295   : > { %5276 = vmatpush1.bf16.msra.mxu0 %v8612_v56  ;;  %7554 = vmatprep.subr.bf16.mxu1 %v8620_v42  ;;  %v9697_v4 = vpack.c.bf16 %v512_v28, %v488_v59  ;;  %v511_v56 = vld [vmem:[%s9062_s19 + $0x5e0] sm:$0xff]  ;;  %v370_v42 = vld [vmem:[%s9062_s19 + $0x178] sm:$0xff]  ;;  %v8637_v28 = vld [vmem:[#allocation7 + $0x1128] ss:$12 sps:$4 sm:$0xff]  }
 0x296   : > { %5277 = vmatprep.subr.bf16.mxu0 %v8619_v34  ;;  %v7262_v47 = vpop.f32.mrb[60].mxu1  ;;  %5977 = vmatprep.mubr.bf16.mxu1 %v9567_v54  ;;  %v8630_v54 = vld [vmem:[#allocation7 + $0x1040] ss:$12 sps:$4 sm:$0xff]   ;;  %v9708_v34 = vpack.c.bf16 %v511_v56, %v487_v27  ;;  %v8647_v56 = vld [vmem:[#allocation7 + $0x1158] ss:$12 sps:$4 sm:$0xff]  }
 0x297   : > { %5250 = vmatprep.mubr.bf16.mxu0 %v9679_v18  ;;  %v7263_v3 = vpop.f32.mrb[61].mxu1 }
 0x298   : > { %v7264_v12 = vadd.f32 %v7263_v3, %v7262_v47  ;;  %v7265_v53 = vpop.f32.mrb[62].mxu1  ;;  %7555 = vmatpush3.bf16.msra.mxu1 %v8621_v49  ;;  %v8632_v49 = vld [vmem:[#allocation7 + $0x1110] ss:$12 sps:$4 sm:$0xff]  }
 0x299   : > { %5278 = vmatpush1.bf16.msra.mxu0 %v8617_v0  ;;  %v7266_v13 = vpop.f32.mrb[63].mxu1  ;;  %7556 = vmatprep.subr.bf16.mxu1 %v8625_v25  ;;  %v8640_v25 = vld [vmem:[#allocation7 + $0x1070] ss:$12 sps:$4 sm:$0xff]  }
 0x29a   : > { %5279 = vmatprep.subr.bf16.mxu0 %v8624_v41  ;;  %v9695_v2 = vadd.f32 %v7264_v12, %v9638_v30  ;;  %v7267_v39 = vadd.f32 %v7266_v13, %v7265_v53  ;;  %v8634_v30 = vld [vmem:[#allocation7 + $0x1114] ss:$12 sps:$4 sm:$0xff]   ;;  %v8639_v41 = vld [vmem:[#allocation7 + $0x112c] ss:$12 sps:$4 sm:$0xff]   ;;  %v8641_v12 = vld [vmem:[#allocation7 + $0xfb0] ss:$12 sps:$4 sm:$0xff]  }
 0x29b   : > { %5978 = vmatmul.mubr.bf16.gmra.mrb[168].mxu1 %v9578_v52  ;;  %v8644_v53 = vld [vmem:[#allocation7 + $0x1144] ss:$12 sps:$4 sm:$0xff]  }
 0x29c   : > { %5251 = vmatmul.mubr.bf16.gmra.mrb[8].mxu0 %v9690_v43  ;;  %v9702_v35 = vadd.f32 %v7267_v39, %v9641_v40  ;;  %7557 = vmatpush3.bf16.msra.mxu1 %v8626_v7  ;;  %v346_v40 = vld [vmem:[%s9062_s19 + $0xb8] sm:$0xff] }
 0x29d   : > { %5280 = vmatpush1.bf16.msra.mxu0 %v8622_v33  ;;  %7558 = vmatprep.subr.bf16.mxu1 %v8630_v54  ;;  %v9715_v3 = vpack.c.bf16 %v370_v42, %v346_v40  ;;  %v8645_v33 = vld [vmem:[#allocation7 + $0x1148] ss:$12 sps:$4 sm:$0xff]  }
 0x29e   : > { %5281 = vmatprep.subr.bf16.mxu0 %v8629_v16  ;;  %v7284_v60 = vpop.f32.mrb[64].mxu1  ;;  %5985 = vmatprep.mubr.bf16.mxu1 %v9586_v58  ;;  %v8646_v16 = vld [vmem:[#allocation7 + $0x1088] ss:$12 sps:$4 sm:$0xff]  }
 0x29f   : > { %5260 = vmatprep.mubr.bf16.mxu0 %v9697_v4  ;;  %v7285_v52 = vpop.f32.mrb[65].mxu1  ;;  %v8649_v39 = vld [vmem:[#allocation7 + $0x115c] ss:$12 sps:$4 sm:$0xff]  }
 0x2a0   : > { %v7286_v36 = vadd.f32 %v7285_v52, %v7284_v60  ;;  %v7287_v0 = vpop.f32.mrb[66].mxu1  ;;  %7559 = vmatpush3.bf16.msra.mxu1 %v8631_v31  ;;  %v8655_v60 = vld [vmem:[#allocation7 + $0x1178] ss:$12 sps:$4 sm:$0xff]  }
 0x2a1   : > { %5282 = vmatpush1.bf16.msra.mxu0 %v8627_v29  ;;  %v7288_v5 = vpop.f32.mrb[67].mxu1  ;;  %7560 = vmatprep.subr.bf16.mxu1 %v8635_v11  ;;  %v8650_v29 = vld [vmem:[#allocation7 + $0x1160] ss:$12 sps:$4 sm:$0xff]  }
 0x2a2   : > { %5283 = vmatprep.subr.bf16.mxu0 %v8634_v30  ;;  %v9713_v58 = vadd.f32 %v7286_v36, %v9645_v15  ;;  %v7289_v47 = vadd.f32 %v7288_v5, %v7287_v0  ;;  %v8651_v30 = vld [vmem:[#allocation7 + $0x10a0] ss:$12 sps:$4 sm:$0xff]   ;;  %v8656_v36 = vld [vmem:[#allocation7 + $0x10b8] ss:$12 sps:$4 sm:$0xff]  }
 0x2a3   : > { %5986 = vmatmul.mubr.bf16.gmra.mrb[172].mxu1 %v9598_v19  ;;  %v8654_v11 = vld [vmem:[#allocation7 + $0x1174] ss:$12 sps:$4 sm:$0xff]   ;;  %v8659_v0 = vld [vmem:[#allocation7 + $0x118c] ss:$12 sps:$4 sm:$0xff]  }
 0x2a4   : > { %5261 = vmatmul.mubr.bf16.gmra.mrb[12].mxu0 %v9708_v34  ;;  %v9720_v59 = vadd.f32 %v7289_v47, %v9649_v32  ;;  %7561 = vmatpush3.bf16.msra.mxu1 %v8636_v44  ;;  %v8642_v32 = vld [vmem:[#allocation7 + $0x1140] ss:$12 sps:$4 sm:$0xff]   ;;  %v8664_v47 = vld [vmem:[#allocation7 + $0x11a4] ss:$12 sps:$4 sm:$0xff]  }
 0x2a5   : > { %5284 = vmatpush1.bf16.msra.mxu0 %v8632_v49  ;;  %7562 = vmatprep.subr.bf16.mxu1 %v8640_v25  ;;  %v8660_v49 = vld [vmem:[#allocation7 + $0x1190] ss:$12 sps:$4 sm:$0xff]  }
 0x2a6   : > { %5285 = vmatprep.subr.bf16.mxu0 %v8639_v41  ;;  %v7290_v15 = vpop.f32.mrb[68].mxu1  ;;  %6026 = vmatprep.mubr.bf16.mxu1 %v9606_v37  ;;  %v8657_v41 = vld [vmem:[#allocation7 + $0x1188] ss:$12 sps:$4 sm:$0xff]   ;;  %v8661_v25 = vld [vmem:[#allocation7 + $0x10d0] ss:$12 sps:$4 sm:$0xff]  }
 0x2a7   : > { %5303 = vmatprep.mubr.bf16.mxu0 %v9715_v3  ;;  %v7291_v7 = vpop.f32.mrb[69].mxu1 }
 0x2a8   : > { %v7292_v19 = vadd.f32 %v7291_v7, %v7290_v15  ;;  %v7293_v13 = vpop.f32.mrb[70].mxu1  ;;  %7563 = vmatpush3.bf16.msra.mxu1 %v8641_v12  ;;  %v8666_v15 = vld [vmem:[#allocation7 + $0x10e8] ss:$12 sps:$4 sm:$0xff]  }
 0x2a9   : > { %5286 = vmatpush1.bf16.msra.mxu0 %v8637_v28  ;;  %v7294_v54 = vpop.f32.mrb[71].mxu1  ;;  %7588 = vmatprep.subr.bf16.mxu1 %v8645_v33  ;;  %v8665_v28 = vld [vmem:[#allocation7 + $0x11a8] ss:$12 sps:$4 sm:$0xff]  }
 0x2aa   : > { %5287 = vmatprep.subr.bf16.mxu0 %v8644_v53  ;;  %v9725_v31 = vadd.f32 %v7292_v19, %v9659_v1  ;;  %v7295_v27 = vadd.f32 %v7294_v54, %v7293_v13  ;;  %v8669_v7 = vld [vmem:[#allocation7 + $0x11bc] ss:$12 sps:$4 sm:$0xff]   ;;  %v8670_v19 = vld [vmem:[#allocation7 + $0x11c0] ss:$12 sps:$4 sm:$0xff]  }
 0x2ab   : > { %6027 = vmatmul.mubr.bf16.vlgmr.msra.gmra.mrb[176].mxu1 %v9654_v38  ;;  %v8652_v38 = vld [vmem:[#allocation7 + $0x1170] ss:$12 sps:$4 sm:$0xff]   ;;  %v8671_v54 = vld [vmem:[#allocation7 + $0x1100] ss:$12 sps:$4 sm:$0xff]  }
 0x2ac   : > { %v9729_v37 = vadd.f32 %v7295_v27, %v9666_v20  ;;  %7589 = vmatpush3.bf16.msra.mxu1 %v8646_v16  ;;  %6034 = vmatprep.mubr.bf16.mxu1 %v9661_v63  ;;  %v8667_v16 = vld [vmem:[#allocation7 + $0x11b8] ss:$12 sps:$4 sm:$0xff]  }
 0x2ad   : > { %5288 = vmatpush1.bf16.msra.mxu0 %v8642_v32  ;;  %7590 = vmatprep.subr.bf16.mxu1 %v8650_v29  ;;  %v8675_v29 = vld [vmem:[#allocation7 + $0x11d8] ss:$12 sps:$4 sm:$0xff]  }
 0x2ae   : > { %5289 = vmatprep.subr.bf16.mxu0 %v8649_v39  ;;  %v7296_v52 = vpop.f32.mrb[72].mxu1  ;;  %v8674_v39 = vld [vmem:[#allocation7 + $0x11d4] ss:$12 sps:$4 sm:$0xff]  }
 0x2af   : > { %v7297_v40 = vpop.f32.mrb[73].mxu1 }
 0x2b0   : > { %v7298_v1 = vadd.f32 %v7297_v40, %v7296_v52  ;;  %v7299_v42 = vpop.f32.mrb[74].mxu1  ;;  %7591 = vmatpush3.bf16.msra.mxu1 %v8651_v30  ;;  %v8680_v52 = vld [vmem:[#allocation7 + $0x11f0] ss:$12 sps:$4 sm:$0xff]  }
 0x2b1   : > { %5290 = vmatpush1.bf16.msra.mxu0 %v8647_v56  ;;  %v7300_v20 = vpop.f32.mrb[75].mxu1  ;;  %7592 = vmatprep.subr.bf16.mxu1 %v8655_v60  ;;  %v8679_v60 = vld [vmem:[#allocation7 + $0x11ec] ss:$12 sps:$4 sm:$0xff]  }
 0x2b2   : > { %5291 = vmatprep.subr.bf16.mxu0 %v8654_v11  ;;  %v9733_v44 = vadd.f32 %v7298_v1, %v9677_v50  ;;  %v7301_v5 = vadd.f32 %v7300_v20, %v7299_v42  ;;  %v8677_v1 = vld [vmem:[#allocation7 + $0x11e8] ss:$12 sps:$4 sm:$0xff]  }
 0x2b3   : > { %6035 = vmatmul.mubr.bf16.gmra.mrb[180].mxu1 %v9672_v21  ;;  %v8662_v21 = vld [vmem:[#allocation7 + $0x11a0] ss:$12 sps:$4 sm:$0xff]   ;;  %v369_v20 = vld [vmem:[%s9062_s19 + $0x170] sm:$0xff] }
 0x2b4   : > { %v9737_v63 = vadd.f32 %v7301_v5, %v9684_v57  ;;  %7593 = vmatpush3.bf16.msra.mxu1 %v8656_v36  ;;  %6042 = vmatprep.mubr.bf16.mxu1 %v9679_v18  ;;  %v345_v36 = vld [vmem:[%s9062_s19 + $0xb0] sm:$0xff] }
 0x2b5   : > { %5292 = vmatpush1.bf16.msra.mxu0 %v8652_v38  ;;  %7594 = vmatprep.subr.bf16.mxu1 %v8660_v49  ;;  %v8681_v38 = vld [vmem:[#allocation7 + $0x1130] ss:$12 sps:$4 sm:$0xff]  }
 0x2b6   : > { %5293 = vmatprep.subr.bf16.mxu0 %v8659_v0  ;;  %v7302_v12 = vpop.f32.mrb[76].mxu1  ;;  %v394_v0 = vld [vmem:[%s9062_s19 + $0x238] sm:$0xff] }
 0x2b7   : > { %v7303_v53 = vpop.f32.mrb[77].mxu1  ;;  %v418_v49 = vld [vmem:[%s9062_s19 + $0x2f8] sm:$0xff] }
 0x2b8   : > { %v7304_v50 = vadd.f32 %v7303_v53, %v7302_v12  ;;  %v7305_v33 = vpop.f32.mrb[78].mxu1  ;;  %7595 = vmatpush3.bf16.msra.mxu1 %v8661_v25  ;;  %v562_v25 = vpack.c.bf16 %v418_v49, %v394_v0 }
 0x2b9   : > { %5294 = vmatpush1.bf16.msra.mxu0 %v8657_v41  ;;  %v7306_v57 = vpop.f32.mrb[79].mxu1  ;;  %7596 = vmatprep.subr.bf16.mxu1 %v8665_v28 }
 0x2ba   : > { %5295 = vmatprep.subr.bf16.mxu0 %v8664_v47  ;;  %v9741_v13 = vadd.f32 %v7304_v50, %v9695_v2  ;;  %v7307_v32 = vadd.f32 %v7306_v57, %v7305_v33  ;;  %v417_v50 = vld [vmem:[%s9062_s19 + $0x2f0] sm:$0xff]  ;;  %v442_v33 = vld [vmem:[%s9062_s19 + $0x3b8] sm:$0xff] }
 0x2bb   : > { %6043 = vmatmul.mubr.bf16.gmra.mrb[184].mxu1 %v9690_v43  ;;  %v8672_v43 = vld [vmem:[#allocation7 + $0x11d0] ss:$12 sps:$4 sm:$0xff]  }
 0x2bc   : > { %v9745_v18 = vadd.f32 %v7307_v32, %v9702_v35  ;;  %7597 = vmatpush3.bf16.msra.mxu1 %v8666_v15  ;;  %6050 = vmatprep.mubr.bf16.mxu1 %v9697_v4  ;;  %v8676_v35 = vld [vmem:[#allocation7 + $0x1118] ss:$12 sps:$4 sm:$0xff]  }
 0x2bd   : > { %5296 = vmatpush1.bf16.msra.mxu0 %v8662_v21  ;;  %7598 = vmatprep.subr.bf16.mxu1 %v8670_v19  ;;  %v466_v21 = vld [vmem:[%s9062_s19 + $0x478] sm:$0xff] }
 0x2be   : > { %5297 = vmatprep.subr.bf16.mxu0 %v8669_v7  ;;  %v7324_v27 = vpop.f32.mrb[80].mxu1  ;;  %v586_v32 = vpack.c.bf16 %v466_v21, %v442_v33 }
 0x2bf   : > { %v7325_v56 = vpop.f32.mrb[81].mxu1 }
 0x2c0   : > { %v7326_v2 = vadd.f32 %v7325_v56, %v7324_v27  ;;  %v7327_v30 = vpop.f32.mrb[82].mxu1  ;;  %7599 = vmatpush3.bf16.msra.mxu1 %v8671_v54  ;;  %v465_v27 = vld [vmem:[%s9062_s19 + $0x470] sm:$0xff]  ;;  %v490_v56 = vld [vmem:[%s9062_s19 + $0x538] sm:$0xff] }
 0x2c1   : > { %5298 = vmatpush1.bf16.msra.mxu0 %v8667_v16  ;;  %v7328_v11 = vpop.f32.mrb[83].mxu1  ;;  %7600 = vmatprep.subr.bf16.mxu1 %v8675_v29  ;;  %v441_v29 = vld [vmem:[%s9062_s19 + $0x3b0] sm:$0xff] }
 0x2c2   : > { %5299 = vmatprep.subr.bf16.mxu0 %v8674_v39  ;;  %v9749_v40 = vadd.f32 %v7326_v2, %v9713_v58  ;;  %v7329_v4 = vadd.f32 %v7328_v11, %v7327_v30  ;;  %v514_v2 = vld [vmem:[%s9062_s19 + $0x5f8] sm:$0xff] }
 0x2c3   : > { %6051 = vmatmul.mubr.bf16.gmra.mrb[188].mxu1 %v9708_v34  ;;  %v537_v34 = vpack.c.bf16 %v369_v20, %v345_v36  ;;  %v513_v36 = vld [vmem:[%s9062_s19 + $0x5f0] sm:$0xff] }
 0x2c4   : > { %v9753_v42 = vadd.f32 %v7329_v4, %v9720_v59  ;;  %7601 = vmatpush3.bf16.msra.mxu1 %v8676_v35  ;;  %6091 = vmatprep.mubr.bf16.mxu1 %v9715_v3  ;;  %v393_v3 = vld [vmem:[%s9062_s19 + $0x230] sm:$0xff]  ;;  %v585_v35 = vpack.c.bf16 %v465_v27, %v441_v29 }
 0x2c5   : > { %5300 = vmatpush1.bf16.msra.mxu0 %v8672_v43  ;;  %7602 = vmatprep.subr.bf16.mxu1 %v8680_v52  ;;  %v561_v7 = vpack.c.bf16 %v417_v50, %v393_v3  ;;  %v610_v52 = vpack.c.bf16 %v514_v2, %v490_v56 }
 0x2c6   : > { %5301 = vmatprep.subr.bf16.mxu0 %v8679_v60  ;;  %v7330_v5 = vpop.f32.mrb[84].mxu1 }
 0x2c7   : > { %v7331_v58 = vpop.f32.mrb[85].mxu1 }
 0x2c8   : > { %v7332_v41 = vadd.f32 %v7331_v58, %v7330_v5  ;;  %v7333_v59 = vpop.f32.mrb[86].mxu1  ;;  %7603 = vmatpush3.bf16.msra.mxu1 %v8681_v38  ;;  %v489_v38 = vld [vmem:[%s9062_s19 + $0x530] sm:$0xff] }
 0x2c9   : > { %5302 = vmatpush1.bf16.msra.mxu0 %v8677_v1  ;;  %v7334_v47 = vpop.f32.mrb[87].mxu1  ;;  %v609_v49 = vpack.c.bf16 %v513_v36, %v489_v38 }
 0x2ca   : > { %v5647_v28 = vadd.f32 %v7332_v41, %v9725_v31  ;;  %v7335_v12 = vadd.f32 %v7334_v47, %v7333_v59 }
 0x2cb   : > { %6092 = vmatmul.mubr.bf16.vlgmr.msra.gmra.mrb[192].mxu1 %v537_v34 }
 0x2cc   : > { %5304 = vmatmul.mubr.bf16.vlgmr.msra.gmra.mrb[0].mxu0 %v537_v34  ;;  %v5650_v53 = vadd.f32 %v7335_v12, %v9729_v37  ;;  %6099 = vmatprep.mubr.bf16.mxu1 %v562_v25 }
 0x2cd   : > { %5313 = vmatprep.mubr.bf16.mxu0 %v562_v25 }
 0x2ce   : > { %v7336_v15 = vpop.f32.mrb[88].mxu1 }
 0x2cf   : > { %v7337_v57 = vpop.f32.mrb[89].mxu1 }
 0x2d0   : > { %v7338_v19 = vadd.f32 %v7337_v57, %v7336_v15  ;;  %v7339_v31 = vpop.f32.mrb[90].mxu1 }
 0x2d1   : > { %v7340_v16 = vpop.f32.mrb[91].mxu1 }
 0x2d2   : > { %v5655_v54 = vadd.f32 %v7338_v19, %v9733_v44  ;;  %v7341_v37 = vadd.f32 %v7340_v16, %v7339_v31 }
 0x2d3   : > { %6100 = vmatmul.mubr.bf16.gmra.mrb[196].mxu1 %v561_v7 }
 0x2d4   : > { %5314 = vmatmul.mubr.bf16.gmra.mrb[4].mxu0 %v561_v7  ;;  %v5658_v39 = vadd.f32 %v7341_v37, %v9737_v63  ;;  %6107 = vmatprep.mubr.bf16.mxu1 %v586_v32 }
 0x2d5   : > { %5323 = vmatprep.mubr.bf16.mxu0 %v586_v32 }
 0x2d6   : > { %v7342_v30 = vpop.f32.mrb[92].mxu1 }
 0x2d7   : > { %v7343_v43 = vpop.f32.mrb[93].mxu1 }
 0x2d8   : > { %v7344_v11 = vadd.f32 %v7343_v43, %v7342_v30  ;;  %v7345_v60 = vpop.f32.mrb[94].mxu1 }
 0x2d9   : > { %v7346_v44 = vpop.f32.mrb[95].mxu1 }
 0x2da   : > { %v5663_v4 = vadd.f32 %v7344_v11, %v9741_v13  ;;  %v7347_v1 = vadd.f32 %v7346_v44, %v7345_v60 }
 0x2db   : > { %6108 = vmatmul.mubr.bf16.gmra.mrb[200].mxu1 %v585_v35 }
 0x2dc   : > { %5324 = vmatmul.mubr.bf16.gmra.mrb[8].mxu0 %v585_v35  ;;  %v5666_v63 = vadd.f32 %v7347_v1, %v9745_v18  ;;  %6115 = vmatprep.mubr.bf16.mxu1 %v610_v52 }
 0x2dd   : > { %5333 = vmatprep.mubr.bf16.mxu0 %v610_v52 }
 0x2de   : > { %v7364_v20 = vpop.f32.mrb[96].mxu1 }
 0x2df   : > { %v7365_v0 = vpop.f32.mrb[97].mxu1 }
 0x2e0   : > { %v7366_v5 = vadd.f32 %v7365_v0, %v7364_v20  ;;  %v7367_v58 = vpop.f32.mrb[98].mxu1 }
 0x2e1   : > { %v7368_v34 = vpop.f32.mrb[99].mxu1 }
 0x2e2   : > { %v5704_v41 = vadd.f32 %v7366_v5, %v9749_v40  ;;  %v7369_v59 = vadd.f32 %v7368_v34, %v7367_v58 }
 0x2e3   : > { %6116 = vmatmul.mubr.bf16.gmra.mrb[204].mxu1 %v609_v49 }
 0x2e4   : > { %5334 = vmatmul.mubr.bf16.gmra.mrb[12].mxu0 %v609_v49  ;;  %v5707_v13 = vadd.f32 %v7369_v59, %v9753_v42 }
 0x2e6   : > { %v7370_v25 = vpop.f32.mrb[100].mxu1 }
 0x2e7   : > { %v7371_v47 = vpop.f32.mrb[101].mxu1 }
 0x2e8   : > { %v7372_v18 = vadd.f32 %v7371_v47, %v7370_v25  ;;  %v7373_v12 = vpop.f32.mrb[102].mxu1 }
 0x2e9   : > { %v7374_v3 = vpop.f32.mrb[103].mxu1 }
 0x2ea   : > { %v5712_v50 = vadd.f32 %v7372_v18, %v5647_v28  ;;  %v7375_v33 = vadd.f32 %v7374_v3, %v7373_v12 }
 0x2ec   : > { %v5715_v21 = vadd.f32 %v7375_v33, %v5650_v53 }
 0x2ee   : > { %v7376_v15 = vpop.f32.mrb[104].mxu1 }
 0x2ef   : > { %v7377_v57 = vpop.f32.mrb[105].mxu1 }
 0x2f0   : > { %v7378_v7 = vadd.f32 %v7377_v57, %v7376_v15  ;;  %v7379_v19 = vpop.f32.mrb[106].mxu1 }
 0x2f1   : > { %v7380_v31 = vpop.f32.mrb[107].mxu1 }
 0x2f2   : > { %v5720_v32 = vadd.f32 %v7378_v7, %v5655_v54  ;;  %v7381_v40 = vadd.f32 %v7380_v31, %v7379_v19 }
 0x2f4   : > { %v5723_v16 = vadd.f32 %v7381_v40, %v5658_v39 }
 0x2f6   : > { %v7382_v37 = vpop.f32.mrb[108].mxu1 }
 0x2f7   : > { %v7383_v29 = vpop.f32.mrb[109].mxu1 }
 0x2f8   : > { %v7384_v27 = vadd.f32 %v7383_v29, %v7382_v37  ;;  %v7385_v42 = vpop.f32.mrb[110].mxu1 }
 0x2f9   : > { %v7386_v56 = vpop.f32.mrb[111].mxu1 }
 0x2fa   : > { %v5728_v2 = vadd.f32 %v7384_v27, %v5663_v4  ;;  %v7387_v30 = vadd.f32 %v7386_v56, %v7385_v42 }
 0x2fc   : > { %v5731_v43 = vadd.f32 %v7387_v30, %v5666_v63 }
 0x2fe   : > { %v7404_v35 = vpop.f32.mrb[112].mxu1 }
 0x2ff   : > { %v7405_v28 = vpop.f32.mrb[113].mxu1 }
 0x300   : > { %v7406_v11 = vadd.f32 %v7405_v28, %v7404_v35  ;;  %v7407_v53 = vpop.f32.mrb[114].mxu1 }
 0x301   : > { %v7408_v60 = vpop.f32.mrb[115].mxu1 }
 0x302   : > { %v5769_v52 = vadd.f32 %v7406_v11, %v5704_v41  ;;  %v7409_v44 = vadd.f32 %v7408_v60, %v7407_v53 }
 0x304   : > { %v5772_v1 = vadd.f32 %v7409_v44, %v5707_v13 }
 0x306   : > { %v7410_v38 = vpop.f32.mrb[116].mxu1 }
 0x307   : > { %v7411_v54 = vpop.f32.mrb[117].mxu1 }
 0x308   : > { %v7412_v36 = vadd.f32 %v7411_v54, %v7410_v38  ;;  %v7413_v39 = vpop.f32.mrb[118].mxu1 }
 0x309   : > { %v7414_v20 = vpop.f32.mrb[119].mxu1 }
 0x30a   : > { %v5777_v0 = vadd.f32 %v7412_v36, %v5712_v50  ;;  %v7415_v49 = vadd.f32 %v7414_v20, %v7413_v39 }
 0x30c   : > { %v5780_v5 = vadd.f32 %v7415_v49, %v5715_v21 }
 0x30e   : > { %v7416_v58 = vpop.f32.mrb[120].mxu1 }
 0x30f   : > { %v7417_v4 = vpop.f32.mrb[121].mxu1 }
 0x310   : > { %v7418_v34 = vadd.f32 %v7417_v4, %v7416_v58  ;;  %v7419_v63 = vpop.f32.mrb[122].mxu1 }
 0x311   : > { %v7420_v59 = vpop.f32.mrb[123].mxu1 }
 0x312   : > { %v5785_v25 = vadd.f32 %v7418_v34, %v5720_v32  ;;  %v7421_v47 = vadd.f32 %v7420_v59, %v7419_v63 }
 0x314   : > { %v5788_v18 = vadd.f32 %v7421_v47, %v5723_v16 }
 0x316   : > { %v7422_v12 = vpop.f32.mrb[124].mxu1 }
 0x317   : > { %v7423_v41 = vpop.f32.mrb[125].mxu1 }
 0x318   : > { %v7424_v3 = vadd.f32 %v7423_v41, %v7422_v12  ;;  %v7425_v13 = vpop.f32.mrb[126].mxu1 }
 0x319   : > { %v7426_v33 = vpop.f32.mrb[127].mxu1 }
 0x31a   : > { %v5793_v15 = vadd.f32 %v7424_v3, %v5728_v2  ;;  %v7427_v57 = vadd.f32 %v7426_v33, %v7425_v13 }
 0x31c   : > { %v5796_v7 = vadd.f32 %v7427_v57, %v5731_v43 }
 0x31e   : > { %v7444_v19 = vpop.f32.mrb[128].mxu1 }
 0x31f   : > { %v7445_v50 = vpop.f32.mrb[129].mxu1 }
 0x320   : > { %v7446_v31 = vadd.f32 %v7445_v50, %v7444_v19  ;;  %v7447_v21 = vpop.f32.mrb[130].mxu1 }
 0x321   : > { %v7448_v40 = vpop.f32.mrb[131].mxu1 }
 0x322   : > { %v5834_v37 = vadd.f32 %v7446_v31, %v5769_v52  ;;  %v7449_v29 = vadd.f32 %v7448_v40, %v7447_v21 }
 0x324   : > { %v5837_v27 = vadd.f32 %v7449_v29, %v5772_v1 }
 0x326   : > { %v7450_v42 = vpop.f32.mrb[132].mxu1 }
 0x327   : > { %v7451_v32 = vpop.f32.mrb[133].mxu1 }
 0x328   : > { %v7452_v56 = vadd.f32 %v7451_v32, %v7450_v42  ;;  %v7453_v16 = vpop.f32.mrb[134].mxu1 }
 0x329   : > { %v7454_v30 = vpop.f32.mrb[135].mxu1 }
 0x32a   : > { %v5842_v35 = vadd.f32 %v7452_v56, %v5777_v0  ;;  %v7455_v28 = vadd.f32 %v7454_v30, %v7453_v16 }
 0x32c   : > { %v5845_v11 = vadd.f32 %v7455_v28, %v5780_v5 }
 0x32e   : > { %v7456_v53 = vpop.f32.mrb[136].mxu1 }
 0x32f   : > { %v7457_v2 = vpop.f32.mrb[137].mxu1 }
 0x330   : > { %v7458_v60 = vadd.f32 %v7457_v2, %v7456_v53  ;;  %v7459_v43 = vpop.f32.mrb[138].mxu1 }
 0x331   : > { %v7460_v44 = vpop.f32.mrb[139].mxu1 }
 0x332   : > { %v5850_v38 = vadd.f32 %v7458_v60, %v5785_v25  ;;  %v7461_v54 = vadd.f32 %v7460_v44, %v7459_v43 }
 0x334   : > { %v5853_v36 = vadd.f32 %v7461_v54, %v5788_v18 }
 0x336   : > { %v7462_v39 = vpop.f32.mrb[140].mxu1 }
 0x337   : > { %v7463_v52 = vpop.f32.mrb[141].mxu1 }
 0x338   : > { %v7464_v20 = vadd.f32 %v7463_v52, %v7462_v39  ;;  %v7465_v1 = vpop.f32.mrb[142].mxu1 }
 0x339   : > { %v7466_v49 = vpop.f32.mrb[143].mxu1 }
 0x33a   : > { %v5858_v58 = vadd.f32 %v7464_v20, %v5793_v15  ;;  %v7467_v4 = vadd.f32 %v7466_v49, %v7465_v1 }
 0x33c   : > { %v5861_v34 = vadd.f32 %v7467_v4, %v5796_v7 }
 0x33e   : > { %v7484_v63 = vpop.f32.mrb[144].mxu1 }
 0x33f   : > { %v7485_v0 = vpop.f32.mrb[145].mxu1 }
 0x340   : > { %v7486_v59 = vadd.f32 %v7485_v0, %v7484_v63  ;;  %v7487_v5 = vpop.f32.mrb[146].mxu1 }
 0x341   : > { %v7488_v47 = vpop.f32.mrb[147].mxu1 }
 0x342   : > { %v5899_v12 = vadd.f32 %v7486_v59, %v5834_v37  ;;  %v7489_v41 = vadd.f32 %v7488_v47, %v7487_v5 }
 0x344   : > { %v5902_v3 = vadd.f32 %v7489_v41, %v5837_v27 }
 0x346   : > { %v7490_v13 = vpop.f32.mrb[148].mxu1 }
 0x347   : > { %v7491_v25 = vpop.f32.mrb[149].mxu1 }
 0x348   : > { %v7492_v33 = vadd.f32 %v7491_v25, %v7490_v13  ;;  %v7493_v18 = vpop.f32.mrb[150].mxu1 }
 0x349   : > { %v7494_v57 = vpop.f32.mrb[151].mxu1 }
 0x34a   : > { %v5907_v19 = vadd.f32 %v7492_v33, %v5842_v35  ;;  %v7495_v50 = vadd.f32 %v7494_v57, %v7493_v18 }
 0x34c   : > { %v5910_v31 = vadd.f32 %v7495_v50, %v5845_v11 }
 0x34e   : > { %v7496_v21 = vpop.f32.mrb[152].mxu1 }
 0x34f   : > { %v7497_v15 = vpop.f32.mrb[153].mxu1 }
 0x350   : > { %v7498_v40 = vadd.f32 %v7497_v15, %v7496_v21  ;;  %v7499_v7 = vpop.f32.mrb[154].mxu1 }
 0x351   : > { %v7500_v29 = vpop.f32.mrb[155].mxu1 }
 0x352   : > { %v5915_v42 = vadd.f32 %v7498_v40, %v5850_v38  ;;  %v7501_v32 = vadd.f32 %v7500_v29, %v7499_v7 }
 0x354   : > { %v5918_v56 = vadd.f32 %v7501_v32, %v5853_v36 }
 0x356   : > { %v7502_v16 = vpop.f32.mrb[156].mxu1 }
 0x357   : > { %v7503_v37 = vpop.f32.mrb[157].mxu1 }
 0x358   : > { %v7504_v30 = vadd.f32 %v7503_v37, %v7502_v16  ;;  %v7505_v27 = vpop.f32.mrb[158].mxu1 }
 0x359   : > { %v7506_v28 = vpop.f32.mrb[159].mxu1 }
 0x35a   : > { %v5923_v53 = vadd.f32 %v7504_v30, %v5858_v58  ;;  %v7507_v2 = vadd.f32 %v7506_v28, %v7505_v27 }
 0x35c   : > { %v5926_v60 = vadd.f32 %v7507_v2, %v5861_v34 }
 0x35e   : > { %v7524_v43 = vpop.f32.mrb[160].mxu1 }
 0x35f   : > { %v7525_v35 = vpop.f32.mrb[161].mxu1 }
 0x360   : > { %v7526_v44 = vadd.f32 %v7525_v35, %v7524_v43  ;;  %v7527_v11 = vpop.f32.mrb[162].mxu1 }
 0x361   : > { %v7528_v54 = vpop.f32.mrb[163].mxu1 }
 0x362   : > { %v5964_v39 = vadd.f32 %v7526_v44, %v5899_v12  ;;  %v7529_v52 = vadd.f32 %v7528_v54, %v7527_v11 }
 0x364   : > { %v5967_v20 = vadd.f32 %v7529_v52, %v5902_v3 }
 0x366   : > { %v7530_v1 = vpop.f32.mrb[164].mxu1 }
 0x367   : > { %v7531_v38 = vpop.f32.mrb[165].mxu1 }
 0x368   : > { %v7532_v49 = vadd.f32 %v7531_v38, %v7530_v1  ;;  %v7533_v36 = vpop.f32.mrb[166].mxu1 }
 0x369   : > { %v7534_v4 = vpop.f32.mrb[167].mxu1 }
 0x36a   : > { %v5972_v63 = vadd.f32 %v7532_v49, %v5907_v19  ;;  %v7535_v0 = vadd.f32 %v7534_v4, %v7533_v36  ;;  %v8682_v36 = vld [vmem:[#allocation9] sm:$0x7] }
 0x36c   : > { %v5975_v59 = vadd.f32 %v7535_v0, %v5910_v31 }
 0x36e   : > { %v7536_v5 = vpop.f32.mrb[168].mxu1 }
 0x36f   : > { %v7537_v58 = vpop.f32.mrb[169].mxu1 }
 0x370   : > { %v7538_v47 = vadd.f32 %v7537_v58, %v7536_v5  ;;  %v7539_v34 = vpop.f32.mrb[170].mxu1 }
 0x371   : > { %v7540_v41 = vpop.f32.mrb[171].mxu1 }
 0x372   : > { %v5980_v13 = vadd.f32 %v7538_v47, %v5915_v42  ;;  %v7541_v25 = vadd.f32 %v7540_v41, %v7539_v34 }
 0x374   : > { %v5983_v33 = vadd.f32 %v7541_v25, %v5918_v56 }
 0x376   : > { %v7542_v18 = vpop.f32.mrb[172].mxu1 }
 0x377   : > { %v7543_v12 = vpop.f32.mrb[173].mxu1 }
 0x378   : > { %v7544_v57 = vadd.f32 %v7543_v12, %v7542_v18  ;;  %v7545_v3 = vpop.f32.mrb[174].mxu1 }
 0x379   : > { %v7546_v50 = vpop.f32.mrb[175].mxu1 }
 0x37a   : > { %v5988_v21 = vadd.f32 %v7544_v57, %v5923_v53  ;;  %v7547_v15 = vadd.f32 %v7546_v50, %v7545_v3  ;;  %v9805_v3 = vadd.s32 8, %v9571_v8  ;;  %v9816_v50 = vstv %s9074_s28 }
 0x37b   : > { %vm6241_vm0 = vcmp.lt.s32.totalorder %v9571_v8, %v9816_v50 }
 0x37c   : > { %v5991_v40 = vadd.f32 %v7547_v15, %v5926_v60  ;;  %vm6242_vm1 = vcmp.lt.s32.totalorder %v9805_v3, %v9816_v50 }
 0x37e   : > { %v7564_v7 = vpop.f32.mrb[176].mxu1 }
 0x37f   : > { %v7565_v19 = vpop.f32.mrb[177].mxu1 }
 0x380   : > { %v7566_v29 = vadd.f32 %v7565_v19, %v7564_v7  ;;  %v7567_v31 = vpop.f32.mrb[178].mxu1 }
 0x381   : > { %v7568_v32 = vpop.f32.mrb[179].mxu1 }
 0x382   : > { %v9778_v16 = vadd.f32 %v7566_v29, %v5964_v39  ;;  %v7569_v37 = vadd.f32 %v7568_v32, %v7567_v31  ;;  %v1383_v39 = vsub.s32 0, %v9571_v8  ;;  %v9852_v31 = vadd.s32 24, %v9571_v8 }
 0x384   : > { %v9780_v30 = vadd.f32 %v7569_v37, %v5967_v20  ;;  %v1387_v20 = vsub.s32 1, %v9571_v8  ;;  %v1384_v4 = vrot.slane %v8682_v36, %v1383_v39  ;;  %vm6244_vm3 = vcmp.lt.s32.totalorder %v9852_v31, %v9816_v50 }
 0x386   : > { %v7570_v42 = vpop.f32.mrb[180].mxu1  ;;  %v7628_v47 = vadd.f32 %v9486_v26, %v1384_v4  ;;  %v9799_v12 = vadd.f32 %v9503_v22, %v1384_v4  ;;  %v9808_v26 = vadd.f32 %v9509_v17, %v1384_v4  ;;  %v9831_v17 = vadd.f32 %v9524_v10, %v1384_v4 }
 0x387   : > { %v7571_v56 = vpop.f32.mrb[181].mxu1  ;;  %v9837_v15 = vadd.f32 %v9529_v23, %v1384_v4 }
 0x388   : > { %v7572_v27 = vadd.f32 %v7571_v56, %v7570_v42  ;;  %v7573_v28 = vpop.f32.mrb[182].mxu1 }
 0x389   : > { %v7574_v2 = vpop.f32.mrb[183].mxu1 }
 0x38a   : > { %v9782_v43 = vadd.f32 %v7572_v27, %v5972_v63  ;;  %v7575_v53 = vadd.f32 %v7574_v2, %v7573_v28  ;;  %v1388_v63 = vrot.slane %v8682_v36, %v1387_v20  ;;  %v9855_v27 = vadd.s32 32, %v9571_v8 }
 0x38b   : > { %v9858_v28 = vadd.s32 40, %v9571_v8 }
 0x38c   : > { %v9784_v35 = vadd.f32 %v7575_v53, %v5975_v59  ;;  %v7630_v41 = vadd.f32 %v9491_v51, %v1388_v63  ;;  %v7634_v18 = vadd.f32 %v9497_v61, %v1388_v63  ;;  %v9802_v57 = vadd.f32 %v9507_v24, %v1388_v63 }
 0x38d   : > { %v9811_v51 = vadd.f32 %v9511_v6, %v1388_v63  ;;  %v9819_v61 = vadd.f32 %v9514_v9, %v1384_v4  ;;  %v9822_v22 = vadd.f32 %v9517_v45, %v1388_v63  ;;  %v9825_v24 = vadd.f32 %v9519_v62, %v1384_v4 }
 0x38e   : > { %v7576_v60 = vpop.f32.mrb[184].mxu1  ;;  %v9834_v6 = vadd.f32 %v9527_v55, %v1388_v63  ;;  %v9840_v9 = vadd.f32 %v9531_v48, %v1388_v63  ;;  %v9842_v62 = vstv %s6124_s23  ;;  %v9849_v48 = vadd.s32 16, %v9571_v8 }
 0x38f   : > { %v7577_v44 = vpop.f32.mrb[185].mxu1  ;;  %vm6245_vm4 = vcmp.lt.s32.totalorder %v9855_v27, %v9816_v50  ;;  %vm6246_vm5 = vcmp.lt.s32.totalorder %v9858_v28, %v9816_v50 }
 0x390   : > { %v7578_v11 = vadd.f32 %v7577_v44, %v7576_v60  ;;  %v7579_v54 = vpop.f32.mrb[186].mxu1  ;;  %v9862_v44 = vadd.s32 48, %v9571_v8  ;;  %vm6243_vm2 = vcmp.lt.s32.totalorder %v9849_v48, %v9816_v50 }
 0x391   : > { %v7580_v52 = vpop.f32.mrb[187].mxu1 }
 0x392   : > { %v9788_v1 = vadd.f32 %v7578_v11, %v5980_v13  ;;  %v7581_v38 = vadd.f32 %v7580_v52, %v7579_v54  ;;  %v7632_v13 = vadd.f32 %v9495_v46, %v1384_v4  ;;  %vm6247_vm6 = vcmp.lt.s32.totalorder %v9862_v44, %v9816_v50 }
 0x394   : > { %v9790_v49 = vadd.f32 %v7581_v38, %v5983_v33 }
 0x396   : > { %v7582_v0 = vpop.f32.mrb[188].mxu1 }
 0x397   : > { %v7583_v59 = vpop.f32.mrb[189].mxu1 }
 0x398   : > { %v7584_v5 = vadd.f32 %v7583_v59, %v7582_v0  ;;  %v7585_v58 = vpop.f32.mrb[190].mxu1 }
 0x399   : > { %v7586_v34 = vpop.f32.mrb[191].mxu1 }
 0x39a   : > { %v9795_v25 = vadd.f32 %v7584_v5, %v5988_v21  ;;  %v7587_v33 = vadd.f32 %v7586_v34, %v7585_v58  ;;  %v9828_v21 = vadd.f32 %v9521_v14, %v1388_v63 }
 0x39c   : > { %v9813_v46 = vadd.f32 %v7587_v33, %v5991_v40 }
 0x39e   : > { %v7604_v40 = vpop.f32.mrb[192].mxu1 }
 0x39f   : > { %v5305_v45 = vpop.f32.mrb[0].mxu0  ;;  %v7605_v10 = vpop.f32.mrb[193].mxu1 }
 0x3a0   : > { %v7629_v7 = vadd.f32 %v7628_v47, %v5305_v45  ;;  %v5307_v14 = vpop.f32.mrb[1].mxu0  ;;  %v7606_v19 = vadd.f32 %v7605_v10, %v7604_v40  ;;  %v7607_v29 = vpop.f32.mrb[194].mxu1 }
 0x3a1   : > { %v7631_v55 = vadd.f32 %v7630_v41, %v5307_v14  ;;  %v5309_v23 = vpop.f32.mrb[2].mxu0  ;;  %v7608_v56 = vpop.f32.mrb[195].mxu1 }
 0x3a2   : > { %v6149_v32 = vmin.f32 %v7629_v7, 0.0  ;;  %v7633_v37 = vadd.f32 %v7632_v13, %v5309_v23  ;;  %v5311_v42 = vpop.f32.mrb[3].mxu0  ;;  %v6094_v53 = vadd.f32 %v7606_v19, %v9778_v16  ;;  %v6125_v11 = vmax.f32 %v7629_v7, 0.0 }
 0x3a3   : > { %v6150_v2 = vmin.f32 %v7631_v55, 0.0  ;;  %v7635_v60 = vadd.f32 %v7634_v18, %v5311_v42  ;;  %v7609_v52 = vadd.f32 %v7608_v56, %v7607_v29  ;;  %v6126_v20 = vmax.f32 %v7631_v55, 0.0 }
 0x3a4   : > { %v6174_v54 = vmul.f32 %v9842_v62, %v6149_v32  ;;  %v6152_v39 = vmin.f32 %v7633_v37, 0.0  ;;  %v6151_v36 = vmin.f32 %v6094_v53, 0.0  ;;  %v6128_v4 = vmax.f32 %v7633_v37, 0.0 }
 0x3a5   : > { %v6175_v38 = vmul.f32 %v9842_v62, %v6150_v2  ;;  %v6153_v59 = vmin.f32 %v7635_v60, 0.0  ;;  %v6097_v16 = vadd.f32 %v7609_v52, %v9780_v30  ;;  %v6127_v58 = vmax.f32 %v6094_v53, 0.0 }
 0x3a6   : > { %v6198_v63 = vadd.f32 %v6174_v54, %v6125_v11  ;;  %v6177_v0 = vmul.f32 %v9842_v62, %v6152_v39  ;;  %v6176_v47 = vmul.f32 %v9842_v62, %v6151_v36  ;;  %v6129_v34 = vmax.f32 %v7635_v60, 0.0  ;;  %v7610_v13 = vpop.f32.mrb[196].mxu1 }
 0x3a7   : > { %v6199_v5 = vadd.f32 %v6175_v38, %v6126_v20  ;;  %v5315_v41 = vpop.f32.mrb[4].mxu0  ;;  %v6178_v45 = vmul.f32 %v9842_v62, %v6153_v59  ;;  %v6130_v40 = vmax.f32 %v6097_v16, 0.0  ;;  %v7611_v30 = vpop.f32.mrb[197].mxu1  ;;  %v6154_v55 = vmin.f32 %v6097_v16, 0.0 }
 0x3a8   : > { %v6249_v33 = vsel %vm6241_vm0, %v6198_v63, 0.0  ;;  %v6201_v18 = vadd.f32 %v6177_v0, %v6128_v4  ;;  %v5317_v7 = vpop.f32.mrb[5].mxu0  ;;  %v6200_v10 = vadd.f32 %v6176_v47, %v6127_v58  ;;  %v7637_v19 = vadd.f32 %v9799_v12, %v5315_v41  ;;  %v7613_v29 = vpop.f32.mrb[198].mxu1 }
 0x3a9   : > { %v6250_v14 = vsel %vm6241_vm0, %v6199_v5, 0.0  ;;  %v5319_v23 = vpop.f32.mrb[6].mxu0  ;;  %v6202_v42 = vadd.f32 %v6178_v45, %v6129_v34  ;;  %v7639_v56 = vadd.f32 %v9802_v57, %v5317_v7  ;;  %v7614_v53 = vpop.f32.mrb[199].mxu1  ;;  %v6179_v11 = vmul.f32 %v9842_v62, %v6154_v55 }
 0x3aa   : > { %v7132_v32 = vpack.c.bf16 %v6250_v14, %v6249_v33  ;;  %v6252_v37 = vsel %vm6242_vm1, %v6201_v18, 0.0  ;;  %v5321_v2 = vpop.f32.mrb[7].mxu0  ;;  %v6251_v60 = vsel %vm6241_vm0, %v6200_v10, 0.0  ;;  %v6131_v12 = vmax.f32 %v7637_v19, 0.0 }
 0x3ab   : > { %v6155_v54 = vmin.f32 %v7637_v19, 0.0  ;;  %v7133_v39 = vpack.c.bf16 %v6251_v60, %v6251_v60  ;;  %v6253_v57 = vsel %vm6242_vm1, %v6202_v42, 0.0  ;;  %v6132_v52 = vmax.f32 %v7639_v56, 0.0 }
 0x3ac   : > { %6353 = vst [vmem:[%s9080_s27] sm:$0xff] %v7132_v32  ;;  %v6156_v20 = vmin.f32 %v7639_v56, 0.0  ;;  %v7134_v38 = vpack.c.bf16 %v6253_v57, %v6252_v37  ;;  %v6203_v36 = vadd.f32 %v6179_v11, %v6130_v40  ;;  %v7612_v63 = vadd.f32 %v7611_v30, %v7610_v13 }
 0x3ad   : > { %v6180_v4 = vmul.f32 %v9842_v62, %v6155_v54  ;;  %6354 = vst [vmem:[%s9080_s27 + $0x8] sm:$0xf] %v7133_v39  ;;  %v7641_v59 = vadd.f32 %v9808_v26, %v5319_v23  ;;  %v7643_v16 = vadd.f32 %v9811_v51, %v5321_v2  ;;  %v7615_v5 = vadd.f32 %v7614_v53, %v7613_v29 }
 0x3ae   : > { %v6181_v0 = vmul.f32 %v9842_v62, %v6156_v20  ;;  %6355 = vst [vmem:[%s9080_s27 + $0xc] sm:$0xff] %v7134_v38  ;;  %v6254_v58 = vsel %vm6242_vm1, %v6203_v36, 0.0  ;;  %v6102_v34 = vadd.f32 %v7612_v63, %v9782_v43  ;;  %v7616_v33 = vpop.f32.mrb[200].mxu1  ;;  %v9904_v13 = vadd.s32 56, %v9571_v8 }
 0x3af   : > { %v6204_v47 = vadd.f32 %v6180_v4, %v6131_v12  ;;  %v5325_v41 = vpop.f32.mrb[8].mxu0  ;;  %v7135_v18 = vpack.c.bf16 %v6254_v58, %v6254_v58  ;;  %v6134_v26 = vmax.f32 %v7641_v59, 0.0  ;;  %v6158_v40 = vmin.f32 %v7641_v59, 0.0  ;;  %v7617_v7 = vpop.f32.mrb[201].mxu1 }
 0x3b0   : > { %v6205_v45 = vadd.f32 %v6181_v0, %v6132_v52  ;;  %v5327_v51 = vpop.f32.mrb[9].mxu0  ;;  %v6133_v43 = vmax.f32 %v6102_v34, 0.0  ;;  %v6157_v30 = vmin.f32 %v6102_v34, 0.0  ;;  %v6135_v14 = vmax.f32 %v7643_v16, 0.0  ;;  %v9911_v55 = vpop.f32.mrb[202].mxu1 }
 0x3b1   : > { %v6255_v3 = vsel %vm6243_vm2, %v6204_v47, 0.0  ;;  %v5329_v10 = vpop.f32.mrb[10].mxu0  ;;  %6356 = vst [vmem:[%s9080_s27 + $0x14] sm:$0xf] %v7135_v18  ;;  %v6183_v19 = vmul.f32 %v9842_v62, %v6158_v40  ;;  %v6159_v23 = vmin.f32 %v7643_v16, 0.0  ;;  %v6105_v29 = vadd.f32 %v7615_v5, %v9784_v35  ;;  %v7620_v37 = vpop.f32.mrb[203].mxu1 }
 0x3b2   : > { %v6256_v8 = vsel %vm6243_vm2, %v6205_v45, 0.0  ;;  %v5331_v32 = vpop.f32.mrb[11].mxu0  ;;  %v6182_v56 = vmul.f32 %v9842_v62, %v6157_v30  ;;  %v7645_v2 = vadd.f32 %v9819_v61, %v5325_v41  ;;  %v7647_v53 = vadd.f32 %v9822_v22, %v5327_v51 }
 0x3b3   : > { %v7136_v42 = vpack.c.bf16 %v6256_v8, %v6255_v3  ;;  %v6207_v60 = vadd.f32 %v6183_v19, %v6134_v26  ;;  %v6184_v11 = vmul.f32 %v9842_v62, %v6159_v23  ;;  %v6136_v12 = vmax.f32 %v6105_v29, 0.0 }
 0x3b4   : > { %v6160_v54 = vmin.f32 %v6105_v29, 0.0  ;;  %v6206_v39 = vadd.f32 %v6182_v56, %v6133_v43  ;;  %v6137_v57 = vmax.f32 %v7645_v2, 0.0  ;;  %v6161_v52 = vmin.f32 %v7645_v2, 0.0 }
 0x3b5   : > { %6357 = vst [vmem:[%s9080_s27 + $0x18] sm:$0xff] %v7136_v42  ;;  %v6138_v20 = vmax.f32 %v7647_v53, 0.0  ;;  %v6258_v35 = vsel %vm6244_vm3, %v6207_v60, 0.0  ;;  %v6208_v61 = vadd.f32 %v6184_v11, %v6135_v14  ;;  %v6162_v38 = vmin.f32 %v7647_v53, 0.0 }
 0x3b6   : > { %v6185_v22 = vmul.f32 %v9842_v62, %v6160_v54  ;;  %v6257_v36 = vsel %vm6243_vm2, %v6206_v39, 0.0  ;;  %v6186_v4 = vmul.f32 %v9842_v62, %v6161_v52  ;;  %v7618_v63 = vadd.f32 %v7617_v7, %v7616_v33  ;;  %v7622_v16 = vpop.f32.mrb[204].mxu1 }
 0x3b7   : > { %v7649_v0 = vadd.f32 %v9825_v24, %v5329_v10  ;;  %v5335_v59 = vpop.f32.mrb[12].mxu0  ;;  %v7137_v5 = vpack.c.bf16 %v6257_v36, %v6257_v36  ;;  %v6259_v58 = vsel %vm6244_vm3, %v6208_v61, 0.0  ;;  %v6187_v34 = vmul.f32 %v9842_v62, %v6162_v38  ;;  %v7623_v48 = vpop.f32.mrb[205].mxu1 }
 0x3b8   : > { %v6209_v47 = vadd.f32 %v6185_v22, %v6136_v12  ;;  %v5337_v41 = vpop.f32.mrb[13].mxu0  ;;  %v7138_v18 = vpack.c.bf16 %v6259_v58, %v6258_v35  ;;  %v6210_v45 = vadd.f32 %v6186_v4, %v6137_v57  ;;  %v6110_v33 = vadd.f32 %v7618_v63, %v9788_v1  ;;  %v9940_v24 = vpop.f32.mrb[206].mxu1 }
 0x3b9   : > { %v6140_v26 = vmax.f32 %v7649_v0, 0.0  ;;  %v5339_v40 = vpop.f32.mrb[14].mxu0  ;;  %6358 = vst [vmem:[%s9080_s27 + $0x20] sm:$0xf] %v7137_v5  ;;  %v6211_v7 = vadd.f32 %v6187_v34, %v6138_v20  ;;  %v6164_v3 = vmin.f32 %v7649_v0, 0.0  ;;  %v7651_v43 = vadd.f32 %v9828_v21, %v5331_v32  ;;  %v7626_v14 = vpop.f32.mrb[207].mxu1 }
 0x3ba   : > { %v6260_v51 = vsel %vm6244_vm3, %v6209_v47, 0.0  ;;  %v5341_v30 = vpop.f32.mrb[15].mxu0  ;;  %6359 = vst [vmem:[%s9080_s27 + $0x24] sm:$0xff] %v7138_v18  ;;  %v6261_v10 = vsel %vm6245_vm4, %v6210_v45, 0.0  ;;  %v6139_v8 = vmax.f32 %v6110_v33, 0.0  ;;  %v6163_v31 = vmin.f32 %v6110_v33, 0.0 }
 0x3bb   : > { %v7139_v1 = vpack.c.bf16 %v6260_v51, %v6260_v51  ;;  %v6262_v19 = vsel %vm6245_vm4, %v6211_v7, 0.0  ;;  %v6189_v21 = vmul.f32 %v9842_v62, %v6164_v3  ;;  %v6141_v23 = vmax.f32 %v7651_v43, 0.0 }
 0x3bc   : > { %v6165_v29 = vmin.f32 %v7651_v43, 0.0  ;;  %v7140_v32 = vpack.c.bf16 %v6262_v19, %v6261_v10  ;;  %v6188_v42 = vmul.f32 %v9842_v62, %v6163_v31  ;;  %v7621_v56 = vadd.f32 %v7620_v37, %v9911_v55 }
 0x3bd   : > { %6360 = vst [vmem:[%s9080_s27 + $0x2c] sm:$0xf] %v7139_v1  ;;  %v7653_v2 = vadd.f32 %v9831_v17, %v5335_v59  ;;  %v6213_v53 = vadd.f32 %v6189_v21, %v6140_v26  ;;  %v7655_v11 = vadd.f32 %v9834_v6, %v5337_v41  ;;  %v7624_v12 = vadd.f32 %v7623_v48, %v7622_v16 }
 0x3be   : > { %v6190_v60 = vmul.f32 %v9842_v62, %v6165_v29  ;;  %6361 = vst [vmem:[%s9080_s27 + $0x30] sm:$0xff] %v7140_v32  ;;  %v6212_v54 = vadd.f32 %v6188_v42, %v6139_v8  ;;  %v6113_v39 = vadd.f32 %v7621_v56, %v9790_v49  ;;  %v7657_v27 = vadd.f32 %v9837_v15, %v5339_v40 }
 0x3bf   : > { %v6143_v57 = vmax.f32 %v7653_v2, 0.0  ;;  %v6167_v52 = vmin.f32 %v7653_v2, 0.0  ;;  %v6264_v20 = vsel %vm6246_vm5, %v6213_v53, 0.0  ;;  %v6144_v37 = vmax.f32 %v7655_v11, 0.0 }
 0x3c0   : > { %v6214_v55 = vadd.f32 %v6190_v60, %v6141_v23  ;;  %v6168_v17 = vmin.f32 %v7655_v11, 0.0  ;;  %v6263_v35 = vsel %vm6245_vm4, %v6212_v54, 0.0  ;;  %v6142_v6 = vmax.f32 %v6113_v39, 0.0 }
 0x3c1   : > { %v6166_v61 = vmin.f32 %v6113_v39, 0.0  ;;  %v6192_v22 = vmul.f32 %v9842_v62, %v6167_v52  ;;  %v7141_v49 = vpack.c.bf16 %v6263_v35, %v6263_v35  ;;  %v6118_v4 = vadd.f32 %v7624_v12, %v9795_v25 }
 0x3c2   : > { %v6265_v38 = vsel %vm6246_vm5, %v6214_v55, 0.0  ;;  %v6193_v36 = vmul.f32 %v9842_v62, %v6168_v17  ;;  %vm6248_vm7 = vcmp.lt.s32.totalorder %v9904_v13, %v9816_v50  ;;  %v7659_v58 = vadd.f32 %v9840_v9, %v5341_v30 }
 0x3c3   : > { %v7142_v63 = vpack.c.bf16 %v6265_v38, %v6264_v20  ;;  %v6191_v0 = vmul.f32 %v9842_v62, %v6166_v61  ;;  %v6216_v59 = vadd.f32 %v6192_v22, %v6143_v57  ;;  %6362 = vst [vmem:[%s9080_s27 + $0x38] sm:$0xf] %v7141_v49  ;;  %v6169_v5 = vmin.f32 %v6118_v4, 0.0 }
 0x3c4   : > { %v6217_v16 = vadd.f32 %v6193_v36, %v6144_v37  ;;  %v6145_v34 = vmax.f32 %v6118_v4, 0.0  ;;  %v6170_v41 = vmin.f32 %v7657_v27, 0.0  ;;  %v6146_v18 = vmax.f32 %v7657_v27, 0.0 }
 0x3c5   : > { %6363 = vst [vmem:[%s9080_s27 + $0x3c] sm:$0xff] %v7142_v63  ;;  %v6215_v47 = vadd.f32 %v6191_v0, %v6142_v6  ;;  %v6267_v25 = vsel %vm6247_vm6, %v6216_v59, 0.0  ;;  %v6194_v48 = vmul.f32 %v9842_v62, %v6169_v5  ;;  %v6171_v45 = vmin.f32 %v7659_v58, 0.0 }
 0x3c6   : > { %v6268_v15 = vsel %vm6247_vm6, %v6217_v16, 0.0  ;;  %v6195_v26 = vmul.f32 %v9842_v62, %v6170_v41  ;;  %v7627_v40 = vadd.f32 %v7626_v14, %v9940_v24  ;;  %v6147_v3 = vmax.f32 %v7659_v58, 0.0 }
 0x3c7   : > { %v6266_v9 = vsel %vm6246_vm5, %v6215_v47, 0.0  ;;  %v7144_v33 = vpack.c.bf16 %v6268_v15, %v6267_v25  ;;  %v6218_v7 = vadd.f32 %v6194_v48, %v6145_v34  ;;  %v6196_v43 = vmul.f32 %v9842_v62, %v6171_v45 }
 0x3c8   : > { %v7143_v51 = vpack.c.bf16 %v6266_v9, %v6266_v9  ;;  %v6219_v30 = vadd.f32 %v6195_v26, %v6146_v18  ;;  %v6121_v1 = vadd.f32 %v7627_v40, %v9813_v46 }
 0x3c9   : > { %6365 = vst [vmem:[%s9080_s27 + $0x48] sm:$0xff] %v7144_v33  ;;  %v6269_v28 = vsel %vm6247_vm6, %v6218_v7, 0.0  ;;  %v6220_v10 = vadd.f32 %v6196_v43, %v6147_v3 }
 0x3ca   : > { %6364 = vst [vmem:[%s9080_s27 + $0x44] sm:$0xf] %v7143_v51  ;;  %v7145_v8 = vpack.c.bf16 %v6269_v28, %v6269_v28  ;;  %v6270_v24 = vsel %vm6248_vm7, %v6219_v30, 0.0  ;;  %v6172_v14 = vmin.f32 %v6121_v1, 0.0  ;;  %v6148_v46 = vmax.f32 %v6121_v1, 0.0 }
 0x3cb   : > { %v6271_v31 = vsel %vm6248_vm7, %v6220_v10, 0.0 }
 0x3cc   : > { %6366 = vst [vmem:[%s9080_s27 + $0x50] sm:$0xf] %v7145_v8  ;;  %v7146_v19 = vpack.c.bf16 %v6271_v31, %v6270_v24  ;;  %v6197_v21 = vmul.f32 %v9842_v62, %v6172_v14 }
 0x3ce   : > { %6367 = vst [vmem:[%s9080_s27 + $0x54] sm:$0xff] %v7146_v19  ;;  %v6221_v23 = vadd.f32 %v6197_v21, %v6148_v46 }
 0x3d0   : > { %v6272_v44 = vsel %vm6248_vm7, %v6221_v23, 0.0 }
 0x3d1   : > { %v7147_v29 = vpack.c.bf16 %v6272_v44, %v6272_v44 }
 0x3d3   : > { %6368 = vst [vmem:[%s9080_s27 + $0x5c] sm:$0xf] %v7147_v29 }
 0x3d4 PF: > { %p7129_p11 = scmp.gt.s32.totalorder %s9074_s28, 0 }
 0x3d5   : > { %v8849_v32 = vmov (!%p7129_p11), 0  }
 0x3d6   : > { %6372 = sbr.rel (%p7129_p11) target bundleno = 990 (0x3de), region = 64  ;;  %6373 = vst [vmem:[%s9080_s27] sm:$0xff] (!%p7129_p11), %v8849_v32  ;;  %6374 = vst [vmem:[%s9080_s27 + $0x8] sm:$0xf] (!%p7129_p11), %v8849_v32 }
 0x3d7   : > { %6375 = vst [vmem:[%s9080_s27 + $0xc] sm:$0xff] (!%p7129_p11), %v8849_v32  ;;  %6376 = vst [vmem:[%s9080_s27 + $0x14] sm:$0xf] (!%p7129_p11), %v8849_v32 }
 0x3d8   : > { %6377 = vst [vmem:[%s9080_s27 + $0x18] sm:$0xff] (!%p7129_p11), %v8849_v32  ;;  %6378 = vst [vmem:[%s9080_s27 + $0x20] sm:$0xf] (!%p7129_p11), %v8849_v32 }
 0x3d9   : > { %6379 = vst [vmem:[%s9080_s27 + $0x24] sm:$0xff] (!%p7129_p11), %v8849_v32  ;;  %6380 = vst [vmem:[%s9080_s27 + $0x2c] sm:$0xf] (!%p7129_p11), %v8849_v32 }
 0x3da   : > { %6381 = vst [vmem:[%s9080_s27 + $0x30] sm:$0xff] (!%p7129_p11), %v8849_v32  ;;  %6382 = vst [vmem:[%s9080_s27 + $0x38] sm:$0xf] (!%p7129_p11), %v8849_v32 }
 0x3db   : > { %6383 = vst [vmem:[%s9080_s27 + $0x3c] sm:$0xff] (!%p7129_p11), %v8849_v32  ;;  %6384 = vst [vmem:[%s9080_s27 + $0x44] sm:$0xf] (!%p7129_p11), %v8849_v32 }
 0x3dc   : > { %6385 = vst [vmem:[%s9080_s27 + $0x48] sm:$0xff] (!%p7129_p11), %v8849_v32  ;;  %6386 = vst [vmem:[%s9080_s27 + $0x50] sm:$0xf] (!%p7129_p11), %v8849_v32 }
 0x3dd   : > { %6387 = vst [vmem:[%s9080_s27 + $0x54] sm:$0xff] %v8849_v32  ;;  %6388 = vst [vmem:[%s9080_s27 + $0x5c] sm:$0xf] %v8849_v32 }
 0x3de PF: > { %s21_s25 = sadd.s32 1, %s8840_s25   ;;  %s10073_s20 = smov %s8824_s21 }
 0x3df   : > { %p18_p12 = scmp.ge.s32.totalorder %s21_s25, 4   ;;  %s10074_s21 = smov %s8828_s22 }
 0x3e0   : > { %s10075_s22 = smov %s9017_s8  ;;  %s10076_s23 = smov %s8836_s24 }
 0x3e1   : > { %s10077_s24 = smov %s10079_s15  ;;  %20 = sbr.rel (!%p18_p12) target bundleno = 8 (0x8), region = 101 }
 0x3e8   :  { %6421 = vsyncpa [#allocation4], 1 }
 0x3e9   :  { %6423 = vsyncpa [#allocation4 + $0x1], 1 }
 0x3ea   :  { %6424 = vsyncpa [#allocation8], 1 }
 0x3eb   :  { %6425 = vsyncpa [#allocation5], 1 }
 0x3ec   :  { %6427 = vsyncpa [#allocation5 + $0x1], 1 }

</bundles_post_ra>
